<compile_context>
chip_gen: v7x
topology: tpu7x:2x2x1
jax: 0.10.0
libtpu: 0.0.40
codegen_flags: <defaults>
</compile_context>

<pallas_src>
from functools import partial

import jax
import jax.numpy as jnp
from jax.experimental import pallas as pl
from jax.experimental.pallas import tpu as pltpu

LRELU_SLOPE = 0.1


def get_padding(kernel_size, dilation=1):
    return (kernel_size * dilation - dilation) // 2


def _round_up(x, m):
    return (x + m - 1) // m * m


def _cdiv(a, b):
    return -(-a // b)


# ----------------------------------------------------------------------------
# Dilated Conv1d kernel (stride 1), time-tiled, packed K*Cin+bias contraction.
# ----------------------------------------------------------------------------
def _conv1d_kernel(xm_ref, xt_ref, w_ref, o_ref, xs_ref, *,
                   K, dilation, tile, pre_lrelu, out_tanh):
    # Stage the (leaky-ReLU'd) tile + halo ONCE into a bf16 VMEM scratch so the
    # K tap slices below are plain vld's instead of K shifted vreg copies.
    xm = xm_ref[...].astype(jnp.float32)
    xt = xt_ref[...].astype(jnp.float32)
    if pre_lrelu:
        # leaky_relu(0) == 0, so applying it to zero-extended input is exact.
        xm = jnp.where(xm > 0, xm, LRELU_SLOPE * xm)
        xt = jnp.where(xt > 0, xt, LRELU_SLOPE * xt)
    xs_ref[:, :tile] = xm.astype(jnp.bfloat16)
    xs_ref[:, tile:] = xt.astype(jnp.bfloat16)

    # im2col: (K*Cin + 1, tile) with a ones row for the folded bias, contracted
    # in ONE bf16 MXU matmul against the packed (Cout, K*Cin + 1) weight.
    taps = [xs_ref[:, k * dilation: k * dilation + tile] for k in range(K)]
    taps.append(jnp.ones((1, tile), jnp.bfloat16))
    x_cols = jnp.concatenate(taps, axis=0)

    acc = jnp.dot(w_ref[...], x_cols, preferred_element_type=jnp.float32)
    if out_tanh:
        acc = jnp.tanh(acc)
    o_ref[...] = acc.astype(o_ref.dtype)


def conv1d_pallas(x, w, b=None, *, dilation=1, padding=0,
                  pre_lrelu=False, out_tanh=False, out_dtype=None):
    """PyTorch-semantics Conv1d (stride 1).
    x: (B, Cin, T); w: (Cout, Cin, K); b: (Cout,) or None."""
    B, Cin, T = x.shape
    Cout, _, K = w.shape
    if out_dtype is None:
        out_dtype = x.dtype
    t_out = T + 2 * padding - dilation * (K - 1)
    halo = dilation * (K - 1)
    hb = max(128, _round_up(max(halo, 1), 128))       # halo block width (lanes)

    # Lane-tile: keep the f32 accumulator (Cout x tile) and the staged input
    # (Cin x (tile + hb)) small; >= 128 and a multiple of the halo block.
    tile = 1024
    while tile > 128 and (Cout * tile * 4 > 256 * 1024
                          or Cin * (tile + hb) * 2 > (1 << 20)):
        tile //= 2
    tile = min(tile, _round_up(t_out, 128))
    tile = _round_up(max(tile, hb), hb)
    n_t = _cdiv(t_out, tile)

    # Zero-extended input: left `padding`, right out to (n_t + 1) * tile so both
    # the main (tile-wide) and halo (hb-wide) views always index full blocks.
    # TODO(synk): this pad is still one extra HBM pass per conv; fusing it needs
    # element-indexed halo BlockSpecs or manual clipped DMA.
    L = (n_t + 1) * tile
    xe = jnp.pad(x, ((0, 0), (0, 0), (padding, L - T - padding)))

    # Packed weight: rows ordered (k major, cin minor) + a bias column, in bf16.
    wp = jnp.transpose(w, (0, 2, 1)).reshape(Cout, K * Cin)
    if b is None:
        b = jnp.zeros((Cout,), jnp.float32)
    wp = jnp.concatenate([wp, b.reshape(Cout, 1).astype(wp.dtype)], axis=1)
    wp = wp.astype(jnp.bfloat16)

    kernel = partial(_conv1d_kernel, K=K, dilation=dilation, tile=tile,
                     pre_lrelu=pre_lrelu, out_tanh=out_tanh)

    in_bytes = jnp.dtype(x.dtype).itemsize
    out_bytes = jnp.dtype(out_dtype).itemsize
    vmem_est = (2 * Cin * (tile + hb) * in_bytes      # double-buffered input blocks
                + 2 * Cout * tile * out_bytes         # double-buffered output block
                + 2 * Cout * (K * Cin + 1) * 2        # packed weight
                + Cin * (tile + hb) * 2               # bf16 scratch
                + (K * Cin + 1) * tile * 2            # im2col operand
                + Cout * tile * 4)                    # f32 accumulator
    vmem_limit = int(min(max(2 * vmem_est + (4 << 20), 16 << 20), 64 << 20))

    tile_per_hb = tile // hb
    out = pl.pallas_call(
        kernel,
        out_shape=jax.ShapeDtypeStruct((B, Cout, n_t * tile), out_dtype),
        grid=(B, n_t),
        in_specs=[
            # main time tile of the padded input
            pl.BlockSpec((None, Cin, tile), lambda bi, ti: (bi, 0, ti)),
            # halo: first hb lanes of the *next* tile (same array, aliased view)
            pl.BlockSpec((None, Cin, hb),
                         lambda bi, ti: (bi, 0, (ti + 1) * tile_per_hb)),
            # packed weight (resident, constant index map)
            pl.BlockSpec((Cout, K * Cin + 1), lambda bi, ti: (0, 0)),
        ],
        out_specs=pl.BlockSpec((None, Cout, tile), lambda bi, ti: (bi, 0, ti)),
        scratch_shapes=[pltpu.VMEM((Cin, tile + hb), jnp.bfloat16)],
        compiler_params=pltpu.CompilerParams(
            dimension_semantics=("parallel", "parallel"),
            vmem_limit_bytes=vmem_limit),
    )(xe, xe, wp)
    return out[:, :, :t_out]


# ----------------------------------------------------------------------------
# ConvTranspose1d as a single polyphase conv (no zero-stuffing) + one interleave.
# ----------------------------------------------------------------------------
def conv_transpose1d_pallas(x, w, b, *, stride, padding, pre_lrelu=False,
                            out_dtype=None):
    """PyTorch ConvTranspose1d.  x: (B, Cin, T); w: (Cin, Cout, K); b: (Cout,).
    Each output phase phi = t mod stride is a small dense conv over the
    un-stuffed x; all phases are stacked into the output-channel dim of one
    conv call and interleaved once at the end."""
    B, Cin, T = x.shape
    _, Cout, K = w.shape
    s = stride
    if out_dtype is None:
        out_dtype = x.dtype
    t_out = (T - 1) * s - 2 * padding + K
    Q = _cdiv(t_out, s)                       # per-phase length (padded up)

    # Static phase geometry.
    phases = []
    dmin = dmax = None
    for phi in range(s):
        k0 = (phi + padding) % s
        c0 = (phi + padding - k0) // s
        m_cnt = _cdiv(K - k0, s) if k0 < K else 0
        phases.append((k0, c0, m_cnt))
        if m_cnt > 0:
            dmin = c0 - (m_cnt - 1) if dmin is None else min(dmin, c0 - (m_cnt - 1))
            dmax = c0 if dmax is None else max(dmax, c0)
    assert dmin is not None, "transposed conv with no taps"
    Kc = dmax - dmin + 1

    # Combined weight: out channel (phi, co); tap j multiplies x[q + dmin + j].
    wc = jnp.zeros((s * Cout, Cin, Kc), w.dtype)
    for phi, (k0, c0, m_cnt) in enumerate(phases):
        for m in range(m_cnt):
            k = k0 + m * s
            j = c0 - m - dmin
            wc = wc.at[phi * Cout:(phi + 1) * Cout, :, j].set(w[:, :, k].T)
    b_rep = jnp.tile(b, s)

    # x window [dmin, dmin + Q + Kc - 1) with zero extension (exact: no x[i<0]
    # or x[i>=T] contributions in a transposed conv, and leaky_relu(0)=0).
    total = Q + Kc - 1
    start = max(0, dmin)
    stop = min(T, dmin + total)
    core = x[:, :, start:stop]
    pad_l = max(0, -dmin)
    pad_r = total - pad_l - core.shape[-1]
    x_in = jnp.pad(core, ((0, 0), (0, 0), (pad_l, pad_r)))

    y = conv1d_pallas(x_in, wc, b_rep, dilation=1, padding=0,
                      pre_lrelu=pre_lrelu, out_dtype=out_dtype)  # (B, s*Cout, Q)
    # Single interleave: y[b, phi*Cout + co, q] -> out[b, co, q*s + phi]
    y = y.reshape(B, s, Cout, Q).transpose(0, 2, 3, 1).reshape(B, Cout, Q * s)
    return y[:, :, :t_out]


# ----------------------------------------------------------------------------
# Fused two-level inverse Haar (db1) DWT:  chunk(4) + 3x DWT1DInverse in one pass.
#   db1/'zero' synthesis: out[2n]=(lo+hi)/sqrt2, out[2n+1]=(lo-hi)/sqrt2
#   (matches pywt / pytorch_wavelets rec_lo=[1,1]/sqrt2, rec_hi=[1,-1]/sqrt2;
#   the 2-tap filter has no boundary effects, so the mode is irrelevant).
#   Two cascaded levels fold to out[4n+r] = 0.5 * Hadamard4 @ (ll, lh, hl, hh).
# ----------------------------------------------------------------------------
def _idwt2_haar_kernel(x_ref, o_ref):
    x = x_ref[...].astype(jnp.float32)            # (4, tile)
    a, b, c, d = x[0:1], x[1:2], x[2:3], x[3:4]
    apb, amb = a + b, a - b
    cpd, cmd = c + d, c - d
    out = 0.5 * jnp.concatenate([apb + cpd, apb - cpd, amb + cmd, amb - cmd],
                                axis=0)           # phases r = 0..3
    o_ref[...] = out.astype(o_ref.dtype)


def idwt2_haar_fused(x4):
    """x4: (B, 4, T) = [ll, lh, hl, hh] -> audio (B, 1, 4*T)."""
    B, C, T = x4.shape
    assert C == 4
    tile = T
    for cand in (2048, 1024, 512, 256, 128):
        if T % cand == 0:
            tile = cand
            break
    n_t = T // tile
    vmem_limit = int(min(max(16 * 4 * tile * 4 + (2 << 20), 8 << 20), 64 << 20))
    phases = pl.pallas_call(
        _idwt2_haar_kernel,
        out_shape=jax.ShapeDtypeStruct((B, 4, T), jnp.float32),
        grid=(B, n_t),
        in_specs=[pl.BlockSpec((None, 4, tile), lambda bi, ti: (bi, 0, ti))],
        out_specs=pl.BlockSpec((None, 4, tile), lambda bi, ti: (bi, 0, ti)),
        compiler_params=pltpu.CompilerParams(
            dimension_semantics=("parallel", "parallel"),
            vmem_limit_bytes=vmem_limit),
    )(x4)
    # Single final interleave: phases[b, r, n] -> audio[b, 0, 4n + r]
    return phases.transpose(0, 2, 1).reshape(B, 1, 4 * T)


# ----------------------------------------------------------------------------
# Parameter init (deterministic, synthetic; weight_norm folded into plain W).
# Params hold arrays only (static config lives in hparams), so the whole
# forward can be jit'ed with hparams closed over.
# ----------------------------------------------------------------------------
def init_generator2_params(key, h):
    keys = jax.random.split(key, 1024)
    idx = [0]

    def nxt(shape):
        k = keys[idx[0]]
        idx[0] += 1
        return 0.01 * jax.random.normal(k, shape, dtype=jnp.float32)

    uic = h["upsample_initial_channel"]
    p = {"conv_pre_w": nxt((uic, 80, 7)), "conv_pre_b": nxt((uic,))}

    p["ups"] = []
    for i, (u, k) in enumerate(zip(h["upsample_rates"], h["upsample_kernel_sizes"])):
        cin = uic // (2 ** i)
        cout = uic // (2 ** (i + 1))
        p["ups"].append({"w": nxt((cin, cout, k)), "b": nxt((cout,))})

    p["resblocks"] = []
    ch = uic
    for i in range(len(h["upsample_rates"])):
        ch = uic // (2 ** (i + 1))
        for (k, d) in zip(h["resblock_kernel_sizes"], h["resblock_dilation_sizes"]):
            convs1 = [{"w": nxt((ch, ch, k)), "b": nxt((ch,))} for _ in d]
            convs2 = [{"w": nxt((ch, ch, k)), "b": nxt((ch,))} for _ in d]
            p["resblocks"].append({"convs1": convs1, "convs2": convs2})
    p["conv_post_w"] = nxt((4, ch, 7))   # bias=False
    return p


# ----------------------------------------------------------------------------
# Forward pass (mirrors Generator2.forward).
# ----------------------------------------------------------------------------
def resblock1_forward(x, rb, kernel_size, dilations):
    for c1, c2, d in zip(rb["convs1"], rb["convs2"], dilations):
        xt = conv1d_pallas(x, c1["w"], c1["b"], dilation=d,
                           padding=get_padding(kernel_size, d),
                           pre_lrelu=True, out_dtype=jnp.bfloat16)
        xt = conv1d_pallas(xt, c2["w"], c2["b"], dilation=1,
                           padding=get_padding(kernel_size, 1),
                           pre_lrelu=True, out_dtype=jnp.bfloat16)
        x = xt + x
    return x


def generator2_forward(x, p, h):
    num_kernels = len(h["resblock_kernel_sizes"])
    num_upsamples = len(h["upsample_rates"])

    # Intermediate activations kept in bf16 (halves HBM traffic); matmuls
    # accumulate in f32 inside the kernels, activation math stays f32.
    x = conv1d_pallas(x, p["conv_pre_w"], p["conv_pre_b"], dilation=1,
                      padding=3, out_dtype=jnp.bfloat16)

    for i in range(num_upsamples):
        u = h["upsample_rates"][i]
        k = h["upsample_kernel_sizes"][i]
        up = p["ups"][i]
        # F.leaky_relu fused into the polyphase transposed-conv kernel
        x = conv_transpose1d_pallas(x, up["w"], up["b"], stride=u,
                                    padding=(k - u) // 2, pre_lrelu=True,
                                    out_dtype=jnp.bfloat16)
        xs = None
        for j in range(num_kernels):
            rb = p["resblocks"][i * num_kernels + j]
            y = resblock1_forward(x, rb, h["resblock_kernel_sizes"][j],
                                  h["resblock_dilation_sizes"][j])
            xs = y if xs is None else xs + y
        x = xs / num_kernels

    # leaky_relu + conv_post (bias=False) + tanh fused in one kernel, f32 out
    x = conv1d_pallas(x, p["conv_post_w"], None, dilation=1, padding=3,
                      pre_lrelu=True, out_tanh=True, out_dtype=jnp.float32)

    # chunk(4, dim=1) + two-level inverse DWT (db1) fused + single interleave
    return idwt2_haar_fused(x)


if __name__ == "__main__":
    # Small, self-consistent hparams (HiFi-GAN-style, shrunk).
    hparams = {
        "resblock_kernel_sizes": [3, 5],
        "resblock_dilation_sizes": [[1, 3, 5], [1, 3, 5]],
        "upsample_rates": [2, 2],
        "upsample_kernel_sizes": [4, 4],
        "upsample_initial_channel": 32,
    }

    key = jax.random.PRNGKey(0)
    pkey, xkey = jax.random.split(key)
    params = init_generator2_params(pkey, hparams)

    B, T_mel = 2, 16
    x = jax.random.normal(xkey, (B, 80, T_mel), dtype=jnp.float32)  # mel (NCW)

    fwd = jax.jit(partial(generator2_forward, h=hparams))
    out = jax.block_until_ready(fwd(x, params))

    expected_T = T_mel * 2 * 2 * 4   # prod(upsample_rates) * 2 IDWT levels * 2
    assert out.shape == (B, 1, expected_T), out.shape
    assert bool(jnp.all(jnp.isfinite(out)))
    print("KERNEL_OK")
</pallas_src>

<mosaic_0001>
module attributes {stable_mosaic.version = 11 : i64} {
  func.func @_conv1d_kernel(%arg0: i32, %arg1: i32, %arg2: memref<1x80x128xf32, #tpu.memory_space<vmem>>, %arg3: memref<1x80x128xf32, #tpu.memory_space<vmem>>, %arg4: memref<32x561xbf16, #tpu.memory_space<vmem>>, %arg5: memref<1x32x128xbf16, #tpu.memory_space<vmem>>, %arg6: memref<80x256xbf16, #tpu.memory_space<vmem>>) attributes {dimension_semantics = [#tpu.dimension_semantics<parallel>, #tpu.dimension_semantics<parallel>], iteration_bounds = array<i64: 2, 1>, scalar_prefetch = 0 : i64, scratch_operands = 1 : i64, tpu.core_type = #tpu.core_type<tc>, window_params = [{transform_indices = @transform_0, window_bounds = array<i64: 1, 80, 128>}, {transform_indices = @transform_1, window_bounds = array<i64: 1, 80, 128>}, {pipeline_mode = #tpu.pipeline_mode<synchronous>, transform_indices = @transform_2, window_bounds = array<i64: 32, 561>}, {transform_indices = @transform_3, window_bounds = array<i64: 1, 32, 128>}]} {
    %c0 = arith.constant 0 : index
    %c0_0 = arith.constant 0 : index
    %c0_1 = arith.constant 0 : index
    %0 = vector.load %arg2[%c0, %c0_0, %c0_1] : memref<1x80x128xf32, #tpu.memory_space<vmem>>, vector<1x80x128xf32>
    %1 = vector.shape_cast %0 : vector<1x80x128xf32> to vector<80x128xf32>
    %c0_2 = arith.constant 0 : index
    %c0_3 = arith.constant 0 : index
    %c0_4 = arith.constant 0 : index
    %2 = vector.load %arg3[%c0_2, %c0_3, %c0_4] : memref<1x80x128xf32, #tpu.memory_space<vmem>>, vector<1x80x128xf32>
    %3 = vector.shape_cast %2 : vector<1x80x128xf32> to vector<80x128xf32>
    %4 = arith.truncf %1 : vector<80x128xf32> to vector<80x128xbf16>
    %c0_5 = arith.constant 0 : index
    %c0_6 = arith.constant 0 : index
    %5 = vector.load %arg6[%c0_5, %c0_6] : memref<80x256xbf16, #tpu.memory_space<vmem>>, vector<80x128xbf16>
    tpu.vector_store %arg6[%c0_5, %c0_6], %4 {strides = array<i32>} : memref<80x256xbf16, #tpu.memory_space<vmem>>, vector<80x128xbf16>,
    %6 = arith.truncf %3 : vector<80x128xf32> to vector<80x128xbf16>
    %c0_7 = arith.constant 0 : index
    %c128 = arith.constant 128 : index
    %7 = vector.load %arg6[%c0_7, %c128] : memref<80x256xbf16, #tpu.memory_space<vmem>>, vector<80x128xbf16>
    tpu.vector_store %arg6[%c0_7, %c128], %6 {strides = array<i32>} : memref<80x256xbf16, #tpu.memory_space<vmem>>, vector<80x128xbf16>,
    %c0_8 = arith.constant 0 : index
    %c0_9 = arith.constant 0 : index
    %8 = vector.load %arg6[%c0_8, %c0_9] : memref<80x256xbf16, #tpu.memory_space<vmem>>, vector<80x128xbf16>
    %c0_10 = arith.constant 0 : index
    %c1 = arith.constant 1 : index
    %9 = vector.load %arg6[%c0_10, %c1] : memref<80x256xbf16, #tpu.memory_space<vmem>>, vector<80x128xbf16>
    %c0_11 = arith.constant 0 : index
    %c2 = arith.constant 2 : index
    %10 = vector.load %arg6[%c0_11, %c2] : memref<80x256xbf16, #tpu.memory_space<vmem>>, vector<80x128xbf16>
    %c0_12 = arith.constant 0 : index
    %c3 = arith.constant 3 : index
    %11 = vector.load %arg6[%c0_12, %c3] : memref<80x256xbf16, #tpu.memory_space<vmem>>, vector<80x128xbf16>
    %c0_13 = arith.constant 0 : index
    %c4 = arith.constant 4 : index
    %12 = vector.load %arg6[%c0_13, %c4] : memref<80x256xbf16, #tpu.memory_space<vmem>>, vector<80x128xbf16>
    %c0_14 = arith.constant 0 : index
    %c5 = arith.constant 5 : index
    %13 = vector.load %arg6[%c0_14, %c5] : memref<80x256xbf16, #tpu.memory_space<vmem>>, vector<80x128xbf16>
    %c0_15 = arith.constant 0 : index
    %c6 = arith.constant 6 : index
    %14 = vector.load %arg6[%c0_15, %c6] : memref<80x256xbf16, #tpu.memory_space<vmem>>, vector<80x128xbf16>
    %cst = arith.constant 1.000000e+00 : bf16
    %15 = vector.broadcast %cst : bf16 to vector<1x128xbf16>
    %16 = tpu.concatenate %8, %9, %10, %11, %12, %13, %14, %15 in 0 : vector<80x128xbf16>, vector<80x128xbf16>, vector<80x128xbf16>, vector<80x128xbf16>, vector<80x128xbf16>, vector<80x128xbf16>, vector<80x128xbf16>, vector<1x128xbf16> -> vector<561x128xbf16>
    %c0_16 = arith.constant 0 : index
    %c0_17 = arith.constant 0 : index
    %17 = vector.load %arg4[%c0_16, %c0_17] : memref<32x561xbf16, #tpu.memory_space<vmem>>, vector<32x561xbf16>
    %cst_18 = arith.constant dense<0.000000e+00> : vector<32x128xf32>
    %18 = tpu.matmul %17, %16, %cst_18 {dimension_numbers = #tpu.dot_dimension_numbers<[1], [0], [0], [1], [0, 0, 1, 1], [], []>} : vector<32x561xbf16>, vector<561x128xbf16>, vector<32x128xf32> -> vector<32x128xf32>
    %19 = arith.truncf %18 : vector<32x128xf32> to vector<32x128xbf16>
    %c0_19 = arith.constant 0 : index
    %c0_20 = arith.constant 0 : index
    %c0_21 = arith.constant 0 : index
    %20 = vector.load %arg5[%c0_19, %c0_20, %c0_21] : memref<1x32x128xbf16, #tpu.memory_space<vmem>>, vector<1x32x128xbf16>
    %21 = vector.shape_cast %20 : vector<1x32x128xbf16> to vector<32x128xbf16>
    %22 = vector.shape_cast %19 : vector<32x128xbf16> to vector<1x32x128xbf16>
    tpu.vector_store %arg5[%c0_19, %c0_20, %c0_21], %22 {strides = array<i32>} : memref<1x32x128xbf16, #tpu.memory_space<vmem>>, vector<1x32x128xbf16>,
    return
  }
  func.func @transform_0(%arg0: i32, %arg1: i32) -> (i32, i32, i32) {
    %c0_i32 = arith.constant 0 : i32
    %c0_i32_0 = arith.constant 0 : i32
    return %arg0, %c0_i32, %arg1 : i32, i32, i32
  }
  func.func @transform_1(%arg0: i32, %arg1: i32) -> (i32, i32, i32) {
    %c1_i32 = arith.constant 1 : i32
    %0 = arith.addi %arg1, %c1_i32 : i32
    %c1_i32_0 = arith.constant 1 : i32
    %1 = arith.muli %0, %c1_i32_0 : i32
    %c0_i32 = arith.constant 0 : i32
    %c0_i32_1 = arith.constant 0 : i32
    return %arg0, %c0_i32, %1 : i32, i32, i32
  }
  func.func @transform_2(%arg0: i32, %arg1: i32) -> (i32, i32) {
    %c0_i32 = arith.constant 0 : i32
    %c0_i32_0 = arith.constant 0 : i32
    %c0_i32_1 = arith.constant 0 : i32
    return %c0_i32, %c0_i32_0 : i32, i32
  }
  func.func @transform_3(%arg0: i32, %arg1: i32) -> (i32, i32, i32) {
    %c0_i32 = arith.constant 0 : i32
    %c0_i32_0 = arith.constant 0 : i32
    return %arg0, %c0_i32, %arg1 : i32, i32, i32
  }
}

module attributes {stable_mosaic.version = 11 : i64} {
  func.func @_conv1d_kernel(%arg0: i32, %arg1: i32, %arg2: memref<1x32x128xbf16, #tpu.memory_space<vmem>>, %arg3: memref<1x32x128xbf16, #tpu.memory_space<vmem>>, %arg4: memref<32x97xbf16, #tpu.memory_space<vmem>>, %arg5: memref<1x32x128xbf16, #tpu.memory_space<vmem>>, %arg6: memref<32x256xbf16, #tpu.memory_space<vmem>>) attributes {dimension_semantics = [#tpu.dimension_semantics<parallel>, #tpu.dimension_semantics<parallel>], iteration_bounds = array<i64: 2, 1>, scalar_prefetch = 0 : i64, scratch_operands = 1 : i64, tpu.core_type = #tpu.core_type<tc>, window_params = [{transform_indices = @transform_0, window_bounds = array<i64: 1, 32, 128>}, {transform_indices = @transform_1, window_bounds = array<i64: 1, 32, 128>}, {pipeline_mode = #tpu.pipeline_mode<synchronous>, transform_indices = @transform_2, window_bounds = array<i64: 32, 97>}, {transform_indices = @transform_3, window_bounds = array<i64: 1, 32, 128>}]} {
    %c0 = arith.constant 0 : index
    %c0_0 = arith.constant 0 : index
    %c0_1 = arith.constant 0 : index
    %0 = vector.load %arg2[%c0, %c0_0, %c0_1] : memref<1x32x128xbf16, #tpu.memory_space<vmem>>, vector<1x32x128xbf16>
    %1 = vector.shape_cast %0 : vector<1x32x128xbf16> to vector<32x128xbf16>
    %2 = arith.extf %1 : vector<32x128xbf16> to vector<32x128xf32>
    %c0_2 = arith.constant 0 : index
    %c0_3 = arith.constant 0 : index
    %c0_4 = arith.constant 0 : index
    %3 = vector.load %arg3[%c0_2, %c0_3, %c0_4] : memref<1x32x128xbf16, #tpu.memory_space<vmem>>, vector<1x32x128xbf16>
    %4 = vector.shape_cast %3 : vector<1x32x128xbf16> to vector<32x128xbf16>
    %5 = arith.extf %4 : vector<32x128xbf16> to vector<32x128xf32>
    %cst = arith.constant 0.000000e+00 : f32
    %6 = vector.broadcast %cst : f32 to vector<32x128xf32>
    %7 = arith.cmpf ogt, %2, %6 : vector<32x128xf32>
    %cst_5 = arith.constant 1.000000e-01 : f32
    %8 = vector.broadcast %cst_5 : f32 to vector<32x128xf32>
    %9 = arith.mulf %8, %2 : vector<32x128xf32>
    %10 = arith.select %7, %2, %9 : vector<32x128xi1>, vector<32x128xf32>
    %cst_6 = arith.constant 0.000000e+00 : f32
    %11 = vector.broadcast %cst_6 : f32 to vector<32x128xf32>
    %12 = arith.cmpf ogt, %5, %11 : vector<32x128xf32>
    %cst_7 = arith.constant 1.000000e-01 : f32
    %13 = vector.broadcast %cst_7 : f32 to vector<32x128xf32>
    %14 = arith.mulf %13, %5 : vector<32x128xf32>
    %15 = arith.select %12, %5, %14 : vector<32x128xi1>, vector<32x128xf32>
    %16 = arith.truncf %10 : vector<32x128xf32> to vector<32x128xbf16>
    %c0_8 = arith.constant 0 : index
    %c0_9 = arith.constant 0 : index
    %17 = vector.load %arg6[%c0_8, %c0_9] : memref<32x256xbf16, #tpu.memory_space<vmem>>, vector<32x128xbf16>
    tpu.vector_store %arg6[%c0_8, %c0_9], %16 {strides = array<i32>} : memref<32x256xbf16, #tpu.memory_space<vmem>>, vector<32x128xbf16>,
    %18 = arith.truncf %15 : vector<32x128xf32> to vector<32x128xbf16>
    %c0_10 = arith.constant 0 : index
    %c128 = arith.constant 128 : index
    %19 = vector.load %arg6[%c0_10, %c128] : memref<32x256xbf16, #tpu.memory_space<vmem>>, vector<32x128xbf16>
    tpu.vector_store %arg6[%c0_10, %c128], %18 {strides = array<i32>} : memref<32x256xbf16, #tpu.memory_space<vmem>>, vector<32x128xbf16>,
    %c0_11 = arith.constant 0 : index
    %c0_12 = arith.constant 0 : index
    %20 = vector.load %arg6[%c0_11, %c0_12] : memref<32x256xbf16, #tpu.memory_space<vmem>>, vector<32x128xbf16>
    %c0_13 = arith.constant 0 : index
    %c1 = arith.constant 1 : index
    %21 = vector.load %arg6[%c0_13, %c1] : memref<32x256xbf16, #tpu.memory_space<vmem>>, vector<32x128xbf16>
    %c0_14 = arith.constant 0 : index
    %c2 = arith.constant 2 : index
    %22 = vector.load %arg6[%c0_14, %c2] : memref<32x256xbf16, #tpu.memory_space<vmem>>, vector<32x128xbf16>
    %cst_15 = arith.constant 1.000000e+00 : bf16
    %23 = vector.broadcast %cst_15 : bf16 to vector<1x128xbf16>
    %24 = tpu.concatenate %20, %21, %22, %23 in 0 : vector<32x128xbf16>, vector<32x128xbf16>, vector<32x128xbf16>, vector<1x128xbf16> -> vector<97x128xbf16>
    %c0_16 = arith.constant 0 : index
    %c0_17 = arith.constant 0 : index
    %25 = vector.load %arg4[%c0_16, %c0_17] : memref<32x97xbf16, #tpu.memory_space<vmem>>, vector<32x97xbf16>
    %cst_18 = arith.constant dense<0.000000e+00> : vector<32x128xf32>
    %26 = tpu.matmul %25, %24, %cst_18 {dimension_numbers = #tpu.dot_dimension_numbers<[1], [0], [0], [1], [0, 0, 1, 1], [], []>} : vector<32x97xbf16>, vector<97x128xbf16>, vector<32x128xf32> -> vector<32x128xf32>
    %27 = arith.truncf %26 : vector<32x128xf32> to vector<32x128xbf16>
    %c0_19 = arith.constant 0 : index
    %c0_20 = arith.constant 0 : index
    %c0_21 = arith.constant 0 : index
    %28 = vector.load %arg5[%c0_19, %c0_20, %c0_21] : memref<1x32x128xbf16, #tpu.memory_space<vmem>>, vector<1x32x128xbf16>
    %29 = vector.shape_cast %28 : vector<1x32x128xbf16> to vector<32x128xbf16>
    %30 = vector.shape_cast %27 : vector<32x128xbf16> to vector<1x32x128xbf16>
    tpu.vector_store %arg5[%c0_19, %c0_20, %c0_21], %30 {strides = array<i32>} : memref<1x32x128xbf16, #tpu.memory_space<vmem>>, vector<1x32x128xbf16>,
    return
  }
  func.func @transform_0(%arg0: i32, %arg1: i32) -> (i32, i32, i32) {
    %c0_i32 = arith.constant 0 : i32
    %c0_i32_0 = arith.constant 0 : i32
    return %arg0, %c0_i32, %arg1 : i32, i32, i32
  }
  func.func @transform_1(%arg0: i32, %arg1: i32) -> (i32, i32, i32) {
    %c1_i32 = arith.constant 1 : i32
    %0 = arith.addi %arg1, %c1_i32 : i32
    %c1_i32_0 = arith.constant 1 : i32
    %1 = arith.muli %0, %c1_i32_0 : i32
    %c0_i32 = arith.constant 0 : i32
    %c0_i32_1 = arith.constant 0 : i32
    return %arg0, %c0_i32, %1 : i32, i32, i32
  }
  func.func @transform_2(%arg0: i32, %arg1: i32) -> (i32, i32) {
    %c0_i32 = arith.constant 0 : i32
    %c0_i32_0 = arith.constant 0 : i32
    %c0_i32_1 = arith.constant 0 : i32
    return %c0_i32, %c0_i32_0 : i32, i32
  }
  func.func @transform_3(%arg0: i32, %arg1: i32) -> (i32, i32, i32) {
    %c0_i32 = arith.constant 0 : i32
    %c0_i32_0 = arith.constant 0 : i32
    return %arg0, %c0_i32, %arg1 : i32, i32, i32
  }
}

module attributes {stable_mosaic.version = 11 : i64} {
  func.func @_conv1d_kernel(%arg0: i32, %arg1: i32, %arg2: memref<1x16x128xbf16, #tpu.memory_space<vmem>>, %arg3: memref<1x16x128xbf16, #tpu.memory_space<vmem>>, %arg4: memref<16x81xbf16, #tpu.memory_space<vmem>>, %arg5: memref<1x16x128xbf16, #tpu.memory_space<vmem>>, %arg6: memref<16x256xbf16, #tpu.memory_space<vmem>>) attributes {dimension_semantics = [#tpu.dimension_semantics<parallel>, #tpu.dimension_semantics<parallel>], iteration_bounds = array<i64: 2, 1>, scalar_prefetch = 0 : i64, scratch_operands = 1 : i64, tpu.core_type = #tpu.core_type<tc>, window_params = [{transform_indices = @transform_0, window_bounds = array<i64: 1, 16, 128>}, {transform_indices = @transform_1, window_bounds = array<i64: 1, 16, 128>}, {pipeline_mode = #tpu.pipeline_mode<synchronous>, transform_indices = @transform_2, window_bounds = array<i64: 16, 81>}, {transform_indices = @transform_3, window_bounds = array<i64: 1, 16, 128>}]} {
    %c0 = arith.constant 0 : index
    %c0_0 = arith.constant 0 : index
    %c0_1 = arith.constant 0 : index
    %0 = vector.load %arg2[%c0, %c0_0, %c0_1] : memref<1x16x128xbf16, #tpu.memory_space<vmem>>, vector<1x16x128xbf16>
    %1 = vector.shape_cast %0 : vector<1x16x128xbf16> to vector<16x128xbf16>
    %2 = arith.extf %1 : vector<16x128xbf16> to vector<16x128xf32>
    %c0_2 = arith.constant 0 : index
    %c0_3 = arith.constant 0 : index
    %c0_4 = arith.constant 0 : index
    %3 = vector.load %arg3[%c0_2, %c0_3, %c0_4] : memref<1x16x128xbf16, #tpu.memory_space<vmem>>, vector<1x16x128xbf16>
    %4 = vector.shape_cast %3 : vector<1x16x128xbf16> to vector<16x128xbf16>
    %5 = arith.extf %4 : vector<16x128xbf16> to vector<16x128xf32>
    %cst = arith.constant 0.000000e+00 : f32
    %6 = vector.broadcast %cst : f32 to vector<16x128xf32>
    %7 = arith.cmpf ogt, %2, %6 : vector<16x128xf32>
    %cst_5 = arith.constant 1.000000e-01 : f32
    %8 = vector.broadcast %cst_5 : f32 to vector<16x128xf32>
    %9 = arith.mulf %8, %2 : vector<16x128xf32>
    %10 = arith.select %7, %2, %9 : vector<16x128xi1>, vector<16x128xf32>
    %cst_6 = arith.constant 0.000000e+00 : f32
    %11 = vector.broadcast %cst_6 : f32 to vector<16x128xf32>
    %12 = arith.cmpf ogt, %5, %11 : vector<16x128xf32>
    %cst_7 = arith.constant 1.000000e-01 : f32
    %13 = vector.broadcast %cst_7 : f32 to vector<16x128xf32>
    %14 = arith.mulf %13, %5 : vector<16x128xf32>
    %15 = arith.select %12, %5, %14 : vector<16x128xi1>, vector<16x128xf32>
    %16 = arith.truncf %10 : vector<16x128xf32> to vector<16x128xbf16>
    %c0_8 = arith.constant 0 : index
    %c0_9 = arith.constant 0 : index
    %17 = vector.load %arg6[%c0_8, %c0_9] : memref<16x256xbf16, #tpu.memory_space<vmem>>, vector<16x128xbf16>
    tpu.vector_store %arg6[%c0_8, %c0_9], %16 {strides = array<i32>} : memref<16x256xbf16, #tpu.memory_space<vmem>>, vector<16x128xbf16>,
    %18 = arith.truncf %15 : vector<16x128xf32> to vector<16x128xbf16>
    %c0_10 = arith.constant 0 : index
    %c128 = arith.constant 128 : index
    %19 = vector.load %arg6[%c0_10, %c128] : memref<16x256xbf16, #tpu.memory_space<vmem>>, vector<16x128xbf16>
    tpu.vector_store %arg6[%c0_10, %c128], %18 {strides = array<i32>} : memref<16x256xbf16, #tpu.memory_space<vmem>>, vector<16x128xbf16>,
    %c0_11 = arith.constant 0 : index
    %c0_12 = arith.constant 0 : index
    %20 = vector.load %arg6[%c0_11, %c0_12] : memref<16x256xbf16, #tpu.memory_space<vmem>>, vector<16x128xbf16>
    %c0_13 = arith.constant 0 : index
    %c1 = arith.constant 1 : index
    %21 = vector.load %arg6[%c0_13, %c1] : memref<16x256xbf16, #tpu.memory_space<vmem>>, vector<16x128xbf16>
    %c0_14 = arith.constant 0 : index
    %c2 = arith.constant 2 : index
    %22 = vector.load %arg6[%c0_14, %c2] : memref<16x256xbf16, #tpu.memory_space<vmem>>, vector<16x128xbf16>
    %c0_15 = arith.constant 0 : index
    %c3 = arith.constant 3 : index
    %23 = vector.load %arg6[%c0_15, %c3] : memref<16x256xbf16, #tpu.memory_space<vmem>>, vector<16x128xbf16>
    %c0_16 = arith.constant 0 : index
    %c4 = arith.constant 4 : index
    %24 = vector.load %arg6[%c0_16, %c4] : memref<16x256xbf16, #tpu.memory_space<vmem>>, vector<16x128xbf16>
    %cst_17 = arith.constant 1.000000e+00 : bf16
    %25 = vector.broadcast %cst_17 : bf16 to vector<1x128xbf16>
    %26 = tpu.concatenate %20, %21, %22, %23, %24, %25 in 0 : vector<16x128xbf16>, vector<16x128xbf16>, vector<16x128xbf16>, vector<16x128xbf16>, vector<16x128xbf16>, vector<1x128xbf16> -> vector<81x128xbf16>
    %c0_18 = arith.constant 0 : index
    %c0_19 = arith.constant 0 : index
    %27 = vector.load %arg4[%c0_18, %c0_19] : memref<16x81xbf16, #tpu.memory_space<vmem>>, vector<16x81xbf16>
    %cst_20 = arith.constant dense<0.000000e+00> : vector<16x128xf32>
    %28 = tpu.matmul %27, %26, %cst_20 {dimension_numbers = #tpu.dot_dimension_numbers<[1], [0], [0], [1], [0, 0, 1, 1], [], []>} : vector<16x81xbf16>, vector<81x128xbf16>, vector<16x128xf32> -> vector<16x128xf32>
    %29 = arith.truncf %28 : vector<16x128xf32> to vector<16x128xbf16>
    %c0_21 = arith.constant 0 : index
    %c0_22 = arith.constant 0 : index
    %c0_23 = arith.constant 0 : index
    %30 = vector.load %arg5[%c0_21, %c0_22, %c0_23] : memref<1x16x128xbf16, #tpu.memory_space<vmem>>, vector<1x16x128xbf16>
    %31 = vector.shape_cast %30 : vector<1x16x128xbf16> to vector<16x128xbf16>
    %32 = vector.shape_cast %29 : vector<16x128xbf16> to vector<1x16x128xbf16>
    tpu.vector_store %arg5[%c0_21, %c0_22, %c0_23], %32 {strides = array<i32>} : memref<1x16x128xbf16, #tpu.memory_space<vmem>>, vector<1x16x128xbf16>,
    return
  }
  func.func @transform_0(%arg0: i32, %arg1: i32) -> (i32, i32, i32) {
    %c0_i32 = arith.constant 0 : i32
    %c0_i32_0 = arith.constant 0 : i32
    return %arg0, %c0_i32, %arg1 : i32, i32, i32
  }
  func.func @transform_1(%arg0: i32, %arg1: i32) -> (i32, i32, i32) {
    %c1_i32 = arith.constant 1 : i32
    %0 = arith.addi %arg1, %c1_i32 : i32
    %c1_i32_0 = arith.constant 1 : i32
    %1 = arith.muli %0, %c1_i32_0 : i32
    %c0_i32 = arith.constant 0 : i32
    %c0_i32_1 = arith.constant 0 : i32
    return %arg0, %c0_i32, %1 : i32, i32, i32
  }
  func.func @transform_2(%arg0: i32, %arg1: i32) -> (i32, i32) {
    %c0_i32 = arith.constant 0 : i32
    %c0_i32_0 = arith.constant 0 : i32
    %c0_i32_1 = arith.constant 0 : i32
    return %c0_i32, %c0_i32_0 : i32, i32
  }
  func.func @transform_3(%arg0: i32, %arg1: i32) -> (i32, i32, i32) {
    %c0_i32 = arith.constant 0 : i32
    %c0_i32_0 = arith.constant 0 : i32
    return %arg0, %c0_i32, %arg1 : i32, i32, i32
  }
}

module attributes {stable_mosaic.version = 11 : i64} {
  func.func @_conv1d_kernel(%arg0: i32, %arg1: i32, %arg2: memref<1x16x128xbf16, #tpu.memory_space<vmem>>, %arg3: memref<1x16x128xbf16, #tpu.memory_space<vmem>>, %arg4: memref<16x49xbf16, #tpu.memory_space<vmem>>, %arg5: memref<1x16x128xbf16, #tpu.memory_space<vmem>>, %arg6: memref<16x256xbf16, #tpu.memory_space<vmem>>) attributes {dimension_semantics = [#tpu.dimension_semantics<parallel>, #tpu.dimension_semantics<parallel>], iteration_bounds = array<i64: 2, 1>, scalar_prefetch = 0 : i64, scratch_operands = 1 : i64, tpu.core_type = #tpu.core_type<tc>, window_params = [{transform_indices = @transform_0, window_bounds = array<i64: 1, 16, 128>}, {transform_indices = @transform_1, window_bounds = array<i64: 1, 16, 128>}, {pipeline_mode = #tpu.pipeline_mode<synchronous>, transform_indices = @transform_2, window_bounds = array<i64: 16, 49>}, {transform_indices = @transform_3, window_bounds = array<i64: 1, 16, 128>}]} {
    %c0 = arith.constant 0 : index
    %c0_0 = arith.constant 0 : index
    %c0_1 = arith.constant 0 : index
    %0 = vector.load %arg2[%c0, %c0_0, %c0_1] : memref<1x16x128xbf16, #tpu.memory_space<vmem>>, vector<1x16x128xbf16>
    %1 = vector.shape_cast %0 : vector<1x16x128xbf16> to vector<16x128xbf16>
    %2 = arith.extf %1 : vector<16x128xbf16> to vector<16x128xf32>
    %c0_2 = arith.constant 0 : index
    %c0_3 = arith.constant 0 : index
    %c0_4 = arith.constant 0 : index
    %3 = vector.load %arg3[%c0_2, %c0_3, %c0_4] : memref<1x16x128xbf16, #tpu.memory_space<vmem>>, vector<1x16x128xbf16>
    %4 = vector.shape_cast %3 : vector<1x16x128xbf16> to vector<16x128xbf16>
    %5 = arith.extf %4 : vector<16x128xbf16> to vector<16x128xf32>
    %cst = arith.constant 0.000000e+00 : f32
    %6 = vector.broadcast %cst : f32 to vector<16x128xf32>
    %7 = arith.cmpf ogt, %2, %6 : vector<16x128xf32>
    %cst_5 = arith.constant 1.000000e-01 : f32
    %8 = vector.broadcast %cst_5 : f32 to vector<16x128xf32>
    %9 = arith.mulf %8, %2 : vector<16x128xf32>
    %10 = arith.select %7, %2, %9 : vector<16x128xi1>, vector<16x128xf32>
    %cst_6 = arith.constant 0.000000e+00 : f32
    %11 = vector.broadcast %cst_6 : f32 to vector<16x128xf32>
    %12 = arith.cmpf ogt, %5, %11 : vector<16x128xf32>
    %cst_7 = arith.constant 1.000000e-01 : f32
    %13 = vector.broadcast %cst_7 : f32 to vector<16x128xf32>
    %14 = arith.mulf %13, %5 : vector<16x128xf32>
    %15 = arith.select %12, %5, %14 : vector<16x128xi1>, vector<16x128xf32>
    %16 = arith.truncf %10 : vector<16x128xf32> to vector<16x128xbf16>
    %c0_8 = arith.constant 0 : index
    %c0_9 = arith.constant 0 : index
    %17 = vector.load %arg6[%c0_8, %c0_9] : memref<16x256xbf16, #tpu.memory_space<vmem>>, vector<16x128xbf16>
    tpu.vector_store %arg6[%c0_8, %c0_9], %16 {strides = array<i32>} : memref<16x256xbf16, #tpu.memory_space<vmem>>, vector<16x128xbf16>,
    %18 = arith.truncf %15 : vector<16x128xf32> to vector<16x128xbf16>
    %c0_10 = arith.constant 0 : index
    %c128 = arith.constant 128 : index
    %19 = vector.load %arg6[%c0_10, %c128] : memref<16x256xbf16, #tpu.memory_space<vmem>>, vector<16x128xbf16>
    tpu.vector_store %arg6[%c0_10, %c128], %18 {strides = array<i32>} : memref<16x256xbf16, #tpu.memory_space<vmem>>, vector<16x128xbf16>,
    %c0_11 = arith.constant 0 : index
    %c0_12 = arith.constant 0 : index
    %20 = vector.load %arg6[%c0_11, %c0_12] : memref<16x256xbf16, #tpu.memory_space<vmem>>, vector<16x128xbf16>
    %c0_13 = arith.constant 0 : index
    %c1 = arith.constant 1 : index
    %21 = vector.load %arg6[%c0_13, %c1] : memref<16x256xbf16, #tpu.memory_space<vmem>>, vector<16x128xbf16>
    %c0_14 = arith.constant 0 : index
    %c2 = arith.constant 2 : index
    %22 = vector.load %arg6[%c0_14, %c2] : memref<16x256xbf16, #tpu.memory_space<vmem>>, vector<16x128xbf16>
    %cst_15 = arith.constant 1.000000e+00 : bf16
    %23 = vector.broadcast %cst_15 : bf16 to vector<1x128xbf16>
    %24 = tpu.concatenate %20, %21, %22, %23 in 0 : vector<16x128xbf16>, vector<16x128xbf16>, vector<16x128xbf16>, vector<1x128xbf16> -> vector<49x128xbf16>
    %c0_16 = arith.constant 0 : index
    %c0_17 = arith.constant 0 : index
    %25 = vector.load %arg4[%c0_16, %c0_17] : memref<16x49xbf16, #tpu.memory_space<vmem>>, vector<16x49xbf16>
    %cst_18 = arith.constant dense<0.000000e+00> : vector<16x128xf32>
    %26 = tpu.matmul %25, %24, %cst_18 {dimension_numbers = #tpu.dot_dimension_numbers<[1], [0], [0], [1], [0, 0, 1, 1], [], []>} : vector<16x49xbf16>, vector<49x128xbf16>, vector<16x128xf32> -> vector<16x128xf32>
    %27 = arith.truncf %26 : vector<16x128xf32> to vector<16x128xbf16>
    %c0_19 = arith.constant 0 : index
    %c0_20 = arith.constant 0 : index
    %c0_21 = arith.constant 0 : index
    %28 = vector.load %arg5[%c0_19, %c0_20, %c0_21] : memref<1x16x128xbf16, #tpu.memory_space<vmem>>, vector<1x16x128xbf16>
    %29 = vector.shape_cast %28 : vector<1x16x128xbf16> to vector<16x128xbf16>
    %30 = vector.shape_cast %27 : vector<16x128xbf16> to vector<1x16x128xbf16>
    tpu.vector_store %arg5[%c0_19, %c0_20, %c0_21], %30 {strides = array<i32>} : memref<1x16x128xbf16, #tpu.memory_space<vmem>>, vector<1x16x128xbf16>,
    return
  }
  func.func @transform_0(%arg0: i32, %arg1: i32) -> (i32, i32, i32) {
    %c0_i32 = arith.constant 0 : i32
    %c0_i32_0 = arith.constant 0 : i32
    return %arg0, %c0_i32, %arg1 : i32, i32, i32
  }
  func.func @transform_1(%arg0: i32, %arg1: i32) -> (i32, i32, i32) {
    %c1_i32 = arith.constant 1 : i32
    %0 = arith.addi %arg1, %c1_i32 : i32
    %c1_i32_0 = arith.constant 1 : i32
    %1 = arith.muli %0, %c1_i32_0 : i32
    %c0_i32 = arith.constant 0 : i32
    %c0_i32_1 = arith.constant 0 : i32
    return %arg0, %c0_i32, %1 : i32, i32, i32
  }
  func.func @transform_2(%arg0: i32, %arg1: i32) -> (i32, i32) {
    %c0_i32 = arith.constant 0 : i32
    %c0_i32_0 = arith.constant 0 : i32
    %c0_i32_1 = arith.constant 0 : i32
    return %c0_i32, %c0_i32_0 : i32, i32
  }
  func.func @transform_3(%arg0: i32, %arg1: i32) -> (i32, i32, i32) {
    %c0_i32 = arith.constant 0 : i32
    %c0_i32_0 = arith.constant 0 : i32
    return %arg0, %c0_i32, %arg1 : i32, i32, i32
  }
}

module attributes {stable_mosaic.version = 11 : i64} {
  func.func @_conv1d_kernel(%arg0: i32, %arg1: i32, %arg2: memref<1x16x128xbf16, #tpu.memory_space<vmem>>, %arg3: memref<1x16x128xbf16, #tpu.memory_space<vmem>>, %arg4: memref<16x81xbf16, #tpu.memory_space<vmem>>, %arg5: memref<1x16x128xbf16, #tpu.memory_space<vmem>>, %arg6: memref<16x256xbf16, #tpu.memory_space<vmem>>) attributes {dimension_semantics = [#tpu.dimension_semantics<parallel>, #tpu.dimension_semantics<parallel>], iteration_bounds = array<i64: 2, 1>, scalar_prefetch = 0 : i64, scratch_operands = 1 : i64, tpu.core_type = #tpu.core_type<tc>, window_params = [{transform_indices = @transform_0, window_bounds = array<i64: 1, 16, 128>}, {transform_indices = @transform_1, window_bounds = array<i64: 1, 16, 128>}, {pipeline_mode = #tpu.pipeline_mode<synchronous>, transform_indices = @transform_2, window_bounds = array<i64: 16, 81>}, {transform_indices = @transform_3, window_bounds = array<i64: 1, 16, 128>}]} {
    %c0 = arith.constant 0 : index
    %c0_0 = arith.constant 0 : index
    %c0_1 = arith.constant 0 : index
    %0 = vector.load %arg2[%c0, %c0_0, %c0_1] : memref<1x16x128xbf16, #tpu.memory_space<vmem>>, vector<1x16x128xbf16>
    %1 = vector.shape_cast %0 : vector<1x16x128xbf16> to vector<16x128xbf16>
    %2 = arith.extf %1 : vector<16x128xbf16> to vector<16x128xf32>
    %c0_2 = arith.constant 0 : index
    %c0_3 = arith.constant 0 : index
    %c0_4 = arith.constant 0 : index
    %3 = vector.load %arg3[%c0_2, %c0_3, %c0_4] : memref<1x16x128xbf16, #tpu.memory_space<vmem>>, vector<1x16x128xbf16>
    %4 = vector.shape_cast %3 : vector<1x16x128xbf16> to vector<16x128xbf16>
    %5 = arith.extf %4 : vector<16x128xbf16> to vector<16x128xf32>
    %cst = arith.constant 0.000000e+00 : f32
    %6 = vector.broadcast %cst : f32 to vector<16x128xf32>
    %7 = arith.cmpf ogt, %2, %6 : vector<16x128xf32>
    %cst_5 = arith.constant 1.000000e-01 : f32
    %8 = vector.broadcast %cst_5 : f32 to vector<16x128xf32>
    %9 = arith.mulf %8, %2 : vector<16x128xf32>
    %10 = arith.select %7, %2, %9 : vector<16x128xi1>, vector<16x128xf32>
    %cst_6 = arith.constant 0.000000e+00 : f32
    %11 = vector.broadcast %cst_6 : f32 to vector<16x128xf32>
    %12 = arith.cmpf ogt, %5, %11 : vector<16x128xf32>
    %cst_7 = arith.constant 1.000000e-01 : f32
    %13 = vector.broadcast %cst_7 : f32 to vector<16x128xf32>
    %14 = arith.mulf %13, %5 : vector<16x128xf32>
    %15 = arith.select %12, %5, %14 : vector<16x128xi1>, vector<16x128xf32>
    %16 = arith.truncf %10 : vector<16x128xf32> to vector<16x128xbf16>
    %c0_8 = arith.constant 0 : index
    %c0_9 = arith.constant 0 : index
    %17 = vector.load %arg6[%c0_8, %c0_9] : memref<16x256xbf16, #tpu.memory_space<vmem>>, vector<16x128xbf16>
    tpu.vector_store %arg6[%c0_8, %c0_9], %16 {strides = array<i32>} : memref<16x256xbf16, #tpu.memory_space<vmem>>, vector<16x128xbf16>,
    %18 = arith.truncf %15 : vector<16x128xf32> to vector<16x128xbf16>
    %c0_10 = arith.constant 0 : index
    %c128 = arith.constant 128 : index
    %19 = vector.load %arg6[%c0_10, %c128] : memref<16x256xbf16, #tpu.memory_space<vmem>>, vector<16x128xbf16>
    tpu.vector_store %arg6[%c0_10, %c128], %18 {strides = array<i32>} : memref<16x256xbf16, #tpu.memory_space<vmem>>, vector<16x128xbf16>,
    %c0_11 = arith.constant 0 : index
    %c0_12 = arith.constant 0 : index
    %20 = vector.load %arg6[%c0_11, %c0_12] : memref<16x256xbf16, #tpu.memory_space<vmem>>, vector<16x128xbf16>
    %c0_13 = arith.constant 0 : index
    %c3 = arith.constant 3 : index
    %21 = vector.load %arg6[%c0_13, %c3] : memref<16x256xbf16, #tpu.memory_space<vmem>>, vector<16x128xbf16>
    %c0_14 = arith.constant 0 : index
    %c6 = arith.constant 6 : index
    %22 = vector.load %arg6[%c0_14, %c6] : memref<16x256xbf16, #tpu.memory_space<vmem>>, vector<16x128xbf16>
    %c0_15 = arith.constant 0 : index
    %c9 = arith.constant 9 : index
    %23 = vector.load %arg6[%c0_15, %c9] : memref<16x256xbf16, #tpu.memory_space<vmem>>, vector<16x128xbf16>
    %c0_16 = arith.constant 0 : index
    %c12 = arith.constant 12 : index
    %24 = vector.load %arg6[%c0_16, %c12] : memref<16x256xbf16, #tpu.memory_space<vmem>>, vector<16x128xbf16>
    %cst_17 = arith.constant 1.000000e+00 : bf16
    %25 = vector.broadcast %cst_17 : bf16 to vector<1x128xbf16>
    %26 = tpu.concatenate %20, %21, %22, %23, %24, %25 in 0 : vector<16x128xbf16>, vector<16x128xbf16>, vector<16x128xbf16>, vector<16x128xbf16>, vector<16x128xbf16>, vector<1x128xbf16> -> vector<81x128xbf16>
    %c0_18 = arith.constant 0 : index
    %c0_19 = arith.constant 0 : index
    %27 = vector.load %arg4[%c0_18, %c0_19] : memref<16x81xbf16, #tpu.memory_space<vmem>>, vector<16x81xbf16>
    %cst_20 = arith.constant dense<0.000000e+00> : vector<16x128xf32>
    %28 = tpu.matmul %27, %26, %cst_20 {dimension_numbers = #tpu.dot_dimension_numbers<[1], [0], [0], [1], [0, 0, 1, 1], [], []>} : vector<16x81xbf16>, vector<81x128xbf16>, vector<16x128xf32> -> vector<16x128xf32>
    %29 = arith.truncf %28 : vector<16x128xf32> to vector<16x128xbf16>
    %c0_21 = arith.constant 0 : index
    %c0_22 = arith.constant 0 : index
    %c0_23 = arith.constant 0 : index
    %30 = vector.load %arg5[%c0_21, %c0_22, %c0_23] : memref<1x16x128xbf16, #tpu.memory_space<vmem>>, vector<1x16x128xbf16>
    %31 = vector.shape_cast %30 : vector<1x16x128xbf16> to vector<16x128xbf16>
    %32 = vector.shape_cast %29 : vector<16x128xbf16> to vector<1x16x128xbf16>
    tpu.vector_store %arg5[%c0_21, %c0_22, %c0_23], %32 {strides = array<i32>} : memref<1x16x128xbf16, #tpu.memory_space<vmem>>, vector<1x16x128xbf16>,
    return
  }
  func.func @transform_0(%arg0: i32, %arg1: i32) -> (i32, i32, i32) {
    %c0_i32 = arith.constant 0 : i32
    %c0_i32_0 = arith.constant 0 : i32
    return %arg0, %c0_i32, %arg1 : i32, i32, i32
  }
  func.func @transform_1(%arg0: i32, %arg1: i32) -> (i32, i32, i32) {
    %c1_i32 = arith.constant 1 : i32
    %0 = arith.addi %arg1, %c1_i32 : i32
    %c1_i32_0 = arith.constant 1 : i32
    %1 = arith.muli %0, %c1_i32_0 : i32
    %c0_i32 = arith.constant 0 : i32
    %c0_i32_1 = arith.constant 0 : i32
    return %arg0, %c0_i32, %1 : i32, i32, i32
  }
  func.func @transform_2(%arg0: i32, %arg1: i32) -> (i32, i32) {
    %c0_i32 = arith.constant 0 : i32
    %c0_i32_0 = arith.constant 0 : i32
    %c0_i32_1 = arith.constant 0 : i32
    return %c0_i32, %c0_i32_0 : i32, i32
  }
  func.func @transform_3(%arg0: i32, %arg1: i32) -> (i32, i32, i32) {
    %c0_i32 = arith.constant 0 : i32
    %c0_i32_0 = arith.constant 0 : i32
    return %arg0, %c0_i32, %arg1 : i32, i32, i32
  }
}

module attributes {stable_mosaic.version = 11 : i64} {
  func.func @_conv1d_kernel(%arg0: i32, %arg1: i32, %arg2: memref<1x16x128xbf16, #tpu.memory_space<vmem>>, %arg3: memref<1x16x128xbf16, #tpu.memory_space<vmem>>, %arg4: memref<16x49xbf16, #tpu.memory_space<vmem>>, %arg5: memref<1x16x128xbf16, #tpu.memory_space<vmem>>, %arg6: memref<16x256xbf16, #tpu.memory_space<vmem>>) attributes {dimension_semantics = [#tpu.dimension_semantics<parallel>, #tpu.dimension_semantics<parallel>], iteration_bounds = array<i64: 2, 1>, scalar_prefetch = 0 : i64, scratch_operands = 1 : i64, tpu.core_type = #tpu.core_type<tc>, window_params = [{transform_indices = @transform_0, window_bounds = array<i64: 1, 16, 128>}, {transform_indices = @transform_1, window_bounds = array<i64: 1, 16, 128>}, {pipeline_mode = #tpu.pipeline_mode<synchronous>, transform_indices = @transform_2, window_bounds = array<i64: 16, 49>}, {transform_indices = @transform_3, window_bounds = array<i64: 1, 16, 128>}]} {
    %c0 = arith.constant 0 : index
    %c0_0 = arith.constant 0 : index
    %c0_1 = arith.constant 0 : index
    %0 = vector.load %arg2[%c0, %c0_0, %c0_1] : memref<1x16x128xbf16, #tpu.memory_space<vmem>>, vector<1x16x128xbf16>
    %1 = vector.shape_cast %0 : vector<1x16x128xbf16> to vector<16x128xbf16>
    %2 = arith.extf %1 : vector<16x128xbf16> to vector<16x128xf32>
    %c0_2 = arith.constant 0 : index
    %c0_3 = arith.constant 0 : index
    %c0_4 = arith.constant 0 : index
    %3 = vector.load %arg3[%c0_2, %c0_3, %c0_4] : memref<1x16x128xbf16, #tpu.memory_space<vmem>>, vector<1x16x128xbf16>
    %4 = vector.shape_cast %3 : vector<1x16x128xbf16> to vector<16x128xbf16>
    %5 = arith.extf %4 : vector<16x128xbf16> to vector<16x128xf32>
    %cst = arith.constant 0.000000e+00 : f32
    %6 = vector.broadcast %cst : f32 to vector<16x128xf32>
    %7 = arith.cmpf ogt, %2, %6 : vector<16x128xf32>
    %cst_5 = arith.constant 1.000000e-01 : f32
    %8 = vector.broadcast %cst_5 : f32 to vector<16x128xf32>
    %9 = arith.mulf %8, %2 : vector<16x128xf32>
    %10 = arith.select %7, %2, %9 : vector<16x128xi1>, vector<16x128xf32>
    %cst_6 = arith.constant 0.000000e+00 : f32
    %11 = vector.broadcast %cst_6 : f32 to vector<16x128xf32>
    %12 = arith.cmpf ogt, %5, %11 : vector<16x128xf32>
    %cst_7 = arith.constant 1.000000e-01 : f32
    %13 = vector.broadcast %cst_7 : f32 to vector<16x128xf32>
    %14 = arith.mulf %13, %5 : vector<16x128xf32>
    %15 = arith.select %12, %5, %14 : vector<16x128xi1>, vector<16x128xf32>
    %16 = arith.truncf %10 : vector<16x128xf32> to vector<16x128xbf16>
    %c0_8 = arith.constant 0 : index
    %c0_9 = arith.constant 0 : index
    %17 = vector.load %arg6[%c0_8, %c0_9] : memref<16x256xbf16, #tpu.memory_space<vmem>>, vector<16x128xbf16>
    tpu.vector_store %arg6[%c0_8, %c0_9], %16 {strides = array<i32>} : memref<16x256xbf16, #tpu.memory_space<vmem>>, vector<16x128xbf16>,
    %18 = arith.truncf %15 : vector<16x128xf32> to vector<16x128xbf16>
    %c0_10 = arith.constant 0 : index
    %c128 = arith.constant 128 : index
    %19 = vector.load %arg6[%c0_10, %c128] : memref<16x256xbf16, #tpu.memory_space<vmem>>, vector<16x128xbf16>
    tpu.vector_store %arg6[%c0_10, %c128], %18 {strides = array<i32>} : memref<16x256xbf16, #tpu.memory_space<vmem>>, vector<16x128xbf16>,
    %c0_11 = arith.constant 0 : index
    %c0_12 = arith.constant 0 : index
    %20 = vector.load %arg6[%c0_11, %c0_12] : memref<16x256xbf16, #tpu.memory_space<vmem>>, vector<16x128xbf16>
    %c0_13 = arith.constant 0 : index
    %c3 = arith.constant 3 : index
    %21 = vector.load %arg6[%c0_13, %c3] : memref<16x256xbf16, #tpu.memory_space<vmem>>, vector<16x128xbf16>
    %c0_14 = arith.constant 0 : index
    %c6 = arith.constant 6 : index
    %22 = vector.load %arg6[%c0_14, %c6] : memref<16x256xbf16, #tpu.memory_space<vmem>>, vector<16x128xbf16>
    %cst_15 = arith.constant 1.000000e+00 : bf16
    %23 = vector.broadcast %cst_15 : bf16 to vector<1x128xbf16>
    %24 = tpu.concatenate %20, %21, %22, %23 in 0 : vector<16x128xbf16>, vector<16x128xbf16>, vector<16x128xbf16>, vector<1x128xbf16> -> vector<49x128xbf16>
    %c0_16 = arith.constant 0 : index
    %c0_17 = arith.constant 0 : index
    %25 = vector.load %arg4[%c0_16, %c0_17] : memref<16x49xbf16, #tpu.memory_space<vmem>>, vector<16x49xbf16>
    %cst_18 = arith.constant dense<0.000000e+00> : vector<16x128xf32>
    %26 = tpu.matmul %25, %24, %cst_18 {dimension_numbers = #tpu.dot_dimension_numbers<[1], [0], [0], [1], [0, 0, 1, 1], [], []>} : vector<16x49xbf16>, vector<49x128xbf16>, vector<16x128xf32> -> vector<16x128xf32>
    %27 = arith.truncf %26 : vector<16x128xf32> to vector<16x128xbf16>
    %c0_19 = arith.constant 0 : index
    %c0_20 = arith.constant 0 : index
    %c0_21 = arith.constant 0 : index
    %28 = vector.load %arg5[%c0_19, %c0_20, %c0_21] : memref<1x16x128xbf16, #tpu.memory_space<vmem>>, vector<1x16x128xbf16>
    %29 = vector.shape_cast %28 : vector<1x16x128xbf16> to vector<16x128xbf16>
    %30 = vector.shape_cast %27 : vector<16x128xbf16> to vector<1x16x128xbf16>
    tpu.vector_store %arg5[%c0_19, %c0_20, %c0_21], %30 {strides = array<i32>} : memref<1x16x128xbf16, #tpu.memory_space<vmem>>, vector<1x16x128xbf16>,
    return
  }
  func.func @transform_0(%arg0: i32, %arg1: i32) -> (i32, i32, i32) {
    %c0_i32 = arith.constant 0 : i32
    %c0_i32_0 = arith.constant 0 : i32
    return %arg0, %c0_i32, %arg1 : i32, i32, i32
  }
  func.func @transform_1(%arg0: i32, %arg1: i32) -> (i32, i32, i32) {
    %c1_i32 = arith.constant 1 : i32
    %0 = arith.addi %arg1, %c1_i32 : i32
    %c1_i32_0 = arith.constant 1 : i32
    %1 = arith.muli %0, %c1_i32_0 : i32
    %c0_i32 = arith.constant 0 : i32
    %c0_i32_1 = arith.constant 0 : i32
    return %arg0, %c0_i32, %1 : i32, i32, i32
  }
  func.func @transform_2(%arg0: i32, %arg1: i32) -> (i32, i32) {
    %c0_i32 = arith.constant 0 : i32
    %c0_i32_0 = arith.constant 0 : i32
    %c0_i32_1 = arith.constant 0 : i32
    return %c0_i32, %c0_i32_0 : i32, i32
  }
  func.func @transform_3(%arg0: i32, %arg1: i32) -> (i32, i32, i32) {
    %c0_i32 = arith.constant 0 : i32
    %c0_i32_0 = arith.constant 0 : i32
    return %arg0, %c0_i32, %arg1 : i32, i32, i32
  }
}

module attributes {stable_mosaic.version = 11 : i64} {
  func.func @_conv1d_kernel(%arg0: i32, %arg1: i32, %arg2: memref<1x16x128xbf16, #tpu.memory_space<vmem>>, %arg3: memref<1x16x128xbf16, #tpu.memory_space<vmem>>, %arg4: memref<16x81xbf16, #tpu.memory_space<vmem>>, %arg5: memref<1x16x128xbf16, #tpu.memory_space<vmem>>, %arg6: memref<16x256xbf16, #tpu.memory_space<vmem>>) attributes {dimension_semantics = [#tpu.dimension_semantics<parallel>, #tpu.dimension_semantics<parallel>], iteration_bounds = array<i64: 2, 1>, scalar_prefetch = 0 : i64, scratch_operands = 1 : i64, tpu.core_type = #tpu.core_type<tc>, window_params = [{transform_indices = @transform_0, window_bounds = array<i64: 1, 16, 128>}, {transform_indices = @transform_1, window_bounds = array<i64: 1, 16, 128>}, {pipeline_mode = #tpu.pipeline_mode<synchronous>, transform_indices = @transform_2, window_bounds = array<i64: 16, 81>}, {transform_indices = @transform_3, window_bounds = array<i64: 1, 16, 128>}]} {
    %c0 = arith.constant 0 : index
    %c0_0 = arith.constant 0 : index
    %c0_1 = arith.constant 0 : index
    %0 = vector.load %arg2[%c0, %c0_0, %c0_1] : memref<1x16x128xbf16, #tpu.memory_space<vmem>>, vector<1x16x128xbf16>
    %1 = vector.shape_cast %0 : vector<1x16x128xbf16> to vector<16x128xbf16>
    %2 = arith.extf %1 : vector<16x128xbf16> to vector<16x128xf32>
    %c0_2 = arith.constant 0 : index
    %c0_3 = arith.constant 0 : index
    %c0_4 = arith.constant 0 : index
    %3 = vector.load %arg3[%c0_2, %c0_3, %c0_4] : memref<1x16x128xbf16, #tpu.memory_space<vmem>>, vector<1x16x128xbf16>
    %4 = vector.shape_cast %3 : vector<1x16x128xbf16> to vector<16x128xbf16>
    %5 = arith.extf %4 : vector<16x128xbf16> to vector<16x128xf32>
    %cst = arith.constant 0.000000e+00 : f32
    %6 = vector.broadcast %cst : f32 to vector<16x128xf32>
    %7 = arith.cmpf ogt, %2, %6 : vector<16x128xf32>
    %cst_5 = arith.constant 1.000000e-01 : f32
    %8 = vector.broadcast %cst_5 : f32 to vector<16x128xf32>
    %9 = arith.mulf %8, %2 : vector<16x128xf32>
    %10 = arith.select %7, %2, %9 : vector<16x128xi1>, vector<16x128xf32>
    %cst_6 = arith.constant 0.000000e+00 : f32
    %11 = vector.broadcast %cst_6 : f32 to vector<16x128xf32>
    %12 = arith.cmpf ogt, %5, %11 : vector<16x128xf32>
    %cst_7 = arith.constant 1.000000e-01 : f32
    %13 = vector.broadcast %cst_7 : f32 to vector<16x128xf32>
    %14 = arith.mulf %13, %5 : vector<16x128xf32>
    %15 = arith.select %12, %5, %14 : vector<16x128xi1>, vector<16x128xf32>
    %16 = arith.truncf %10 : vector<16x128xf32> to vector<16x128xbf16>
    %c0_8 = arith.constant 0 : index
    %c0_9 = arith.constant 0 : index
    %17 = vector.load %arg6[%c0_8, %c0_9] : memref<16x256xbf16, #tpu.memory_space<vmem>>, vector<16x128xbf16>
    tpu.vector_store %arg6[%c0_8, %c0_9], %16 {strides = array<i32>} : memref<16x256xbf16, #tpu.memory_space<vmem>>, vector<16x128xbf16>,
    %18 = arith.truncf %15 : vector<16x128xf32> to vector<16x128xbf16>
    %c0_10 = arith.constant 0 : index
    %c128 = arith.constant 128 : index
    %19 = vector.load %arg6[%c0_10, %c128] : memref<16x256xbf16, #tpu.memory_space<vmem>>, vector<16x128xbf16>
    tpu.vector_store %arg6[%c0_10, %c128], %18 {strides = array<i32>} : memref<16x256xbf16, #tpu.memory_space<vmem>>, vector<16x128xbf16>,
    %c0_11 = arith.constant 0 : index
    %c0_12 = arith.constant 0 : index
    %20 = vector.load %arg6[%c0_11, %c0_12] : memref<16x256xbf16, #tpu.memory_space<vmem>>, vector<16x128xbf16>
    %c0_13 = arith.constant 0 : index
    %c5 = arith.constant 5 : index
    %21 = vector.load %arg6[%c0_13, %c5] : memref<16x256xbf16, #tpu.memory_space<vmem>>, vector<16x128xbf16>
    %c0_14 = arith.constant 0 : index
    %c10 = arith.constant 10 : index
    %22 = vector.load %arg6[%c0_14, %c10] : memref<16x256xbf16, #tpu.memory_space<vmem>>, vector<16x128xbf16>
    %c0_15 = arith.constant 0 : index
    %c15 = arith.constant 15 : index
    %23 = vector.load %arg6[%c0_15, %c15] : memref<16x256xbf16, #tpu.memory_space<vmem>>, vector<16x128xbf16>
    %c0_16 = arith.constant 0 : index
    %c20 = arith.constant 20 : index
    %24 = vector.load %arg6[%c0_16, %c20] : memref<16x256xbf16, #tpu.memory_space<vmem>>, vector<16x128xbf16>
    %cst_17 = arith.constant 1.000000e+00 : bf16
    %25 = vector.broadcast %cst_17 : bf16 to vector<1x128xbf16>
    %26 = tpu.concatenate %20, %21, %22, %23, %24, %25 in 0 : vector<16x128xbf16>, vector<16x128xbf16>, vector<16x128xbf16>, vector<16x128xbf16>, vector<16x128xbf16>, vector<1x128xbf16> -> vector<81x128xbf16>
    %c0_18 = arith.constant 0 : index
    %c0_19 = arith.constant 0 : index
    %27 = vector.load %arg4[%c0_18, %c0_19] : memref<16x81xbf16, #tpu.memory_space<vmem>>, vector<16x81xbf16>
    %cst_20 = arith.constant dense<0.000000e+00> : vector<16x128xf32>
    %28 = tpu.matmul %27, %26, %cst_20 {dimension_numbers = #tpu.dot_dimension_numbers<[1], [0], [0], [1], [0, 0, 1, 1], [], []>} : vector<16x81xbf16>, vector<81x128xbf16>, vector<16x128xf32> -> vector<16x128xf32>
    %29 = arith.truncf %28 : vector<16x128xf32> to vector<16x128xbf16>
    %c0_21 = arith.constant 0 : index
    %c0_22 = arith.constant 0 : index
    %c0_23 = arith.constant 0 : index
    %30 = vector.load %arg5[%c0_21, %c0_22, %c0_23] : memref<1x16x128xbf16, #tpu.memory_space<vmem>>, vector<1x16x128xbf16>
    %31 = vector.shape_cast %30 : vector<1x16x128xbf16> to vector<16x128xbf16>
    %32 = vector.shape_cast %29 : vector<16x128xbf16> to vector<1x16x128xbf16>
    tpu.vector_store %arg5[%c0_21, %c0_22, %c0_23], %32 {strides = array<i32>} : memref<1x16x128xbf16, #tpu.memory_space<vmem>>, vector<1x16x128xbf16>,
    return
  }
  func.func @transform_0(%arg0: i32, %arg1: i32) -> (i32, i32, i32) {
    %c0_i32 = arith.constant 0 : i32
    %c0_i32_0 = arith.constant 0 : i32
    return %arg0, %c0_i32, %arg1 : i32, i32, i32
  }
  func.func @transform_1(%arg0: i32, %arg1: i32) -> (i32, i32, i32) {
    %c1_i32 = arith.constant 1 : i32
    %0 = arith.addi %arg1, %c1_i32 : i32
    %c1_i32_0 = arith.constant 1 : i32
    %1 = arith.muli %0, %c1_i32_0 : i32
    %c0_i32 = arith.constant 0 : i32
    %c0_i32_1 = arith.constant 0 : i32
    return %arg0, %c0_i32, %1 : i32, i32, i32
  }
  func.func @transform_2(%arg0: i32, %arg1: i32) -> (i32, i32) {
    %c0_i32 = arith.constant 0 : i32
    %c0_i32_0 = arith.constant 0 : i32
    %c0_i32_1 = arith.constant 0 : i32
    return %c0_i32, %c0_i32_0 : i32, i32
  }
  func.func @transform_3(%arg0: i32, %arg1: i32) -> (i32, i32, i32) {
    %c0_i32 = arith.constant 0 : i32
    %c0_i32_0 = arith.constant 0 : i32
    return %arg0, %c0_i32, %arg1 : i32, i32, i32
  }
}

module attributes {stable_mosaic.version = 11 : i64} {
  func.func @_conv1d_kernel(%arg0: i32, %arg1: i32, %arg2: memref<1x16x128xbf16, #tpu.memory_space<vmem>>, %arg3: memref<1x16x128xbf16, #tpu.memory_space<vmem>>, %arg4: memref<16x49xbf16, #tpu.memory_space<vmem>>, %arg5: memref<1x16x128xbf16, #tpu.memory_space<vmem>>, %arg6: memref<16x256xbf16, #tpu.memory_space<vmem>>) attributes {dimension_semantics = [#tpu.dimension_semantics<parallel>, #tpu.dimension_semantics<parallel>], iteration_bounds = array<i64: 2, 1>, scalar_prefetch = 0 : i64, scratch_operands = 1 : i64, tpu.core_type = #tpu.core_type<tc>, window_params = [{transform_indices = @transform_0, window_bounds = array<i64: 1, 16, 128>}, {transform_indices = @transform_1, window_bounds = array<i64: 1, 16, 128>}, {pipeline_mode = #tpu.pipeline_mode<synchronous>, transform_indices = @transform_2, window_bounds = array<i64: 16, 49>}, {transform_indices = @transform_3, window_bounds = array<i64: 1, 16, 128>}]} {
    %c0 = arith.constant 0 : index
    %c0_0 = arith.constant 0 : index
    %c0_1 = arith.constant 0 : index
    %0 = vector.load %arg2[%c0, %c0_0, %c0_1] : memref<1x16x128xbf16, #tpu.memory_space<vmem>>, vector<1x16x128xbf16>
    %1 = vector.shape_cast %0 : vector<1x16x128xbf16> to vector<16x128xbf16>
    %2 = arith.extf %1 : vector<16x128xbf16> to vector<16x128xf32>
    %c0_2 = arith.constant 0 : index
    %c0_3 = arith.constant 0 : index
    %c0_4 = arith.constant 0 : index
    %3 = vector.load %arg3[%c0_2, %c0_3, %c0_4] : memref<1x16x128xbf16, #tpu.memory_space<vmem>>, vector<1x16x128xbf16>
    %4 = vector.shape_cast %3 : vector<1x16x128xbf16> to vector<16x128xbf16>
    %5 = arith.extf %4 : vector<16x128xbf16> to vector<16x128xf32>
    %cst = arith.constant 0.000000e+00 : f32
    %6 = vector.broadcast %cst : f32 to vector<16x128xf32>
    %7 = arith.cmpf ogt, %2, %6 : vector<16x128xf32>
    %cst_5 = arith.constant 1.000000e-01 : f32
    %8 = vector.broadcast %cst_5 : f32 to vector<16x128xf32>
    %9 = arith.mulf %8, %2 : vector<16x128xf32>
    %10 = arith.select %7, %2, %9 : vector<16x128xi1>, vector<16x128xf32>
    %cst_6 = arith.constant 0.000000e+00 : f32
    %11 = vector.broadcast %cst_6 : f32 to vector<16x128xf32>
    %12 = arith.cmpf ogt, %5, %11 : vector<16x128xf32>
    %cst_7 = arith.constant 1.000000e-01 : f32
    %13 = vector.broadcast %cst_7 : f32 to vector<16x128xf32>
    %14 = arith.mulf %13, %5 : vector<16x128xf32>
    %15 = arith.select %12, %5, %14 : vector<16x128xi1>, vector<16x128xf32>
    %16 = arith.truncf %10 : vector<16x128xf32> to vector<16x128xbf16>
    %c0_8 = arith.constant 0 : index
    %c0_9 = arith.constant 0 : index
    %17 = vector.load %arg6[%c0_8, %c0_9] : memref<16x256xbf16, #tpu.memory_space<vmem>>, vector<16x128xbf16>
    tpu.vector_store %arg6[%c0_8, %c0_9], %16 {strides = array<i32>} : memref<16x256xbf16, #tpu.memory_space<vmem>>, vector<16x128xbf16>,
    %18 = arith.truncf %15 : vector<16x128xf32> to vector<16x128xbf16>
    %c0_10 = arith.constant 0 : index
    %c128 = arith.constant 128 : index
    %19 = vector.load %arg6[%c0_10, %c128] : memref<16x256xbf16, #tpu.memory_space<vmem>>, vector<16x128xbf16>
    tpu.vector_store %arg6[%c0_10, %c128], %18 {strides = array<i32>} : memref<16x256xbf16, #tpu.memory_space<vmem>>, vector<16x128xbf16>,
    %c0_11 = arith.constant 0 : index
    %c0_12 = arith.constant 0 : index
    %20 = vector.load %arg6[%c0_11, %c0_12] : memref<16x256xbf16, #tpu.memory_space<vmem>>, vector<16x128xbf16>
    %c0_13 = arith.constant 0 : index
    %c5 = arith.constant 5 : index
    %21 = vector.load %arg6[%c0_13, %c5] : memref<16x256xbf16, #tpu.memory_space<vmem>>, vector<16x128xbf16>
    %c0_14 = arith.constant 0 : index
    %c10 = arith.constant 10 : index
    %22 = vector.load %arg6[%c0_14, %c10] : memref<16x256xbf16, #tpu.memory_space<vmem>>, vector<16x128xbf16>
    %cst_15 = arith.constant 1.000000e+00 : bf16
    %23 = vector.broadcast %cst_15 : bf16 to vector<1x128xbf16>
    %24 = tpu.concatenate %20, %21, %22, %23 in 0 : vector<16x128xbf16>, vector<16x128xbf16>, vector<16x128xbf16>, vector<1x128xbf16> -> vector<49x128xbf16>
    %c0_16 = arith.constant 0 : index
    %c0_17 = arith.constant 0 : index
    %25 = vector.load %arg4[%c0_16, %c0_17] : memref<16x49xbf16, #tpu.memory_space<vmem>>, vector<16x49xbf16>
    %cst_18 = arith.constant dense<0.000000e+00> : vector<16x128xf32>
    %26 = tpu.matmul %25, %24, %cst_18 {dimension_numbers = #tpu.dot_dimension_numbers<[1], [0], [0], [1], [0, 0, 1, 1], [], []>} : vector<16x49xbf16>, vector<49x128xbf16>, vector<16x128xf32> -> vector<16x128xf32>
    %27 = arith.truncf %26 : vector<16x128xf32> to vector<16x128xbf16>
    %c0_19 = arith.constant 0 : index
    %c0_20 = arith.constant 0 : index
    %c0_21 = arith.constant 0 : index
    %28 = vector.load %arg5[%c0_19, %c0_20, %c0_21] : memref<1x16x128xbf16, #tpu.memory_space<vmem>>, vector<1x16x128xbf16>
    %29 = vector.shape_cast %28 : vector<1x16x128xbf16> to vector<16x128xbf16>
    %30 = vector.shape_cast %27 : vector<16x128xbf16> to vector<1x16x128xbf16>
    tpu.vector_store %arg5[%c0_19, %c0_20, %c0_21], %30 {strides = array<i32>} : memref<1x16x128xbf16, #tpu.memory_space<vmem>>, vector<1x16x128xbf16>,
    return
  }
  func.func @transform_0(%arg0: i32, %arg1: i32) -> (i32, i32, i32) {
    %c0_i32 = arith.constant 0 : i32
    %c0_i32_0 = arith.constant 0 : i32
    return %arg0, %c0_i32, %arg1 : i32, i32, i32
  }
  func.func @transform_1(%arg0: i32, %arg1: i32) -> (i32, i32, i32) {
    %c1_i32 = arith.constant 1 : i32
    %0 = arith.addi %arg1, %c1_i32 : i32
    %c1_i32_0 = arith.constant 1 : i32
    %1 = arith.muli %0, %c1_i32_0 : i32
    %c0_i32 = arith.constant 0 : i32
    %c0_i32_1 = arith.constant 0 : i32
    return %arg0, %c0_i32, %1 : i32, i32, i32
  }
  func.func @transform_2(%arg0: i32, %arg1: i32) -> (i32, i32) {
    %c0_i32 = arith.constant 0 : i32
    %c0_i32_0 = arith.constant 0 : i32
    %c0_i32_1 = arith.constant 0 : i32
    return %c0_i32, %c0_i32_0 : i32, i32
  }
  func.func @transform_3(%arg0: i32, %arg1: i32) -> (i32, i32, i32) {
    %c0_i32 = arith.constant 0 : i32
    %c0_i32_0 = arith.constant 0 : i32
    return %arg0, %c0_i32, %arg1 : i32, i32, i32
  }
}

module attributes {stable_mosaic.version = 11 : i64} {
  func.func @_conv1d_kernel(%arg0: i32, %arg1: i32, %arg2: memref<1x8x128xbf16, #tpu.memory_space<vmem>>, %arg3: memref<1x8x128xbf16, #tpu.memory_space<vmem>>, %arg4: memref<8x25xbf16, #tpu.memory_space<vmem>>, %arg5: memref<1x8x128xbf16, #tpu.memory_space<vmem>>, %arg6: memref<8x256xbf16, #tpu.memory_space<vmem>>) attributes {dimension_semantics = [#tpu.dimension_semantics<parallel>, #tpu.dimension_semantics<parallel>], iteration_bounds = array<i64: 2, 1>, scalar_prefetch = 0 : i64, scratch_operands = 1 : i64, tpu.core_type = #tpu.core_type<tc>, window_params = [{transform_indices = @transform_0, window_bounds = array<i64: 1, 8, 128>}, {transform_indices = @transform_1, window_bounds = array<i64: 1, 8, 128>}, {pipeline_mode = #tpu.pipeline_mode<synchronous>, transform_indices = @transform_2, window_bounds = array<i64: 8, 25>}, {transform_indices = @transform_3, window_bounds = array<i64: 1, 8, 128>}]} {
    %c0 = arith.constant 0 : index
    %c0_0 = arith.constant 0 : index
    %c0_1 = arith.constant 0 : index
    %0 = vector.load %arg2[%c0, %c0_0, %c0_1] : memref<1x8x128xbf16, #tpu.memory_space<vmem>>, vector<1x8x128xbf16>
    %1 = vector.shape_cast %0 : vector<1x8x128xbf16> to vector<8x128xbf16>
    %2 = arith.extf %1 : vector<8x128xbf16> to vector<8x128xf32>
    %c0_2 = arith.constant 0 : index
    %c0_3 = arith.constant 0 : index
    %c0_4 = arith.constant 0 : index
    %3 = vector.load %arg3[%c0_2, %c0_3, %c0_4] : memref<1x8x128xbf16, #tpu.memory_space<vmem>>, vector<1x8x128xbf16>
    %4 = vector.shape_cast %3 : vector<1x8x128xbf16> to vector<8x128xbf16>
    %5 = arith.extf %4 : vector<8x128xbf16> to vector<8x128xf32>
    %cst = arith.constant 0.000000e+00 : f32
    %6 = vector.broadcast %cst : f32 to vector<8x128xf32>
    %7 = arith.cmpf ogt, %2, %6 : vector<8x128xf32>
    %cst_5 = arith.constant 1.000000e-01 : f32
    %8 = vector.broadcast %cst_5 : f32 to vector<8x128xf32>
    %9 = arith.mulf %8, %2 : vector<8x128xf32>
    %10 = arith.select %7, %2, %9 : vector<8x128xi1>, vector<8x128xf32>
    %cst_6 = arith.constant 0.000000e+00 : f32
    %11 = vector.broadcast %cst_6 : f32 to vector<8x128xf32>
    %12 = arith.cmpf ogt, %5, %11 : vector<8x128xf32>
    %cst_7 = arith.constant 1.000000e-01 : f32
    %13 = vector.broadcast %cst_7 : f32 to vector<8x128xf32>
    %14 = arith.mulf %13, %5 : vector<8x128xf32>
    %15 = arith.select %12, %5, %14 : vector<8x128xi1>, vector<8x128xf32>
    %16 = arith.truncf %10 : vector<8x128xf32> to vector<8x128xbf16>
    %c0_8 = arith.constant 0 : index
    %c0_9 = arith.constant 0 : index
    %17 = vector.load %arg6[%c0_8, %c0_9] : memref<8x256xbf16, #tpu.memory_space<vmem>>, vector<8x128xbf16>
    tpu.vector_store %arg6[%c0_8, %c0_9], %16 {strides = array<i32>} : memref<8x256xbf16, #tpu.memory_space<vmem>>, vector<8x128xbf16>,
    %18 = arith.truncf %15 : vector<8x128xf32> to vector<8x128xbf16>
    %c0_10 = arith.constant 0 : index
    %c128 = arith.constant 128 : index
    %19 = vector.load %arg6[%c0_10, %c128] : memref<8x256xbf16, #tpu.memory_space<vmem>>, vector<8x128xbf16>
    tpu.vector_store %arg6[%c0_10, %c128], %18 {strides = array<i32>} : memref<8x256xbf16, #tpu.memory_space<vmem>>, vector<8x128xbf16>,
    %c0_11 = arith.constant 0 : index
    %c0_12 = arith.constant 0 : index
    %20 = vector.load %arg6[%c0_11, %c0_12] : memref<8x256xbf16, #tpu.memory_space<vmem>>, vector<8x128xbf16>
    %c0_13 = arith.constant 0 : index
    %c1 = arith.constant 1 : index
    %21 = vector.load %arg6[%c0_13, %c1] : memref<8x256xbf16, #tpu.memory_space<vmem>>, vector<8x128xbf16>
    %c0_14 = arith.constant 0 : index
    %c2 = arith.constant 2 : index
    %22 = vector.load %arg6[%c0_14, %c2] : memref<8x256xbf16, #tpu.memory_space<vmem>>, vector<8x128xbf16>
    %cst_15 = arith.constant 1.000000e+00 : bf16
    %23 = vector.broadcast %cst_15 : bf16 to vector<1x128xbf16>
    %24 = tpu.concatenate %20, %21, %22, %23 in 0 : vector<8x128xbf16>, vector<8x128xbf16>, vector<8x128xbf16>, vector<1x128xbf16> -> vector<25x128xbf16>
    %c0_16 = arith.constant 0 : index
    %c0_17 = arith.constant 0 : index
    %25 = vector.load %arg4[%c0_16, %c0_17] : memref<8x25xbf16, #tpu.memory_space<vmem>>, vector<8x25xbf16>
    %cst_18 = arith.constant dense<0.000000e+00> : vector<8x128xf32>
    %26 = tpu.matmul %25, %24, %cst_18 {dimension_numbers = #tpu.dot_dimension_numbers<[1], [0], [0], [1], [0, 0, 1, 1], [], []>} : vector<8x25xbf16>, vector<25x128xbf16>, vector<8x128xf32> -> vector<8x128xf32>
    %27 = arith.truncf %26 : vector<8x128xf32> to vector<8x128xbf16>
    %c0_19 = arith.constant 0 : index
    %c0_20 = arith.constant 0 : index
    %c0_21 = arith.constant 0 : index
    %28 = vector.load %arg5[%c0_19, %c0_20, %c0_21] : memref<1x8x128xbf16, #tpu.memory_space<vmem>>, vector<1x8x128xbf16>
    %29 = vector.shape_cast %28 : vector<1x8x128xbf16> to vector<8x128xbf16>
    %30 = vector.shape_cast %27 : vector<8x128xbf16> to vector<1x8x128xbf16>
    tpu.vector_store %arg5[%c0_19, %c0_20, %c0_21], %30 {strides = array<i32>} : memref<1x8x128xbf16, #tpu.memory_space<vmem>>, vector<1x8x128xbf16>,
    return
  }
  func.func @transform_0(%arg0: i32, %arg1: i32) -> (i32, i32, i32) {
    %c0_i32 = arith.constant 0 : i32
    %c0_i32_0 = arith.constant 0 : i32
    return %arg0, %c0_i32, %arg1 : i32, i32, i32
  }
  func.func @transform_1(%arg0: i32, %arg1: i32) -> (i32, i32, i32) {
    %c1_i32 = arith.constant 1 : i32
    %0 = arith.addi %arg1, %c1_i32 : i32
    %c1_i32_0 = arith.constant 1 : i32
    %1 = arith.muli %0, %c1_i32_0 : i32
    %c0_i32 = arith.constant 0 : i32
    %c0_i32_1 = arith.constant 0 : i32
    return %arg0, %c0_i32, %1 : i32, i32, i32
  }
  func.func @transform_2(%arg0: i32, %arg1: i32) -> (i32, i32) {
    %c0_i32 = arith.constant 0 : i32
    %c0_i32_0 = arith.constant 0 : i32
    %c0_i32_1 = arith.constant 0 : i32
    return %c0_i32, %c0_i32_0 : i32, i32
  }
  func.func @transform_3(%arg0: i32, %arg1: i32) -> (i32, i32, i32) {
    %c0_i32 = arith.constant 0 : i32
    %c0_i32_0 = arith.constant 0 : i32
    return %arg0, %c0_i32, %arg1 : i32, i32, i32
  }
}

module attributes {stable_mosaic.version = 11 : i64} {
  func.func @_conv1d_kernel(%arg0: i32, %arg1: i32, %arg2: memref<1x8x128xbf16, #tpu.memory_space<vmem>>, %arg3: memref<1x8x128xbf16, #tpu.memory_space<vmem>>, %arg4: memref<8x41xbf16, #tpu.memory_space<vmem>>, %arg5: memref<1x8x128xbf16, #tpu.memory_space<vmem>>, %arg6: memref<8x256xbf16, #tpu.memory_space<vmem>>) attributes {dimension_semantics = [#tpu.dimension_semantics<parallel>, #tpu.dimension_semantics<parallel>], iteration_bounds = array<i64: 2, 1>, scalar_prefetch = 0 : i64, scratch_operands = 1 : i64, tpu.core_type = #tpu.core_type<tc>, window_params = [{transform_indices = @transform_0, window_bounds = array<i64: 1, 8, 128>}, {transform_indices = @transform_1, window_bounds = array<i64: 1, 8, 128>}, {pipeline_mode = #tpu.pipeline_mode<synchronous>, transform_indices = @transform_2, window_bounds = array<i64: 8, 41>}, {transform_indices = @transform_3, window_bounds = array<i64: 1, 8, 128>}]} {
    %c0 = arith.constant 0 : index
    %c0_0 = arith.constant 0 : index
    %c0_1 = arith.constant 0 : index
    %0 = vector.load %arg2[%c0, %c0_0, %c0_1] : memref<1x8x128xbf16, #tpu.memory_space<vmem>>, vector<1x8x128xbf16>
    %1 = vector.shape_cast %0 : vector<1x8x128xbf16> to vector<8x128xbf16>
    %2 = arith.extf %1 : vector<8x128xbf16> to vector<8x128xf32>
    %c0_2 = arith.constant 0 : index
    %c0_3 = arith.constant 0 : index
    %c0_4 = arith.constant 0 : index
    %3 = vector.load %arg3[%c0_2, %c0_3, %c0_4] : memref<1x8x128xbf16, #tpu.memory_space<vmem>>, vector<1x8x128xbf16>
    %4 = vector.shape_cast %3 : vector<1x8x128xbf16> to vector<8x128xbf16>
    %5 = arith.extf %4 : vector<8x128xbf16> to vector<8x128xf32>
    %cst = arith.constant 0.000000e+00 : f32
    %6 = vector.broadcast %cst : f32 to vector<8x128xf32>
    %7 = arith.cmpf ogt, %2, %6 : vector<8x128xf32>
    %cst_5 = arith.constant 1.000000e-01 : f32
    %8 = vector.broadcast %cst_5 : f32 to vector<8x128xf32>
    %9 = arith.mulf %8, %2 : vector<8x128xf32>
    %10 = arith.select %7, %2, %9 : vector<8x128xi1>, vector<8x128xf32>
    %cst_6 = arith.constant 0.000000e+00 : f32
    %11 = vector.broadcast %cst_6 : f32 to vector<8x128xf32>
    %12 = arith.cmpf ogt, %5, %11 : vector<8x128xf32>
    %cst_7 = arith.constant 1.000000e-01 : f32
    %13 = vector.broadcast %cst_7 : f32 to vector<8x128xf32>
    %14 = arith.mulf %13, %5 : vector<8x128xf32>
    %15 = arith.select %12, %5, %14 : vector<8x128xi1>, vector<8x128xf32>
    %16 = arith.truncf %10 : vector<8x128xf32> to vector<8x128xbf16>
    %c0_8 = arith.constant 0 : index
    %c0_9 = arith.constant 0 : index
    %17 = vector.load %arg6[%c0_8, %c0_9] : memref<8x256xbf16, #tpu.memory_space<vmem>>, vector<8x128xbf16>
    tpu.vector_store %arg6[%c0_8, %c0_9], %16 {strides = array<i32>} : memref<8x256xbf16, #tpu.memory_space<vmem>>, vector<8x128xbf16>,
    %18 = arith.truncf %15 : vector<8x128xf32> to vector<8x128xbf16>
    %c0_10 = arith.constant 0 : index
    %c128 = arith.constant 128 : index
    %19 = vector.load %arg6[%c0_10, %c128] : memref<8x256xbf16, #tpu.memory_space<vmem>>, vector<8x128xbf16>
    tpu.vector_store %arg6[%c0_10, %c128], %18 {strides = array<i32>} : memref<8x256xbf16, #tpu.memory_space<vmem>>, vector<8x128xbf16>,
    %c0_11 = arith.constant 0 : index
    %c0_12 = arith.constant 0 : index
    %20 = vector.load %arg6[%c0_11, %c0_12] : memref<8x256xbf16, #tpu.memory_space<vmem>>, vector<8x128xbf16>
    %c0_13 = arith.constant 0 : index
    %c1 = arith.constant 1 : index
    %21 = vector.load %arg6[%c0_13, %c1] : memref<8x256xbf16, #tpu.memory_space<vmem>>, vector<8x128xbf16>
    %c0_14 = arith.constant 0 : index
    %c2 = arith.constant 2 : index
    %22 = vector.load %arg6[%c0_14, %c2] : memref<8x256xbf16, #tpu.memory_space<vmem>>, vector<8x128xbf16>
    %c0_15 = arith.constant 0 : index
    %c3 = arith.constant 3 : index
    %23 = vector.load %arg6[%c0_15, %c3] : memref<8x256xbf16, #tpu.memory_space<vmem>>, vector<8x128xbf16>
    %c0_16 = arith.constant 0 : index
    %c4 = arith.constant 4 : index
    %24 = vector.load %arg6[%c0_16, %c4] : memref<8x256xbf16, #tpu.memory_space<vmem>>, vector<8x128xbf16>
    %cst_17 = arith.constant 1.000000e+00 : bf16
    %25 = vector.broadcast %cst_17 : bf16 to vector<1x128xbf16>
    %26 = tpu.concatenate %20, %21, %22, %23, %24, %25 in 0 : vector<8x128xbf16>, vector<8x128xbf16>, vector<8x128xbf16>, vector<8x128xbf16>, vector<8x128xbf16>, vector<1x128xbf16> -> vector<41x128xbf16>
    %c0_18 = arith.constant 0 : index
    %c0_19 = arith.constant 0 : index
    %27 = vector.load %arg4[%c0_18, %c0_19] : memref<8x41xbf16, #tpu.memory_space<vmem>>, vector<8x41xbf16>
    %cst_20 = arith.constant dense<0.000000e+00> : vector<8x128xf32>
    %28 = tpu.matmul %27, %26, %cst_20 {dimension_numbers = #tpu.dot_dimension_numbers<[1], [0], [0], [1], [0, 0, 1, 1], [], []>} : vector<8x41xbf16>, vector<41x128xbf16>, vector<8x128xf32> -> vector<8x128xf32>
    %29 = arith.truncf %28 : vector<8x128xf32> to vector<8x128xbf16>
    %c0_21 = arith.constant 0 : index
    %c0_22 = arith.constant 0 : index
    %c0_23 = arith.constant 0 : index
    %30 = vector.load %arg5[%c0_21, %c0_22, %c0_23] : memref<1x8x128xbf16, #tpu.memory_space<vmem>>, vector<1x8x128xbf16>
    %31 = vector.shape_cast %30 : vector<1x8x128xbf16> to vector<8x128xbf16>
    %32 = vector.shape_cast %29 : vector<8x128xbf16> to vector<1x8x128xbf16>
    tpu.vector_store %arg5[%c0_21, %c0_22, %c0_23], %32 {strides = array<i32>} : memref<1x8x128xbf16, #tpu.memory_space<vmem>>, vector<1x8x128xbf16>,
    return
  }
  func.func @transform_0(%arg0: i32, %arg1: i32) -> (i32, i32, i32) {
    %c0_i32 = arith.constant 0 : i32
    %c0_i32_0 = arith.constant 0 : i32
    return %arg0, %c0_i32, %arg1 : i32, i32, i32
  }
  func.func @transform_1(%arg0: i32, %arg1: i32) -> (i32, i32, i32) {
    %c1_i32 = arith.constant 1 : i32
    %0 = arith.addi %arg1, %c1_i32 : i32
    %c1_i32_0 = arith.constant 1 : i32
    %1 = arith.muli %0, %c1_i32_0 : i32
    %c0_i32 = arith.constant 0 : i32
    %c0_i32_1 = arith.constant 0 : i32
    return %arg0, %c0_i32, %1 : i32, i32, i32
  }
  func.func @transform_2(%arg0: i32, %arg1: i32) -> (i32, i32) {
    %c0_i32 = arith.constant 0 : i32
    %c0_i32_0 = arith.constant 0 : i32
    %c0_i32_1 = arith.constant 0 : i32
    return %c0_i32, %c0_i32_0 : i32, i32
  }
  func.func @transform_3(%arg0: i32, %arg1: i32) -> (i32, i32, i32) {
    %c0_i32 = arith.constant 0 : i32
    %c0_i32_0 = arith.constant 0 : i32
    return %arg0, %c0_i32, %arg1 : i32, i32, i32
  }
}

module attributes {stable_mosaic.version = 11 : i64} {
  func.func @_conv1d_kernel(%arg0: i32, %arg1: i32, %arg2: memref<1x8x128xbf16, #tpu.memory_space<vmem>>, %arg3: memref<1x8x128xbf16, #tpu.memory_space<vmem>>, %arg4: memref<8x41xbf16, #tpu.memory_space<vmem>>, %arg5: memref<1x8x128xbf16, #tpu.memory_space<vmem>>, %arg6: memref<8x256xbf16, #tpu.memory_space<vmem>>) attributes {dimension_semantics = [#tpu.dimension_semantics<parallel>, #tpu.dimension_semantics<parallel>], iteration_bounds = array<i64: 2, 1>, scalar_prefetch = 0 : i64, scratch_operands = 1 : i64, tpu.core_type = #tpu.core_type<tc>, window_params = [{transform_indices = @transform_0, window_bounds = array<i64: 1, 8, 128>}, {transform_indices = @transform_1, window_bounds = array<i64: 1, 8, 128>}, {pipeline_mode = #tpu.pipeline_mode<synchronous>, transform_indices = @transform_2, window_bounds = array<i64: 8, 41>}, {transform_indices = @transform_3, window_bounds = array<i64: 1, 8, 128>}]} {
    %c0 = arith.constant 0 : index
    %c0_0 = arith.constant 0 : index
    %c0_1 = arith.constant 0 : index
    %0 = vector.load %arg2[%c0, %c0_0, %c0_1] : memref<1x8x128xbf16, #tpu.memory_space<vmem>>, vector<1x8x128xbf16>
    %1 = vector.shape_cast %0 : vector<1x8x128xbf16> to vector<8x128xbf16>
    %2 = arith.extf %1 : vector<8x128xbf16> to vector<8x128xf32>
    %c0_2 = arith.constant 0 : index
    %c0_3 = arith.constant 0 : index
    %c0_4 = arith.constant 0 : index
    %3 = vector.load %arg3[%c0_2, %c0_3, %c0_4] : memref<1x8x128xbf16, #tpu.memory_space<vmem>>, vector<1x8x128xbf16>
    %4 = vector.shape_cast %3 : vector<1x8x128xbf16> to vector<8x128xbf16>
    %5 = arith.extf %4 : vector<8x128xbf16> to vector<8x128xf32>
    %cst = arith.constant 0.000000e+00 : f32
    %6 = vector.broadcast %cst : f32 to vector<8x128xf32>
    %7 = arith.cmpf ogt, %2, %6 : vector<8x128xf32>
    %cst_5 = arith.constant 1.000000e-01 : f32
    %8 = vector.broadcast %cst_5 : f32 to vector<8x128xf32>
    %9 = arith.mulf %8, %2 : vector<8x128xf32>
    %10 = arith.select %7, %2, %9 : vector<8x128xi1>, vector<8x128xf32>
    %cst_6 = arith.constant 0.000000e+00 : f32
    %11 = vector.broadcast %cst_6 : f32 to vector<8x128xf32>
    %12 = arith.cmpf ogt, %5, %11 : vector<8x128xf32>
    %cst_7 = arith.constant 1.000000e-01 : f32
    %13 = vector.broadcast %cst_7 : f32 to vector<8x128xf32>
    %14 = arith.mulf %13, %5 : vector<8x128xf32>
    %15 = arith.select %12, %5, %14 : vector<8x128xi1>, vector<8x128xf32>
    %16 = arith.truncf %10 : vector<8x128xf32> to vector<8x128xbf16>
    %c0_8 = arith.constant 0 : index
    %c0_9 = arith.constant 0 : index
    %17 = vector.load %arg6[%c0_8, %c0_9] : memref<8x256xbf16, #tpu.memory_space<vmem>>, vector<8x128xbf16>
    tpu.vector_store %arg6[%c0_8, %c0_9], %16 {strides = array<i32>} : memref<8x256xbf16, #tpu.memory_space<vmem>>, vector<8x128xbf16>,
    %18 = arith.truncf %15 : vector<8x128xf32> to vector<8x128xbf16>
    %c0_10 = arith.constant 0 : index
    %c128 = arith.constant 128 : index
    %19 = vector.load %arg6[%c0_10, %c128] : memref<8x256xbf16, #tpu.memory_space<vmem>>, vector<8x128xbf16>
    tpu.vector_store %arg6[%c0_10, %c128], %18 {strides = array<i32>} : memref<8x256xbf16, #tpu.memory_space<vmem>>, vector<8x128xbf16>,
    %c0_11 = arith.constant 0 : index
    %c0_12 = arith.constant 0 : index
    %20 = vector.load %arg6[%c0_11, %c0_12] : memref<8x256xbf16, #tpu.memory_space<vmem>>, vector<8x128xbf16>
    %c0_13 = arith.constant 0 : index
    %c5 = arith.constant 5 : index
    %21 = vector.load %arg6[%c0_13, %c5] : memref<8x256xbf16, #tpu.memory_space<vmem>>, vector<8x128xbf16>
    %c0_14 = arith.constant 0 : index
    %c10 = arith.constant 10 : index
    %22 = vector.load %arg6[%c0_14, %c10] : memref<8x256xbf16, #tpu.memory_space<vmem>>, vector<8x128xbf16>
    %c0_15 = arith.constant 0 : index
    %c15 = arith.constant 15 : index
    %23 = vector.load %arg6[%c0_15, %c15] : memref<8x256xbf16, #tpu.memory_space<vmem>>, vector<8x128xbf16>
    %c0_16 = arith.constant 0 : index
    %c20 = arith.constant 20 : index
    %24 = vector.load %arg6[%c0_16, %c20] : memref<8x256xbf16, #tpu.memory_space<vmem>>, vector<8x128xbf16>
    %cst_17 = arith.constant 1.000000e+00 : bf16
    %25 = vector.broadcast %cst_17 : bf16 to vector<1x128xbf16>
    %26 = tpu.concatenate %20, %21, %22, %23, %24, %25 in 0 : vector<8x128xbf16>, vector<8x128xbf16>, vector<8x128xbf16>, vector<8x128xbf16>, vector<8x128xbf16>, vector<1x128xbf16> -> vector<41x128xbf16>
    %c0_18 = arith.constant 0 : index
    %c0_19 = arith.constant 0 : index
    %27 = vector.load %arg4[%c0_18, %c0_19] : memref<8x41xbf16, #tpu.memory_space<vmem>>, vector<8x41xbf16>
    %cst_20 = arith.constant dense<0.000000e+00> : vector<8x128xf32>
    %28 = tpu.matmul %27, %26, %cst_20 {dimension_numbers = #tpu.dot_dimension_numbers<[1], [0], [0], [1], [0, 0, 1, 1], [], []>} : vector<8x41xbf16>, vector<41x128xbf16>, vector<8x128xf32> -> vector<8x128xf32>
    %29 = arith.truncf %28 : vector<8x128xf32> to vector<8x128xbf16>
    %c0_21 = arith.constant 0 : index
    %c0_22 = arith.constant 0 : index
    %c0_23 = arith.constant 0 : index
    %30 = vector.load %arg5[%c0_21, %c0_22, %c0_23] : memref<1x8x128xbf16, #tpu.memory_space<vmem>>, vector<1x8x128xbf16>
    %31 = vector.shape_cast %30 : vector<1x8x128xbf16> to vector<8x128xbf16>
    %32 = vector.shape_cast %29 : vector<8x128xbf16> to vector<1x8x128xbf16>
    tpu.vector_store %arg5[%c0_21, %c0_22, %c0_23], %32 {strides = array<i32>} : memref<1x8x128xbf16, #tpu.memory_space<vmem>>, vector<1x8x128xbf16>,
    return
  }
  func.func @transform_0(%arg0: i32, %arg1: i32) -> (i32, i32, i32) {
    %c0_i32 = arith.constant 0 : i32
    %c0_i32_0 = arith.constant 0 : i32
    return %arg0, %c0_i32, %arg1 : i32, i32, i32
  }
  func.func @transform_1(%arg0: i32, %arg1: i32) -> (i32, i32, i32) {
    %c1_i32 = arith.constant 1 : i32
    %0 = arith.addi %arg1, %c1_i32 : i32
    %c1_i32_0 = arith.constant 1 : i32
    %1 = arith.muli %0, %c1_i32_0 : i32
    %c0_i32 = arith.constant 0 : i32
    %c0_i32_1 = arith.constant 0 : i32
    return %arg0, %c0_i32, %1 : i32, i32, i32
  }
  func.func @transform_2(%arg0: i32, %arg1: i32) -> (i32, i32) {
    %c0_i32 = arith.constant 0 : i32
    %c0_i32_0 = arith.constant 0 : i32
    %c0_i32_1 = arith.constant 0 : i32
    return %c0_i32, %c0_i32_0 : i32, i32
  }
  func.func @transform_3(%arg0: i32, %arg1: i32) -> (i32, i32, i32) {
    %c0_i32 = arith.constant 0 : i32
    %c0_i32_0 = arith.constant 0 : i32
    return %arg0, %c0_i32, %arg1 : i32, i32, i32
  }
}

module attributes {stable_mosaic.version = 11 : i64} {
  func.func @_conv1d_kernel(%arg0: i32, %arg1: i32, %arg2: memref<1x8x128xbf16, #tpu.memory_space<vmem>>, %arg3: memref<1x8x128xbf16, #tpu.memory_space<vmem>>, %arg4: memref<8x41xbf16, #tpu.memory_space<vmem>>, %arg5: memref<1x8x128xbf16, #tpu.memory_space<vmem>>, %arg6: memref<8x256xbf16, #tpu.memory_space<vmem>>) attributes {dimension_semantics = [#tpu.dimension_semantics<parallel>, #tpu.dimension_semantics<parallel>], iteration_bounds = array<i64: 2, 1>, scalar_prefetch = 0 : i64, scratch_operands = 1 : i64, tpu.core_type = #tpu.core_type<tc>, window_params = [{transform_indices = @transform_0, window_bounds = array<i64: 1, 8, 128>}, {transform_indices = @transform_1, window_bounds = array<i64: 1, 8, 128>}, {pipeline_mode = #tpu.pipeline_mode<synchronous>, transform_indices = @transform_2, window_bounds = array<i64: 8, 41>}, {transform_indices = @transform_3, window_bounds = array<i64: 1, 8, 128>}]} {
    %c0 = arith.constant 0 : index
    %c0_0 = arith.constant 0 : index
    %c0_1 = arith.constant 0 : index
    %0 = vector.load %arg2[%c0, %c0_0, %c0_1] : memref<1x8x128xbf16, #tpu.memory_space<vmem>>, vector<1x8x128xbf16>
    %1 = vector.shape_cast %0 : vector<1x8x128xbf16> to vector<8x128xbf16>
    %2 = arith.extf %1 : vector<8x128xbf16> to vector<8x128xf32>
    %c0_2 = arith.constant 0 : index
    %c0_3 = arith.constant 0 : index
    %c0_4 = arith.constant 0 : index
    %3 = vector.load %arg3[%c0_2, %c0_3, %c0_4] : memref<1x8x128xbf16, #tpu.memory_space<vmem>>, vector<1x8x128xbf16>
    %4 = vector.shape_cast %3 : vector<1x8x128xbf16> to vector<8x128xbf16>
    %5 = arith.extf %4 : vector<8x128xbf16> to vector<8x128xf32>
    %cst = arith.constant 0.000000e+00 : f32
    %6 = vector.broadcast %cst : f32 to vector<8x128xf32>
    %7 = arith.cmpf ogt, %2, %6 : vector<8x128xf32>
    %cst_5 = arith.constant 1.000000e-01 : f32
    %8 = vector.broadcast %cst_5 : f32 to vector<8x128xf32>
    %9 = arith.mulf %8, %2 : vector<8x128xf32>
    %10 = arith.select %7, %2, %9 : vector<8x128xi1>, vector<8x128xf32>
    %cst_6 = arith.constant 0.000000e+00 : f32
    %11 = vector.broadcast %cst_6 : f32 to vector<8x128xf32>
    %12 = arith.cmpf ogt, %5, %11 : vector<8x128xf32>
    %cst_7 = arith.constant 1.000000e-01 : f32
    %13 = vector.broadcast %cst_7 : f32 to vector<8x128xf32>
    %14 = arith.mulf %13, %5 : vector<8x128xf32>
    %15 = arith.select %12, %5, %14 : vector<8x128xi1>, vector<8x128xf32>
    %16 = arith.truncf %10 : vector<8x128xf32> to vector<8x128xbf16>
    %c0_8 = arith.constant 0 : index
    %c0_9 = arith.constant 0 : index
    %17 = vector.load %arg6[%c0_8, %c0_9] : memref<8x256xbf16, #tpu.memory_space<vmem>>, vector<8x128xbf16>
    tpu.vector_store %arg6[%c0_8, %c0_9], %16 {strides = array<i32>} : memref<8x256xbf16, #tpu.memory_space<vmem>>, vector<8x128xbf16>,
    %18 = arith.truncf %15 : vector<8x128xf32> to vector<8x128xbf16>
    %c0_10 = arith.constant 0 : index
    %c128 = arith.constant 128 : index
    %19 = vector.load %arg6[%c0_10, %c128] : memref<8x256xbf16, #tpu.memory_space<vmem>>, vector<8x128xbf16>
    tpu.vector_store %arg6[%c0_10, %c128], %18 {strides = array<i32>} : memref<8x256xbf16, #tpu.memory_space<vmem>>, vector<8x128xbf16>,
    %c0_11 = arith.constant 0 : index
    %c0_12 = arith.constant 0 : index
    %20 = vector.load %arg6[%c0_11, %c0_12] : memref<8x256xbf16, #tpu.memory_space<vmem>>, vector<8x128xbf16>
    %c0_13 = arith.constant 0 : index
    %c3 = arith.constant 3 : index
    %21 = vector.load %arg6[%c0_13, %c3] : memref<8x256xbf16, #tpu.memory_space<vmem>>, vector<8x128xbf16>
    %c0_14 = arith.constant 0 : index
    %c6 = arith.constant 6 : index
    %22 = vector.load %arg6[%c0_14, %c6] : memref<8x256xbf16, #tpu.memory_space<vmem>>, vector<8x128xbf16>
    %c0_15 = arith.constant 0 : index
    %c9 = arith.constant 9 : index
    %23 = vector.load %arg6[%c0_15, %c9] : memref<8x256xbf16, #tpu.memory_space<vmem>>, vector<8x128xbf16>
    %c0_16 = arith.constant 0 : index
    %c12 = arith.constant 12 : index
    %24 = vector.load %arg6[%c0_16, %c12] : memref<8x256xbf16, #tpu.memory_space<vmem>>, vector<8x128xbf16>
    %cst_17 = arith.constant 1.000000e+00 : bf16
    %25 = vector.broadcast %cst_17 : bf16 to vector<1x128xbf16>
    %26 = tpu.concatenate %20, %21, %22, %23, %24, %25 in 0 : vector<8x128xbf16>, vector<8x128xbf16>, vector<8x128xbf16>, vector<8x128xbf16>, vector<8x128xbf16>, vector<1x128xbf16> -> vector<41x128xbf16>
    %c0_18 = arith.constant 0 : index
    %c0_19 = arith.constant 0 : index
    %27 = vector.load %arg4[%c0_18, %c0_19] : memref<8x41xbf16, #tpu.memory_space<vmem>>, vector<8x41xbf16>
    %cst_20 = arith.constant dense<0.000000e+00> : vector<8x128xf32>
    %28 = tpu.matmul %27, %26, %cst_20 {dimension_numbers = #tpu.dot_dimension_numbers<[1], [0], [0], [1], [0, 0, 1, 1], [], []>} : vector<8x41xbf16>, vector<41x128xbf16>, vector<8x128xf32> -> vector<8x128xf32>
    %29 = arith.truncf %28 : vector<8x128xf32> to vector<8x128xbf16>
    %c0_21 = arith.constant 0 : index
    %c0_22 = arith.constant 0 : index
    %c0_23 = arith.constant 0 : index
    %30 = vector.load %arg5[%c0_21, %c0_22, %c0_23] : memref<1x8x128xbf16, #tpu.memory_space<vmem>>, vector<1x8x128xbf16>
    %31 = vector.shape_cast %30 : vector<1x8x128xbf16> to vector<8x128xbf16>
    %32 = vector.shape_cast %29 : vector<8x128xbf16> to vector<1x8x128xbf16>
    tpu.vector_store %arg5[%c0_21, %c0_22, %c0_23], %32 {strides = array<i32>} : memref<1x8x128xbf16, #tpu.memory_space<vmem>>, vector<1x8x128xbf16>,
    return
  }
  func.func @transform_0(%arg0: i32, %arg1: i32) -> (i32, i32, i32) {
    %c0_i32 = arith.constant 0 : i32
    %c0_i32_0 = arith.constant 0 : i32
    return %arg0, %c0_i32, %arg1 : i32, i32, i32
  }
  func.func @transform_1(%arg0: i32, %arg1: i32) -> (i32, i32, i32) {
    %c1_i32 = arith.constant 1 : i32
    %0 = arith.addi %arg1, %c1_i32 : i32
    %c1_i32_0 = arith.constant 1 : i32
    %1 = arith.muli %0, %c1_i32_0 : i32
    %c0_i32 = arith.constant 0 : i32
    %c0_i32_1 = arith.constant 0 : i32
    return %arg0, %c0_i32, %1 : i32, i32, i32
  }
  func.func @transform_2(%arg0: i32, %arg1: i32) -> (i32, i32) {
    %c0_i32 = arith.constant 0 : i32
    %c0_i32_0 = arith.constant 0 : i32
    %c0_i32_1 = arith.constant 0 : i32
    return %c0_i32, %c0_i32_0 : i32, i32
  }
  func.func @transform_3(%arg0: i32, %arg1: i32) -> (i32, i32, i32) {
    %c0_i32 = arith.constant 0 : i32
    %c0_i32_0 = arith.constant 0 : i32
    return %arg0, %c0_i32, %arg1 : i32, i32, i32
  }
}

module attributes {stable_mosaic.version = 11 : i64} {
  func.func @_conv1d_kernel(%arg0: i32, %arg1: i32, %arg2: memref<1x8x128xbf16, #tpu.memory_space<vmem>>, %arg3: memref<1x8x128xbf16, #tpu.memory_space<vmem>>, %arg4: memref<8x25xbf16, #tpu.memory_space<vmem>>, %arg5: memref<1x8x128xbf16, #tpu.memory_space<vmem>>, %arg6: memref<8x256xbf16, #tpu.memory_space<vmem>>) attributes {dimension_semantics = [#tpu.dimension_semantics<parallel>, #tpu.dimension_semantics<parallel>], iteration_bounds = array<i64: 2, 1>, scalar_prefetch = 0 : i64, scratch_operands = 1 : i64, tpu.core_type = #tpu.core_type<tc>, window_params = [{transform_indices = @transform_0, window_bounds = array<i64: 1, 8, 128>}, {transform_indices = @transform_1, window_bounds = array<i64: 1, 8, 128>}, {pipeline_mode = #tpu.pipeline_mode<synchronous>, transform_indices = @transform_2, window_bounds = array<i64: 8, 25>}, {transform_indices = @transform_3, window_bounds = array<i64: 1, 8, 128>}]} {
    %c0 = arith.constant 0 : index
    %c0_0 = arith.constant 0 : index
    %c0_1 = arith.constant 0 : index
    %0 = vector.load %arg2[%c0, %c0_0, %c0_1] : memref<1x8x128xbf16, #tpu.memory_space<vmem>>, vector<1x8x128xbf16>
    %1 = vector.shape_cast %0 : vector<1x8x128xbf16> to vector<8x128xbf16>
    %2 = arith.extf %1 : vector<8x128xbf16> to vector<8x128xf32>
    %c0_2 = arith.constant 0 : index
    %c0_3 = arith.constant 0 : index
    %c0_4 = arith.constant 0 : index
    %3 = vector.load %arg3[%c0_2, %c0_3, %c0_4] : memref<1x8x128xbf16, #tpu.memory_space<vmem>>, vector<1x8x128xbf16>
    %4 = vector.shape_cast %3 : vector<1x8x128xbf16> to vector<8x128xbf16>
    %5 = arith.extf %4 : vector<8x128xbf16> to vector<8x128xf32>
    %cst = arith.constant 0.000000e+00 : f32
    %6 = vector.broadcast %cst : f32 to vector<8x128xf32>
    %7 = arith.cmpf ogt, %2, %6 : vector<8x128xf32>
    %cst_5 = arith.constant 1.000000e-01 : f32
    %8 = vector.broadcast %cst_5 : f32 to vector<8x128xf32>
    %9 = arith.mulf %8, %2 : vector<8x128xf32>
    %10 = arith.select %7, %2, %9 : vector<8x128xi1>, vector<8x128xf32>
    %cst_6 = arith.constant 0.000000e+00 : f32
    %11 = vector.broadcast %cst_6 : f32 to vector<8x128xf32>
    %12 = arith.cmpf ogt, %5, %11 : vector<8x128xf32>
    %cst_7 = arith.constant 1.000000e-01 : f32
    %13 = vector.broadcast %cst_7 : f32 to vector<8x128xf32>
    %14 = arith.mulf %13, %5 : vector<8x128xf32>
    %15 = arith.select %12, %5, %14 : vector<8x128xi1>, vector<8x128xf32>
    %16 = arith.truncf %10 : vector<8x128xf32> to vector<8x128xbf16>
    %c0_8 = arith.constant 0 : index
    %c0_9 = arith.constant 0 : index
    %17 = vector.load %arg6[%c0_8, %c0_9] : memref<8x256xbf16, #tpu.memory_space<vmem>>, vector<8x128xbf16>
    tpu.vector_store %arg6[%c0_8, %c0_9], %16 {strides = array<i32>} : memref<8x256xbf16, #tpu.memory_space<vmem>>, vector<8x128xbf16>,
    %18 = arith.truncf %15 : vector<8x128xf32> to vector<8x128xbf16>
    %c0_10 = arith.constant 0 : index
    %c128 = arith.constant 128 : index
    %19 = vector.load %arg6[%c0_10, %c128] : memref<8x256xbf16, #tpu.memory_space<vmem>>, vector<8x128xbf16>
    tpu.vector_store %arg6[%c0_10, %c128], %18 {strides = array<i32>} : memref<8x256xbf16, #tpu.memory_space<vmem>>, vector<8x128xbf16>,
    %c0_11 = arith.constant 0 : index
    %c0_12 = arith.constant 0 : index
    %20 = vector.load %arg6[%c0_11, %c0_12] : memref<8x256xbf16, #tpu.memory_space<vmem>>, vector<8x128xbf16>
    %c0_13 = arith.constant 0 : index
    %c3 = arith.constant 3 : index
    %21 = vector.load %arg6[%c0_13, %c3] : memref<8x256xbf16, #tpu.memory_space<vmem>>, vector<8x128xbf16>
    %c0_14 = arith.constant 0 : index
    %c6 = arith.constant 6 : index
    %22 = vector.load %arg6[%c0_14, %c6] : memref<8x256xbf16, #tpu.memory_space<vmem>>, vector<8x128xbf16>
    %cst_15 = arith.constant 1.000000e+00 : bf16
    %23 = vector.broadcast %cst_15 : bf16 to vector<1x128xbf16>
    %24 = tpu.concatenate %20, %21, %22, %23 in 0 : vector<8x128xbf16>, vector<8x128xbf16>, vector<8x128xbf16>, vector<1x128xbf16> -> vector<25x128xbf16>
    %c0_16 = arith.constant 0 : index
    %c0_17 = arith.constant 0 : index
    %25 = vector.load %arg4[%c0_16, %c0_17] : memref<8x25xbf16, #tpu.memory_space<vmem>>, vector<8x25xbf16>
    %cst_18 = arith.constant dense<0.000000e+00> : vector<8x128xf32>
    %26 = tpu.matmul %25, %24, %cst_18 {dimension_numbers = #tpu.dot_dimension_numbers<[1], [0], [0], [1], [0, 0, 1, 1], [], []>} : vector<8x25xbf16>, vector<25x128xbf16>, vector<8x128xf32> -> vector<8x128xf32>
    %27 = arith.truncf %26 : vector<8x128xf32> to vector<8x128xbf16>
    %c0_19 = arith.constant 0 : index
    %c0_20 = arith.constant 0 : index
    %c0_21 = arith.constant 0 : index
    %28 = vector.load %arg5[%c0_19, %c0_20, %c0_21] : memref<1x8x128xbf16, #tpu.memory_space<vmem>>, vector<1x8x128xbf16>
    %29 = vector.shape_cast %28 : vector<1x8x128xbf16> to vector<8x128xbf16>
    %30 = vector.shape_cast %27 : vector<8x128xbf16> to vector<1x8x128xbf16>
    tpu.vector_store %arg5[%c0_19, %c0_20, %c0_21], %30 {strides = array<i32>} : memref<1x8x128xbf16, #tpu.memory_space<vmem>>, vector<1x8x128xbf16>,
    return
  }
  func.func @transform_0(%arg0: i32, %arg1: i32) -> (i32, i32, i32) {
    %c0_i32 = arith.constant 0 : i32
    %c0_i32_0 = arith.constant 0 : i32
    return %arg0, %c0_i32, %arg1 : i32, i32, i32
  }
  func.func @transform_1(%arg0: i32, %arg1: i32) -> (i32, i32, i32) {
    %c1_i32 = arith.constant 1 : i32
    %0 = arith.addi %arg1, %c1_i32 : i32
    %c1_i32_0 = arith.constant 1 : i32
    %1 = arith.muli %0, %c1_i32_0 : i32
    %c0_i32 = arith.constant 0 : i32
    %c0_i32_1 = arith.constant 0 : i32
    return %arg0, %c0_i32, %1 : i32, i32, i32
  }
  func.func @transform_2(%arg0: i32, %arg1: i32) -> (i32, i32) {
    %c0_i32 = arith.constant 0 : i32
    %c0_i32_0 = arith.constant 0 : i32
    %c0_i32_1 = arith.constant 0 : i32
    return %c0_i32, %c0_i32_0 : i32, i32
  }
  func.func @transform_3(%arg0: i32, %arg1: i32) -> (i32, i32, i32) {
    %c0_i32 = arith.constant 0 : i32
    %c0_i32_0 = arith.constant 0 : i32
    return %arg0, %c0_i32, %arg1 : i32, i32, i32
  }
}

module attributes {stable_mosaic.version = 11 : i64} {
  func.func @_conv1d_kernel(%arg0: i32, %arg1: i32, %arg2: memref<1x8x128xbf16, #tpu.memory_space<vmem>>, %arg3: memref<1x8x128xbf16, #tpu.memory_space<vmem>>, %arg4: memref<8x25xbf16, #tpu.memory_space<vmem>>, %arg5: memref<1x8x128xbf16, #tpu.memory_space<vmem>>, %arg6: memref<8x256xbf16, #tpu.memory_space<vmem>>) attributes {dimension_semantics = [#tpu.dimension_semantics<parallel>, #tpu.dimension_semantics<parallel>], iteration_bounds = array<i64: 2, 1>, scalar_prefetch = 0 : i64, scratch_operands = 1 : i64, tpu.core_type = #tpu.core_type<tc>, window_params = [{transform_indices = @transform_0, window_bounds = array<i64: 1, 8, 128>}, {transform_indices = @transform_1, window_bounds = array<i64: 1, 8, 128>}, {pipeline_mode = #tpu.pipeline_mode<synchronous>, transform_indices = @transform_2, window_bounds = array<i64: 8, 25>}, {transform_indices = @transform_3, window_bounds = array<i64: 1, 8, 128>}]} {
    %c0 = arith.constant 0 : index
    %c0_0 = arith.constant 0 : index
    %c0_1 = arith.constant 0 : index
    %0 = vector.load %arg2[%c0, %c0_0, %c0_1] : memref<1x8x128xbf16, #tpu.memory_space<vmem>>, vector<1x8x128xbf16>
    %1 = vector.shape_cast %0 : vector<1x8x128xbf16> to vector<8x128xbf16>
    %2 = arith.extf %1 : vector<8x128xbf16> to vector<8x128xf32>
    %c0_2 = arith.constant 0 : index
    %c0_3 = arith.constant 0 : index
    %c0_4 = arith.constant 0 : index
    %3 = vector.load %arg3[%c0_2, %c0_3, %c0_4] : memref<1x8x128xbf16, #tpu.memory_space<vmem>>, vector<1x8x128xbf16>
    %4 = vector.shape_cast %3 : vector<1x8x128xbf16> to vector<8x128xbf16>
    %5 = arith.extf %4 : vector<8x128xbf16> to vector<8x128xf32>
    %cst = arith.constant 0.000000e+00 : f32
    %6 = vector.broadcast %cst : f32 to vector<8x128xf32>
    %7 = arith.cmpf ogt, %2, %6 : vector<8x128xf32>
    %cst_5 = arith.constant 1.000000e-01 : f32
    %8 = vector.broadcast %cst_5 : f32 to vector<8x128xf32>
    %9 = arith.mulf %8, %2 : vector<8x128xf32>
    %10 = arith.select %7, %2, %9 : vector<8x128xi1>, vector<8x128xf32>
    %cst_6 = arith.constant 0.000000e+00 : f32
    %11 = vector.broadcast %cst_6 : f32 to vector<8x128xf32>
    %12 = arith.cmpf ogt, %5, %11 : vector<8x128xf32>
    %cst_7 = arith.constant 1.000000e-01 : f32
    %13 = vector.broadcast %cst_7 : f32 to vector<8x128xf32>
    %14 = arith.mulf %13, %5 : vector<8x128xf32>
    %15 = arith.select %12, %5, %14 : vector<8x128xi1>, vector<8x128xf32>
    %16 = arith.truncf %10 : vector<8x128xf32> to vector<8x128xbf16>
    %c0_8 = arith.constant 0 : index
    %c0_9 = arith.constant 0 : index
    %17 = vector.load %arg6[%c0_8, %c0_9] : memref<8x256xbf16, #tpu.memory_space<vmem>>, vector<8x128xbf16>
    tpu.vector_store %arg6[%c0_8, %c0_9], %16 {strides = array<i32>} : memref<8x256xbf16, #tpu.memory_space<vmem>>, vector<8x128xbf16>,
    %18 = arith.truncf %15 : vector<8x128xf32> to vector<8x128xbf16>
    %c0_10 = arith.constant 0 : index
    %c128 = arith.constant 128 : index
    %19 = vector.load %arg6[%c0_10, %c128] : memref<8x256xbf16, #tpu.memory_space<vmem>>, vector<8x128xbf16>
    tpu.vector_store %arg6[%c0_10, %c128], %18 {strides = array<i32>} : memref<8x256xbf16, #tpu.memory_space<vmem>>, vector<8x128xbf16>,
    %c0_11 = arith.constant 0 : index
    %c0_12 = arith.constant 0 : index
    %20 = vector.load %arg6[%c0_11, %c0_12] : memref<8x256xbf16, #tpu.memory_space<vmem>>, vector<8x128xbf16>
    %c0_13 = arith.constant 0 : index
    %c5 = arith.constant 5 : index
    %21 = vector.load %arg6[%c0_13, %c5] : memref<8x256xbf16, #tpu.memory_space<vmem>>, vector<8x128xbf16>
    %c0_14 = arith.constant 0 : index
    %c10 = arith.constant 10 : index
    %22 = vector.load %arg6[%c0_14, %c10] : memref<8x256xbf16, #tpu.memory_space<vmem>>, vector<8x128xbf16>
    %cst_15 = arith.constant 1.000000e+00 : bf16
    %23 = vector.broadcast %cst_15 : bf16 to vector<1x128xbf16>
    %24 = tpu.concatenate %20, %21, %22, %23 in 0 : vector<8x128xbf16>, vector<8x128xbf16>, vector<8x128xbf16>, vector<1x128xbf16> -> vector<25x128xbf16>
    %c0_16 = arith.constant 0 : index
    %c0_17 = arith.constant 0 : index
    %25 = vector.load %arg4[%c0_16, %c0_17] : memref<8x25xbf16, #tpu.memory_space<vmem>>, vector<8x25xbf16>
    %cst_18 = arith.constant dense<0.000000e+00> : vector<8x128xf32>
    %26 = tpu.matmul %25, %24, %cst_18 {dimension_numbers = #tpu.dot_dimension_numbers<[1], [0], [0], [1], [0, 0, 1, 1], [], []>} : vector<8x25xbf16>, vector<25x128xbf16>, vector<8x128xf32> -> vector<8x128xf32>
    %27 = arith.truncf %26 : vector<8x128xf32> to vector<8x128xbf16>
    %c0_19 = arith.constant 0 : index
    %c0_20 = arith.constant 0 : index
    %c0_21 = arith.constant 0 : index
    %28 = vector.load %arg5[%c0_19, %c0_20, %c0_21] : memref<1x8x128xbf16, #tpu.memory_space<vmem>>, vector<1x8x128xbf16>
    %29 = vector.shape_cast %28 : vector<1x8x128xbf16> to vector<8x128xbf16>
    %30 = vector.shape_cast %27 : vector<8x128xbf16> to vector<1x8x128xbf16>
    tpu.vector_store %arg5[%c0_19, %c0_20, %c0_21], %30 {strides = array<i32>} : memref<1x8x128xbf16, #tpu.memory_space<vmem>>, vector<1x8x128xbf16>,
    return
  }
  func.func @transform_0(%arg0: i32, %arg1: i32) -> (i32, i32, i32) {
    %c0_i32 = arith.constant 0 : i32
    %c0_i32_0 = arith.constant 0 : i32
    return %arg0, %c0_i32, %arg1 : i32, i32, i32
  }
  func.func @transform_1(%arg0: i32, %arg1: i32) -> (i32, i32, i32) {
    %c1_i32 = arith.constant 1 : i32
    %0 = arith.addi %arg1, %c1_i32 : i32
    %c1_i32_0 = arith.constant 1 : i32
    %1 = arith.muli %0, %c1_i32_0 : i32
    %c0_i32 = arith.constant 0 : i32
    %c0_i32_1 = arith.constant 0 : i32
    return %arg0, %c0_i32, %1 : i32, i32, i32
  }
  func.func @transform_2(%arg0: i32, %arg1: i32) -> (i32, i32) {
    %c0_i32 = arith.constant 0 : i32
    %c0_i32_0 = arith.constant 0 : i32
    %c0_i32_1 = arith.constant 0 : i32
    return %c0_i32, %c0_i32_0 : i32, i32
  }
  func.func @transform_3(%arg0: i32, %arg1: i32) -> (i32, i32, i32) {
    %c0_i32 = arith.constant 0 : i32
    %c0_i32_0 = arith.constant 0 : i32
    return %arg0, %c0_i32, %arg1 : i32, i32, i32
  }
}

module attributes {stable_mosaic.version = 11 : i64} {
  func.func @_idwt2_haar_kernel(%arg0: i32, %arg1: i32, %arg2: memref<1x4x64xf32, #tpu.memory_space<vmem>>, %arg3: memref<1x4x64xf32, #tpu.memory_space<vmem>>) attributes {dimension_semantics = [#tpu.dimension_semantics<parallel>, #tpu.dimension_semantics<parallel>], iteration_bounds = array<i64: 2, 1>, scalar_prefetch = 0 : i64, scratch_operands = 0 : i64, tpu.core_type = #tpu.core_type<tc>, window_params = [{transform_indices = @transform_0, window_bounds = array<i64: 1, 4, 64>}, {transform_indices = @transform_1, window_bounds = array<i64: 1, 4, 64>}]} {
    %c0 = arith.constant 0 : index
    %c0_0 = arith.constant 0 : index
    %c0_1 = arith.constant 0 : index
    %0 = vector.load %arg2[%c0, %c0_0, %c0_1] : memref<1x4x64xf32, #tpu.memory_space<vmem>>, vector<1x4x64xf32>
    %1 = vector.shape_cast %0 : vector<1x4x64xf32> to vector<4x64xf32>
    %2 = vector.extract_strided_slice %1 {offsets = [0, 0], sizes = [1, 64], strides = [1, 1]} : vector<4x64xf32> to vector<1x64xf32>
    %3 = vector.extract_strided_slice %1 {offsets = [1, 0], sizes = [1, 64], strides = [1, 1]} : vector<4x64xf32> to vector<1x64xf32>
    %4 = vector.extract_strided_slice %1 {offsets = [2, 0], sizes = [1, 64], strides = [1, 1]} : vector<4x64xf32> to vector<1x64xf32>
    %5 = vector.extract_strided_slice %1 {offsets = [3, 0], sizes = [1, 64], strides = [1, 1]} : vector<4x64xf32> to vector<1x64xf32>
    %6 = arith.addf %2, %3 : vector<1x64xf32>
    %7 = arith.subf %2, %3 : vector<1x64xf32>
    %8 = arith.addf %4, %5 : vector<1x64xf32>
    %9 = arith.subf %4, %5 : vector<1x64xf32>
    %10 = arith.addf %6, %8 : vector<1x64xf32>
    %11 = arith.subf %6, %8 : vector<1x64xf32>
    %12 = arith.addf %7, %9 : vector<1x64xf32>
    %13 = arith.subf %7, %9 : vector<1x64xf32>
    %14 = tpu.concatenate %10, %11, %12, %13 in 0 : vector<1x64xf32>, vector<1x64xf32>, vector<1x64xf32>, vector<1x64xf32> -> vector<4x64xf32>
    %cst = arith.constant 5.000000e-01 : f32
    %15 = vector.broadcast %cst : f32 to vector<4x64xf32>
    %16 = arith.mulf %15, %14 : vector<4x64xf32>
    %c0_2 = arith.constant 0 : index
    %c0_3 = arith.constant 0 : index
    %c0_4 = arith.constant 0 : index
    %17 = vector.load %arg3[%c0_2, %c0_3, %c0_4] : memref<1x4x64xf32, #tpu.memory_space<vmem>>, vector<1x4x64xf32>
    %18 = vector.shape_cast %17 : vector<1x4x64xf32> to vector<4x64xf32>
    %19 = vector.shape_cast %16 : vector<4x64xf32> to vector<1x4x64xf32>
    tpu.vector_store %arg3[%c0_2, %c0_3, %c0_4], %19 {strides = array<i32>} : memref<1x4x64xf32, #tpu.memory_space<vmem>>, vector<1x4x64xf32>,
    return
  }
  func.func @transform_0(%arg0: i32, %arg1: i32) -> (i32, i32, i32) {
    %c0_i32 = arith.constant 0 : i32
    %c0_i32_0 = arith.constant 0 : i32
    return %arg0, %c0_i32, %arg1 : i32, i32, i32
  }
  func.func @transform_1(%arg0: i32, %arg1: i32) -> (i32, i32, i32) {
    %c0_i32 = arith.constant 0 : i32
    %c0_i32_0 = arith.constant 0 : i32
    return %arg0, %c0_i32, %arg1 : i32, i32, i32
  }
}

module attributes {stable_mosaic.version = 11 : i64} {
  func.func @_conv1d_kernel(%arg0: i32, %arg1: i32, %arg2: memref<1x8x128xbf16, #tpu.memory_space<vmem>>, %arg3: memref<1x8x128xbf16, #tpu.memory_space<vmem>>, %arg4: memref<4x57xbf16, #tpu.memory_space<vmem>>, %arg5: memref<1x4x128xf32, #tpu.memory_space<vmem>>, %arg6: memref<8x256xbf16, #tpu.memory_space<vmem>>) attributes {dimension_semantics = [#tpu.dimension_semantics<parallel>, #tpu.dimension_semantics<parallel>], iteration_bounds = array<i64: 2, 1>, scalar_prefetch = 0 : i64, scratch_operands = 1 : i64, tpu.core_type = #tpu.core_type<tc>, window_params = [{transform_indices = @transform_0, window_bounds = array<i64: 1, 8, 128>}, {transform_indices = @transform_1, window_bounds = array<i64: 1, 8, 128>}, {pipeline_mode = #tpu.pipeline_mode<synchronous>, transform_indices = @transform_2, window_bounds = array<i64: 4, 57>}, {transform_indices = @transform_3, window_bounds = array<i64: 1, 4, 128>}]} {
    %c0 = arith.constant 0 : index
    %c0_0 = arith.constant 0 : index
    %c0_1 = arith.constant 0 : index
    %0 = vector.load %arg2[%c0, %c0_0, %c0_1] : memref<1x8x128xbf16, #tpu.memory_space<vmem>>, vector<1x8x128xbf16>
    %1 = vector.shape_cast %0 : vector<1x8x128xbf16> to vector<8x128xbf16>
    %2 = arith.extf %1 : vector<8x128xbf16> to vector<8x128xf32>
    %c0_2 = arith.constant 0 : index
    %c0_3 = arith.constant 0 : index
    %c0_4 = arith.constant 0 : index
    %3 = vector.load %arg3[%c0_2, %c0_3, %c0_4] : memref<1x8x128xbf16, #tpu.memory_space<vmem>>, vector<1x8x128xbf16>
    %4 = vector.shape_cast %3 : vector<1x8x128xbf16> to vector<8x128xbf16>
    %5 = arith.extf %4 : vector<8x128xbf16> to vector<8x128xf32>
    %cst = arith.constant 0.000000e+00 : f32
    %6 = vector.broadcast %cst : f32 to vector<8x128xf32>
    %7 = arith.cmpf ogt, %2, %6 : vector<8x128xf32>
    %cst_5 = arith.constant 1.000000e-01 : f32
    %8 = vector.broadcast %cst_5 : f32 to vector<8x128xf32>
    %9 = arith.mulf %8, %2 : vector<8x128xf32>
    %10 = arith.select %7, %2, %9 : vector<8x128xi1>, vector<8x128xf32>
    %cst_6 = arith.constant 0.000000e+00 : f32
    %11 = vector.broadcast %cst_6 : f32 to vector<8x128xf32>
    %12 = arith.cmpf ogt, %5, %11 : vector<8x128xf32>
    %cst_7 = arith.constant 1.000000e-01 : f32
    %13 = vector.broadcast %cst_7 : f32 to vector<8x128xf32>
    %14 = arith.mulf %13, %5 : vector<8x128xf32>
    %15 = arith.select %12, %5, %14 : vector<8x128xi1>, vector<8x128xf32>
    %16 = arith.truncf %10 : vector<8x128xf32> to vector<8x128xbf16>
    %c0_8 = arith.constant 0 : index
    %c0_9 = arith.constant 0 : index
    %17 = vector.load %arg6[%c0_8, %c0_9] : memref<8x256xbf16, #tpu.memory_space<vmem>>, vector<8x128xbf16>
    tpu.vector_store %arg6[%c0_8, %c0_9], %16 {strides = array<i32>} : memref<8x256xbf16, #tpu.memory_space<vmem>>, vector<8x128xbf16>,
    %18 = arith.truncf %15 : vector<8x128xf32> to vector<8x128xbf16>
    %c0_10 = arith.constant 0 : index
    %c128 = arith.constant 128 : index
    %19 = vector.load %arg6[%c0_10, %c128] : memref<8x256xbf16, #tpu.memory_space<vmem>>, vector<8x128xbf16>
    tpu.vector_store %arg6[%c0_10, %c128], %18 {strides = array<i32>} : memref<8x256xbf16, #tpu.memory_space<vmem>>, vector<8x128xbf16>,
    %c0_11 = arith.constant 0 : index
    %c0_12 = arith.constant 0 : index
    %20 = vector.load %arg6[%c0_11, %c0_12] : memref<8x256xbf16, #tpu.memory_space<vmem>>, vector<8x128xbf16>
    %c0_13 = arith.constant 0 : index
    %c1 = arith.constant 1 : index
    %21 = vector.load %arg6[%c0_13, %c1] : memref<8x256xbf16, #tpu.memory_space<vmem>>, vector<8x128xbf16>
    %c0_14 = arith.constant 0 : index
    %c2 = arith.constant 2 : index
    %22 = vector.load %arg6[%c0_14, %c2] : memref<8x256xbf16, #tpu.memory_space<vmem>>, vector<8x128xbf16>
    %c0_15 = arith.constant 0 : index
    %c3 = arith.constant 3 : index
    %23 = vector.load %arg6[%c0_15, %c3] : memref<8x256xbf16, #tpu.memory_space<vmem>>, vector<8x128xbf16>
    %c0_16 = arith.constant 0 : index
    %c4 = arith.constant 4 : index
    %24 = vector.load %arg6[%c0_16, %c4] : memref<8x256xbf16, #tpu.memory_space<vmem>>, vector<8x128xbf16>
    %c0_17 = arith.constant 0 : index
    %c5 = arith.constant 5 : index
    %25 = vector.load %arg6[%c0_17, %c5] : memref<8x256xbf16, #tpu.memory_space<vmem>>, vector<8x128xbf16>
    %c0_18 = arith.constant 0 : index
    %c6 = arith.constant 6 : index
    %26 = vector.load %arg6[%c0_18, %c6] : memref<8x256xbf16, #tpu.memory_space<vmem>>, vector<8x128xbf16>
    %cst_19 = arith.constant 1.000000e+00 : bf16
    %27 = vector.broadcast %cst_19 : bf16 to vector<1x128xbf16>
    %28 = tpu.concatenate %20, %21, %22, %23, %24, %25, %26, %27 in 0 : vector<8x128xbf16>, vector<8x128xbf16>, vector<8x128xbf16>, vector<8x128xbf16>, vector<8x128xbf16>, vector<8x128xbf16>, vector<8x128xbf16>, vector<1x128xbf16> -> vector<57x128xbf16>
    %c0_20 = arith.constant 0 : index
    %c0_21 = arith.constant 0 : index
    %29 = vector.load %arg4[%c0_20, %c0_21] : memref<4x57xbf16, #tpu.memory_space<vmem>>, vector<4x57xbf16>
    %cst_22 = arith.constant dense<0.000000e+00> : vector<4x128xf32>
    %30 = tpu.matmul %29, %28, %cst_22 {dimension_numbers = #tpu.dot_dimension_numbers<[1], [0], [0], [1], [0, 0, 1, 1], [], []>} : vector<4x57xbf16>, vector<57x128xbf16>, vector<4x128xf32> -> vector<4x128xf32>
    %31 = math.tanh %30 : vector<4x128xf32>
    %c0_23 = arith.constant 0 : index
    %c0_24 = arith.constant 0 : index
    %c0_25 = arith.constant 0 : index
    %32 = vector.load %arg5[%c0_23, %c0_24, %c0_25] : memref<1x4x128xf32, #tpu.memory_space<vmem>>, vector<1x4x128xf32>
    %33 = vector.shape_cast %32 : vector<1x4x128xf32> to vector<4x128xf32>
    %34 = vector.shape_cast %31 : vector<4x128xf32> to vector<1x4x128xf32>
    tpu.vector_store %arg5[%c0_23, %c0_24, %c0_25], %34 {strides = array<i32>} : memref<1x4x128xf32, #tpu.memory_space<vmem>>, vector<1x4x128xf32>,
    return
  }
  func.func @transform_0(%arg0: i32, %arg1: i32) -> (i32, i32, i32) {
    %c0_i32 = arith.constant 0 : i32
    %c0_i32_0 = arith.constant 0 : i32
    return %arg0, %c0_i32, %arg1 : i32, i32, i32
  }
  func.func @transform_1(%arg0: i32, %arg1: i32) -> (i32, i32, i32) {
    %c1_i32 = arith.constant 1 : i32
    %0 = arith.addi %arg1, %c1_i32 : i32
    %c1_i32_0 = arith.constant 1 : i32
    %1 = arith.muli %0, %c1_i32_0 : i32
    %c0_i32 = arith.constant 0 : i32
    %c0_i32_1 = arith.constant 0 : i32
    return %arg0, %c0_i32, %1 : i32, i32, i32
  }
  func.func @transform_2(%arg0: i32, %arg1: i32) -> (i32, i32) {
    %c0_i32 = arith.constant 0 : i32
    %c0_i32_0 = arith.constant 0 : i32
    %c0_i32_1 = arith.constant 0 : i32
    return %c0_i32, %c0_i32_0 : i32, i32
  }
  func.func @transform_3(%arg0: i32, %arg1: i32) -> (i32, i32, i32) {
    %c0_i32 = arith.constant 0 : i32
    %c0_i32_0 = arith.constant 0 : i32
    return %arg0, %c0_i32, %arg1 : i32, i32, i32
  }
}

</mosaic_0001>

<bundles_post_ra>
// kernel: tile.2
= control target key start
LH: loop header
LB: loop body
LE: loop exit
PB: predicated region body
PF: predicated region fallthrough
CT: control target
= control target key end

     0   :  { %s171_s8 = smov 125   ;;  %s172_s9 = smov 126   ;;  %vm19_vm0 = vcmask 7168   ;;  %s220_s0 = inlined_call_operand.vmem [shape: bf16[2,16], index: 0, kind: input, shape index: {}]   ;;  %s221_s1 = inlined_call_operand.vmem [shape: bf16[32,1], index: 1, kind: output, shape index: {}]  }
   0x1   :  { %v14_v0 = vld [vmem:[%s220_s0] sm:$0x1]  ;;  %s170_s0 = smov 127   ;;  %s173_s10 = smov 124  }
   0x2   :  { %v15_v1 = vunpack.c.l.bf16 %v14_v0  ;;  %s174_s11 = smov 123   ;;  %s175_s12 = smov 122  }
   0x3   :  { %s176_s13 = smov 121   ;;  %s177_s14 = smov 120  }
   0x4   :  { %17 = vst [vmem:[#allocation1] sm:$0x3] %v15_v1  ;;  %s178_s15 = smov 119   ;;  %s179_s16 = smov 118  }
   0x5   :  { %s180_s17 = smov 117   ;;  %s181_s18 = smov 116  }
   0x6   :  { %s182_s19 = smov 115   ;;  %s183_s20 = smov 114  }
   0x7   :  { %s184_s21 = smov 113  }
   0xb   :  { %v21_v2 = vld [vmem:[#allocation1] sm:$0x3]  }
   0xc   :  { %v33_v3 = vld [vmem:[#allocation1] sm:$0x3]   ;;  %22 = vrot.lane.b32.xlu0 %v21_v2, %s170_s0 }
   0xd   :  { %34 = vrot.lane.b32.xlu1 %v33_v3, %s171_s8  ;;  %v27_v4 = vld [vmem:[#allocation1] sm:$0x3]  }
   0xe   :  { %v39_v5 = vld [vmem:[#allocation1] sm:$0x3]  }
   0xf   :  { %v18_v6 = vld [vmem:[#allocation1] sm:$0x3]  }
  0x10   :  { %28 = vrot.lane.b32.xlu0 %v27_v4, %s172_s9  ;;  %v45_v7 = vld [vmem:[#allocation1] sm:$0x3]   ;;  %20 = vst.msk [vmem:[#allocation0] ss:$16 sm:$0x3] %vm19_vm0, %v18_v6  }
  0x11   :  { %40 = vrot.lane.b32.xlu1 %v39_v5, %s173_s10  ;;  %v51_v8 = vld [vmem:[#allocation1] sm:$0x3]  }
  0x12   :  { %v57_v9 = vld [vmem:[#allocation1] sm:$0x3]  }
  0x13   :  { %v63_v10 = vld [vmem:[#allocation1] sm:$0x3]  }
  0x14   :  { %46 = vrot.lane.b32.xlu0 %v45_v7, %s174_s11  ;;  %v69_v11 = vld [vmem:[#allocation1] sm:$0x3]  }
  0x15   :  { %52 = vrot.lane.b32.xlu1 %v51_v8, %s175_s12  ;;  %v75_v12 = vld [vmem:[#allocation1] sm:$0x3]  }
  0x16   :  { %v81_v13 = vld [vmem:[#allocation1] sm:$0x3]  }
  0x17   :  { %v87_v14 = vld [vmem:[#allocation1] sm:$0x3]  }
  0x18   :  { %58 = vrot.lane.b32.xlu0 %v57_v9, %s176_s13  ;;  %v93_v15 = vld [vmem:[#allocation1] sm:$0x3]  }
  0x19   :  { %64 = vrot.lane.b32.xlu1 %v63_v10, %s177_s14  ;;  %v99_v16 = vld [vmem:[#allocation1] sm:$0x3]  }
  0x1a   :  { %v105_v17 = vld [vmem:[#allocation1] sm:$0x3]  }
  0x1c   :  { %70 = vrot.lane.b32.xlu0 %v69_v11, %s178_s15 }
  0x1d   :  { %76 = vrot.lane.b32.xlu1 %v75_v12, %s179_s16 }
  0x20   :  { %82 = vrot.lane.b32.xlu0 %v81_v13, %s180_s17 }
  0x21   :  { %88 = vrot.lane.b32.xlu1 %v87_v14, %s181_s18 }
  0x24   :  { %94 = vrot.lane.b32.xlu0 %v93_v15, %s182_s19 }
  0x25   :  { %100 = vrot.lane.b32.xlu1 %v99_v16, %s183_s20 }
  0x28   :  { %106 = vrot.lane.b32.xlu0 %v105_v17, %s184_s21 }
  0x7e   :  { %v23_v18 = vpop.permute.xlu0 %22  }
  0x7f   :  { %v35_v19 = vpop.permute.xlu1 %34   ;;  %26 = vst.msk [vmem:[#allocation0 + $0x1] ss:$16 sm:$0x3] %vm19_vm0, %v23_v18  }
  0x80   :  { %38 = vst.msk [vmem:[#allocation0 + $0x3] ss:$16 sm:$0x3] %vm19_vm0, %v35_v19  }
  0x82   :  { %v29_v20 = vpop.permute.xlu0 %28  }
  0x83   :  { %v41_v21 = vpop.permute.xlu1 %40   ;;  %32 = vst.msk [vmem:[#allocation0 + $0x2] ss:$16 sm:$0x3] %vm19_vm0, %v29_v20  }
  0x84   :  { %44 = vst.msk [vmem:[#allocation0 + $0x4] ss:$16 sm:$0x3] %vm19_vm0, %v41_v21  }
  0x86   :  { %v47_v22 = vpop.permute.xlu0 %46  }
  0x87   :  { %v53_v23 = vpop.permute.xlu1 %52   ;;  %50 = vst.msk [vmem:[#allocation0 + $0x5] ss:$16 sm:$0x3] %vm19_vm0, %v47_v22  }
  0x88   :  { %56 = vst.msk [vmem:[#allocation0 + $0x6] ss:$16 sm:$0x3] %vm19_vm0, %v53_v23  }
  0x8a   :  { %v59_v24 = vpop.permute.xlu0 %58  }
  0x8b   :  { %v65_v25 = vpop.permute.xlu1 %64   ;;  %62 = vst.msk [vmem:[#allocation0 + $0x7] ss:$16 sm:$0x3] %vm19_vm0, %v59_v24  }
  0x8c   :  { %68 = vst.msk [vmem:[#allocation0 + $0x8] ss:$16 sm:$0x3] %vm19_vm0, %v65_v25  }
  0x8e   :  { %v71_v26 = vpop.permute.xlu0 %70  }
  0x8f   :  { %v77_v27 = vpop.permute.xlu1 %76   ;;  %74 = vst.msk [vmem:[#allocation0 + $0x9] ss:$16 sm:$0x3] %vm19_vm0, %v71_v26  }
  0x90   :  { %80 = vst.msk [vmem:[#allocation0 + $0xa] ss:$16 sm:$0x3] %vm19_vm0, %v77_v27  }
  0x92   :  { %v83_v28 = vpop.permute.xlu0 %82   ;;  %v115_v33 = vld [vmem:[#allocation0] sm:$0xff]  ;;  %v126_v34 = vld [vmem:[#allocation0 + $0x10] sm:$0xff] }
  0x93   :  { %v89_v29 = vpop.permute.xlu1 %88   ;;  %86 = vst.msk [vmem:[#allocation0 + $0xb] ss:$16 sm:$0x3] %vm19_vm0, %v83_v28  }
  0x94   :  { %92 = vst.msk [vmem:[#allocation0 + $0xc] ss:$16 sm:$0x3] %vm19_vm0, %v89_v29  }
  0x96   :  { %v95_v30 = vpop.permute.xlu0 %94  }
  0x97   :  { %v101_v31 = vpop.permute.xlu1 %100   ;;  %98 = vst.msk [vmem:[#allocation0 + $0xd] ss:$16 sm:$0x3] %vm19_vm0, %v95_v30  }
  0x98   :  { %104 = vst.msk [vmem:[#allocation0 + $0xe] ss:$16 sm:$0x3] %vm19_vm0, %v101_v31  }
  0x9a   :  { %v107_v32 = vpop.permute.xlu0 %106  }
  0x9b   :  { %110 = vst.msk [vmem:[#allocation0 + $0xf] ss:$16 sm:$0x3] %vm19_vm0, %v107_v32  }
  0xa2   :  { %v120_v35 = vld [vmem:[#allocation0 + $0x8] sm:$0xff]  ;;  %v133_v36 = vld [vmem:[#allocation0 + $0x18] sm:$0xff] }
  0xa3   :  { %v147_v37 = vpack.c.bf16 %v120_v35, %v115_v33  ;;  %v152_v38 = vpack.c.bf16 %v133_v36, %v126_v34 }
  0xa5   :  { %148 = vst [vmem:[%s221_s1] sm:$0xff] %v147_v37   ;;  %154 = vst [vmem:[%s221_s1 + $0x8] sm:$0xff] %v152_v38  }

// kernel: generator2_forward.29
= control target key start
LH: loop header
LB: loop body
LE: loop exit
PB: predicated region body
PF: predicated region fallthrough
CT: control target
= control target key end

     0   :  { %s1223_s12 = smov 0   ;;  %s1225_s13 = smov 0   ;;  %s1497_s0 = inlined_call_operand.vmem [shape: f32[2,80,256], index: 0, kind: input, shape index: {}, may-alias: {0,1}]   ;;  %s1498_s1 = inlined_call_operand.vmem [shape: f32[2,80,256], index: 1, kind: input, shape index: {}, may-alias: {0,1}]   ;;  %s1499_s2 = inlined_call_operand.vmem [shape: bf16[32,561], index: 2, kind: input, shape index: {}]   ;;  %s1500_s3 = inlined_call_operand.vmem [shape: bf16[2,32,128], index: 3, kind: output, shape index: {}]  }
   0x1   :  { %s1227_s14 = smov 0   ;;  %s1229_s15 = smov 0  }
   0x2   :  { %s1231_s16 = smov 0  }
   0x3 LB: > { %s25_s17 = sadd.s32 1, %s1190_s15  ;;  %p41_p1 = scmp.ne.s32.totalorder %s1182_s13, %s1178_s12  ;;  %s1194_s16 = sphi %s1231_s16, %s13_s16   ;;  %s1190_s15 = sphi %s1229_s15, %s1505_s15   ;;  %s1186_s14 = sphi %s1227_s14, %s1504_s14   ;;  %s1182_s13 = sphi %s1225_s13, %s1503_s13   ;;  %s1178_s12 = sphi %s1223_s12, %s1502_s12  }
   0x4   : > { %p27_p0 = scmp.ge.s32.totalorder %s25_s17, 2  ;;  %p42_p2 = scmp.eq.s32.totalorder %s1194_s16, 0 }
   0x5   : > { %s34_s20 = sadd.s32 1, %s1182_s13  ;;  %p967_p5 = scmp.ge.s32.totalorder %s1194_s16, 2 }
   0x6   : > { %s1507_s17 = smov (%p27_p0, %s25_s17), 0  ;;  %p1254_p3 = por %p42_p2, %p41_p1 }
   0x7   : > { %s29_s19 = ssub.s32 %s1190_s15, %s1507_s17  ;;  %149 = sbr.rel (%p967_p5) target bundleno = 34 (0x22), region = 20 }
   0x8   : > { %p32_p4 = scmp.eq.s32.totalorder %s29_s19, 0 }
   0xa   : > { %s1262_s21 = scalar_select %p32_p4, %s1182_s13, %s34_s20  }
   0xe   : > { %152 = sbr.rel (!%p1254_p3) target bundleno = 24 (0x18), region = 24  ;;  %s154_s22 = sand.u32 (%p1254_p3), 1, %s1182_s13  }
   0xf   : > { %s1092_s23 = smul.u32 (%p1254_p3), 160, %s1190_s15 }
  0x10   : > { %s1091_s24 = smul.u32 (%p1254_p3), 80, %s154_s22 }
  0x11   : > { %s160_s27 = scalar_lea.vmem (%p1254_p3), %s1497_s0, %s1092_s23 }
  0x12   : > { %v206_v0 = vld [vmem:[%s160_s27] sm:$0xff] (%p1254_p3)  ;;  %v208_v1 = vld [vmem:[%s160_s27 + $0x10] sm:$0xff] (%p1254_p3)  ;;  %s156_s28 = scalar_lea.vmem (%p1254_p3), [#allocation3], %s1091_s24 }
  0x13   : > { %v210_v2 = vld [vmem:[%s160_s27 + $0x20] sm:$0xff] (%p1254_p3)  ;;  %207 = vst [vmem:[%s156_s28] sm:$0xff] (%p1254_p3), %v206_v0  ;;  %209 = vst [vmem:[%s156_s28 + $0x8] sm:$0xff] (%p1254_p3), %v208_v1  ;;  %v212_v3 = vld [vmem:[%s160_s27 + $0x30] sm:$0xff] (%p1254_p3) }
  0x14   : > { %211 = vst [vmem:[%s156_s28 + $0x10] sm:$0xff] (%p1254_p3), %v210_v2  ;;  %v214_v4 = vld [vmem:[%s160_s27 + $0x40] sm:$0xff] (%p1254_p3)  ;;  %v216_v5 = vld [vmem:[%s160_s27 + $0x50] sm:$0xff] (%p1254_p3)  ;;  %213 = vst [vmem:[%s156_s28 + $0x18] sm:$0xff] (%p1254_p3), %v212_v3 }
  0x15   : > { %215 = vst [vmem:[%s156_s28 + $0x20] sm:$0xff] %v214_v4  ;;  %217 = vst [vmem:[%s156_s28 + $0x28] sm:$0xff] %v216_v5  ;;  %v218_v6 = vld [vmem:[%s160_s27 + $0x60] sm:$0xff]  ;;  %v220_v7 = vld [vmem:[%s160_s27 + $0x70] sm:$0xff] }
  0x16   : > { %v222_v8 = vld [vmem:[%s160_s27 + $0x80] sm:$0xff]  ;;  %219 = vst [vmem:[%s156_s28 + $0x30] sm:$0xff] %v218_v6  ;;  %221 = vst [vmem:[%s156_s28 + $0x38] sm:$0xff] %v220_v7  ;;  %v224_v9 = vld [vmem:[%s160_s27 + $0x90] sm:$0xff] }
  0x17   : > { %223 = vst [vmem:[%s156_s28 + $0x40] sm:$0xff] %v222_v8  ;;  %225 = vst [vmem:[%s156_s28 + $0x48] sm:$0xff] %v224_v9 }
  0x18 PF: > { %231 = sbr.rel (!%p1254_p3) target bundleno = 34 (0x22), region = 62  ;;  %s233_s29 = sand.u32 (%p1254_p3), 1, %s1182_s13  }
  0x19   : > { %s969_s30 = smul.u32 (%p1254_p3), 160, %s1190_s15 }
  0x1a   : > { %s1093_s4 = smul.u32 (%p1254_p3), 80, %s233_s29 }
  0x1b   : > { %s896_s7 = scalar_lea.vmem (%p1254_p3), %s1498_s1, %s969_s30 }
  0x1c   : > { %v970_v10 = vld [vmem:[%s896_s7 + $0x8] sm:$0xff] (%p1254_p3)  ;;  %v971_v11 = vld [vmem:[%s896_s7 + $0x18] sm:$0xff] (%p1254_p3)  ;;  %s235_s8 = scalar_lea.vmem (%p1254_p3), [#allocation4], %s1093_s4 }
  0x1d   : > { %v972_v12 = vld [vmem:[%s896_s7 + $0x28] sm:$0xff] (%p1254_p3)  ;;  %287 = vst [vmem:[%s235_s8] sm:$0xff] (%p1254_p3), %v970_v10  ;;  %289 = vst [vmem:[%s235_s8 + $0x8] sm:$0xff] (%p1254_p3), %v971_v11  ;;  %v973_v13 = vld [vmem:[%s896_s7 + $0x38] sm:$0xff] (%p1254_p3) }
  0x1e   : > { %291 = vst [vmem:[%s235_s8 + $0x10] sm:$0xff] (%p1254_p3), %v972_v12  ;;  %v974_v14 = vld [vmem:[%s896_s7 + $0x48] sm:$0xff] (%p1254_p3)  ;;  %v975_v15 = vld [vmem:[%s896_s7 + $0x58] sm:$0xff] (%p1254_p3)  ;;  %293 = vst [vmem:[%s235_s8 + $0x18] sm:$0xff] (%p1254_p3), %v973_v13 }
  0x1f   : > { %295 = vst [vmem:[%s235_s8 + $0x20] sm:$0xff] %v974_v14  ;;  %297 = vst [vmem:[%s235_s8 + $0x28] sm:$0xff] %v975_v15  ;;  %v976_v16 = vld [vmem:[%s896_s7 + $0x68] sm:$0xff]  ;;  %v977_v17 = vld [vmem:[%s896_s7 + $0x78] sm:$0xff] }
  0x20   : > { %v978_v18 = vld [vmem:[%s896_s7 + $0x88] sm:$0xff]  ;;  %299 = vst [vmem:[%s235_s8 + $0x30] sm:$0xff] %v976_v16  ;;  %301 = vst [vmem:[%s235_s8 + $0x38] sm:$0xff] %v977_v17  ;;  %v979_v19 = vld [vmem:[%s896_s7 + $0x98] sm:$0xff] }
  0x21   : > { %303 = vst [vmem:[%s235_s8 + $0x40] sm:$0xff] %v978_v18  ;;  %305 = vst [vmem:[%s235_s8 + $0x48] sm:$0xff] %v979_v19 }
  0x22 PF: > { %p980_p6 = scmp.ge.s32.totalorder %s1194_s16, 1  ;;  %p310_p7 = scmp.lt.s32.totalorder %s1194_s16, 3 }
  0x24   : > { %p311_p8 = pnand %p980_p6, %p310_p7 }
  0x25   : > { %s317_s9 = sand.u32 (!%p311_p8), 1, %s1178_s12   ;;  %s1196_s12 = smov (!%p311_p8), 127   ;;  %v1144_v50 = vld [vmem:[%s1499_s2 + $0x4] ss:$20 sps:$4 sm:$0xff] (!%p311_p8)   ;;  %v1147_v51 = vld [vmem:[%s1499_s2 + $0xc] ss:$20 sps:$4 sm:$0xff] (!%p311_p8)  }
  0x26   : > { %314 = sbr.rel (%p311_p8) target bundleno = 506 (0x1fa), region = 100  ;;  %s1197_s19 = smov (!%p311_p8), 124   ;;  %723 = vmatprep.mubr.bf16.mxu0 (!%p311_p8), %v1144_v50  ;;  %772 = vmatprep.mubr.bf16.mxu1 (!%p311_p8), %v1147_v51  ;;  %vm450_vm0 = vcmask (!%p311_p8), 1039360   ;;  %vm543_vm1 = vcmask (!%p311_p8), 1014784   ;;  %vm512_vm2 = vcmask (!%p311_p8), 1022976   ;;  %vm481_vm3 = vcmask (!%p311_p8), 1031168  }
  0x27   : > { %s1094_s10 = smul.u32 (!%p311_p8), 80, %s317_s9  ;;  %s1198_s20 = smov (!%p311_p8), 125   ;;  %vm574_vm4 = vcmask (!%p311_p8), 1006592   ;;  %vm605_vm5 = vcmask (!%p311_p8), 998400   ;;  %vm678_vm6 = vcmask (!%p311_p8), 400384   ;;  %vm685_vm7 = vcmask (!%p311_p8), 1040384  }
  0x28   : > { %s1199_s22 = smov (!%p311_p8), 126   ;;  %s1200_s23 = smov (!%p311_p8), 123  }
  0x29   : > { %s1282_s11 = scalar_lea.vmem (!%p311_p8), [#allocation3], %s1094_s10  ;;  %s1290_s18 = scalar_lea.vmem (!%p311_p8), [#allocation4], %s1094_s10 }
  0x2a   : > { %v373_v20 = vld [vmem:[%s1282_s11 + $0x40] sm:$0xff] (!%p311_p8)  ;;  %v374_v21 = vld [vmem:[%s1282_s11 + $0x48] sm:$0xff] (!%p311_p8)  ;;  %v371_v22 = vld [vmem:[%s1282_s11 + $0x30] sm:$0xff] (!%p311_p8)  ;;  %s1201_s24 = smov (!%p311_p8), 122   ;;  %p355_p9 = scmp.lt.s32.totalorder (!%p311_p8), %s1186_s14, 1 }
  0x2b   : > { %v1287_v23 = vpack.c.bf16 (!%p311_p8), %v374_v21, %v373_v20  ;;  %v372_v24 = vld [vmem:[%s1282_s11 + $0x38] sm:$0xff] (!%p311_p8)  ;;  %v383_v25 = vld [vmem:[%s1290_s18 + $0x40] sm:$0xff] (!%p311_p8)  ;;  %v384_v26 = vld [vmem:[%s1290_s18 + $0x48] sm:$0xff] (!%p311_p8) }
  0x2c   : > { %v1294_v27 = vpack.c.bf16 (!%p311_p8), %v372_v24, %v371_v22  ;;  %v381_v28 = vld [vmem:[%s1290_s18 + $0x30] sm:$0xff] (!%p311_p8)  ;;  %v382_v29 = vld [vmem:[%s1290_s18 + $0x38] sm:$0xff] (!%p311_p8)  ;;  %v1300_v30 = vpack.c.bf16 (!%p311_p8), %v384_v26, %v383_v25  ;;  %v375_v38 = vld [vmem:[%s1290_s18] sm:$0xff] (!%p311_p8) }
  0x2d   : > { %446 = vrot.lane.b32.xlu1 %v1287_v23, %s1196_s12  ;;  %v1304_v31 = vpack.c.bf16 %v382_v29, %v381_v28  ;;  %v377_v32 = vld [vmem:[%s1290_s18 + $0x10] sm:$0xff]  ;;  %v378_v33 = vld [vmem:[%s1290_s18 + $0x18] sm:$0xff]  ;;  %v376_v39 = vld [vmem:[%s1290_s18 + $0x8] sm:$0xff]  ;;  %s1509_s14 = smov (!%p355_p9, %s1186_s14), 1 }
  0x2e   : > { %442 = vrot.lane.b32.xlu0 %v1294_v27, %s1196_s12  ;;  %v367_v34 = vld [vmem:[%s1282_s11 + $0x10] sm:$0xff]  ;;  %v368_v35 = vld [vmem:[%s1282_s11 + $0x18] sm:$0xff]  ;;  %v1316_v36 = vpack.c.bf16 %v378_v33, %v377_v32  ;;  %v365_v40 = vld [vmem:[%s1282_s11] sm:$0xff]  ;;  %v395_v42 = vpack.c.bf16 %v376_v39, %v375_v38 }
  0x2f   : > { %v1320_v37 = vpack.c.bf16 %v368_v35, %v367_v34  ;;  %v366_v41 = vld [vmem:[%s1282_s11 + $0x8] sm:$0xff]  ;;  %v379_v44 = vld [vmem:[%s1290_s18 + $0x20] sm:$0xff] }
  0x30   : > { %v1330_v43 = vpack.c.bf16 %v366_v41, %v365_v40  ;;  %v380_v45 = vld [vmem:[%s1290_s18 + $0x28] sm:$0xff]  ;;  %v369_v46 = vld [vmem:[%s1282_s11 + $0x20] sm:$0xff] }
  0x31   : > { %448 = vrot.lane.b32.xlu1 %v1300_v30, %s1196_s12  ;;  %v370_v47 = vld [vmem:[%s1282_s11 + $0x28] sm:$0xff]  ;;  %v397_v48 = vpack.c.bf16 %v380_v45, %v379_v44 }
  0x32   : > { %444 = vrot.lane.b32.xlu0 %v1304_v31, %s1196_s12  ;;  %v1340_v49 = vpack.c.bf16 %v370_v47, %v369_v46 }
  0x35   : > { %541 = vrot.lane.b32.xlu1 %v1300_v30, %s1197_s19 }
  0x36   : > { %539 = vrot.lane.b32.xlu0 %v1287_v23, %s1197_s19 }
  0x39   : > { %498 = vrot.lane.b32.xlu1 %v1316_v36, %s1198_s20 }
  0x3a   : > { %496 = vrot.lane.b32.xlu0 %v1320_v37, %s1198_s20 }
  0x3d   : > { %463 = vrot.lane.b32.xlu1 %v395_v42, %s1199_s22 }
  0x3e   : > { %461 = vrot.lane.b32.xlu0 %v1330_v43, %s1199_s22 }
  0x41   : > { %556 = vrot.lane.b32.xlu1 %v395_v42, %s1200_s23 }
  0x42   : > { %554 = vrot.lane.b32.xlu0 %v1330_v43, %s1200_s23 }
  0x45   : > { %502 = vrot.lane.b32.xlu1 %v397_v48, %s1198_s20 }
  0x46   : > { %500 = vrot.lane.b32.xlu0 %v1340_v49, %s1198_s20 }
  0x49   : > { %467 = vrot.lane.b32.xlu1 %v1316_v36, %s1199_s22 }
  0x4a   : > { %465 = vrot.lane.b32.xlu0 %v1320_v37, %s1199_s22 }
  0x4d   : > { %560 = vrot.lane.b32.xlu1 %v1316_v36, %s1200_s23 }
  0x4e   : > { %558 = vrot.lane.b32.xlu0 %v1320_v37, %s1200_s23 }
  0x51   : > { %506 = vrot.lane.b32.xlu1 %v1304_v31, %s1198_s20 }
  0x52   : > { %504 = vrot.lane.b32.xlu0 %v1294_v27, %s1198_s20 }
  0x55   : > { %471 = vrot.lane.b32.xlu1 %v397_v48, %s1199_s22 }
  0x56   : > { %469 = vrot.lane.b32.xlu0 %v1340_v49, %s1199_s22 }
  0x59   : > { %564 = vrot.lane.b32.xlu1 %v397_v48, %s1200_s23 }
  0x5a   : > { %562 = vrot.lane.b32.xlu0 %v1340_v49, %s1200_s23 }
  0x5d   : > { %510 = vrot.lane.b32.xlu1 %v1300_v30, %s1198_s20 }
  0x5e   : > { %508 = vrot.lane.b32.xlu0 %v1287_v23, %s1198_s20 }
  0x61   : > { %475 = vrot.lane.b32.xlu1 %v1304_v31, %s1199_s22 }
  0x62   : > { %473 = vrot.lane.b32.xlu0 %v1294_v27, %s1199_s22 }
  0x65   : > { %568 = vrot.lane.b32.xlu1 %v1304_v31, %s1200_s23 }
  0x66   : > { %566 = vrot.lane.b32.xlu0 %v1294_v27, %s1200_s23 }
  0x69   : > { %432 = vrot.lane.b32.xlu1 %v395_v42, %s1196_s12 }
  0x6a   : > { %430 = vrot.lane.b32.xlu0 %v1330_v43, %s1196_s12 }
  0x6d   : > { %525 = vrot.lane.b32.xlu1 %v395_v42, %s1197_s19 }
  0x6e   : > { %523 = vrot.lane.b32.xlu0 %v1330_v43, %s1197_s19 }
  0x71   : > { %479 = vrot.lane.b32.xlu1 %v1300_v30, %s1199_s22 }
  0x72   : > { %477 = vrot.lane.b32.xlu0 %v1287_v23, %s1199_s22 }
  0x75   : > { %572 = vrot.lane.b32.xlu1 %v1300_v30, %s1200_s23 }
  0x76   : > { %570 = vrot.lane.b32.xlu0 %v1287_v23, %s1200_s23 }
  0x79   : > { %436 = vrot.lane.b32.xlu1 %v1316_v36, %s1196_s12 }
  0x7a   : > { %434 = vrot.lane.b32.xlu0 %v1320_v37, %s1196_s12 }
  0x7d   : > { %529 = vrot.lane.b32.xlu1 %v1316_v36, %s1197_s19 }
  0x7e   : > { %527 = vrot.lane.b32.xlu0 %v1320_v37, %s1197_s19 }
  0x81   : > { %494 = vrot.lane.b32.xlu1 %v395_v42, %s1198_s20 }
  0x82   : > { %492 = vrot.lane.b32.xlu0 %v1330_v43, %s1198_s20 }
  0x85   : > { %587 = vrot.lane.b32.xlu1 %v395_v42, %s1201_s24 }
  0x86   : > { %585 = vrot.lane.b32.xlu0 %v1330_v43, %s1201_s24 }
  0x89   : > { %440 = vrot.lane.b32.xlu1 %v397_v48, %s1196_s12 }
  0x8a   : > { %438 = vrot.lane.b32.xlu0 %v1340_v49, %s1196_s12 }
  0x8d   : > { %533 = vrot.lane.b32.xlu1 %v397_v48, %s1197_s19 }
  0x8e   : > { %531 = vrot.lane.b32.xlu0 %v1340_v49, %s1197_s19 }
  0x91   : > { %591 = vrot.lane.b32.xlu1 %v1316_v36, %s1201_s24 }
  0x92   : > { %589 = vrot.lane.b32.xlu0 %v1320_v37, %s1201_s24 }
  0x95   : > { %595 = vrot.lane.b32.xlu1 %v397_v48, %s1201_s24 }
  0x96   : > { %593 = vrot.lane.b32.xlu0 %v1340_v49, %s1201_s24 }
  0x99   : > { %537 = vrot.lane.b32.xlu1 %v1304_v31, %s1197_s19 }
  0x9a   : > { %535 = vrot.lane.b32.xlu0 %v1294_v27, %s1197_s19 }
  0x9d   : > { %599 = vrot.lane.b32.xlu1 %v1304_v31, %s1201_s24 }
  0x9e   : > { %597 = vrot.lane.b32.xlu0 %v1294_v27, %s1201_s24 }
  0x9f   : > { %v447_v52 = vpop.permute.xlu1 %446 }
  0xa0   : > { %v443_v53 = vpop.permute.xlu0 %442 }
  0xa1   : > { %603 = vrot.lane.b32.xlu1 %v1300_v30, %s1201_s24 }
  0xa2   : > { %601 = vrot.lane.b32.xlu0 %v1287_v23, %s1201_s24  ;;  %s1001_s24 = sshll.u32 %s1509_s14, 4 }
  0xa3   : > { %v449_v54 = vpop.permute.xlu1 %448  ;;  %s362_s27 = scalar_lea.vmem %s1500_s3, %s1001_s24 }
  0xa4   : > { %v445_v55 = vpop.permute.xlu0 %444  ;;  %v455_v58 = vsel %vm450_vm0, %v447_v52, %v449_v54 }
  0xa5   : > { %v454_v56 = vsel %vm450_vm0, %v443_v53, %v445_v55 }
  0xa6   : > { %1017 = vmatprep.subr.bf16.mxu0 %v454_v56 }
  0xa7   : > { %1018 = vmatpush3.bf16.msra.mxu0 %v1330_v43  ;;  %v542_v57 = vpop.permute.xlu1 %541 }
  0xa8   : > { %v540_v59 = vpop.permute.xlu0 %539  ;;  %1019 = vmatprep.subr.bf16.mxu0 %v455_v58 }
  0xa9   : > { %v548_v60 = vsel %vm543_vm1, %v540_v59, %v542_v57 }
  0xaa   : > { %1045 = vmatprep.subr.bf16.mxu1 %v548_v60  ;;  %v1142_v60 = vld [vmem:[%s1499_s2] ss:$20 sps:$4 sm:$0xff]  }
  0xab   : > { %v499_v61 = vpop.permute.xlu1 %498  ;;  %1020 = vmatpush3.bf16.msra.mxu0 %v1320_v37 }
  0xac   : > { %v497_v62 = vpop.permute.xlu0 %496 }
  0xad   : > { %v514_v63 = vsel %vm512_vm2, %v497_v62, %v499_v61  ;;  %v1148_v61 = vld [vmem:[%s1499_s2 + $0x2c] ss:$20 sps:$4 sm:$0xff]  }
  0xae   : > { %1046 = vmatpush3.bf16.msra.mxu1 %v514_v63 }
  0xaf   : > { %v464_v0 = vpop.permute.xlu1 %463 }
  0xb0   : > { %v462_v1 = vpop.permute.xlu0 %461 }
  0xb1   : > { %v482_v2 = vsel %vm481_vm3, %v462_v1, %v464_v0 }
  0xb2   : > { %1021 = vmatprep.subr.bf16.mxu0 %v482_v2 }
  0xb3   : > { %v557_v3 = vpop.permute.xlu1 %556  ;;  %1022 = vmatpush3.bf16.msra.mxu0 %v1340_v49 }
  0xb4   : > { %v555_v4 = vpop.permute.xlu0 %554 }
  0xb5   : > { %v575_v5 = vsel %vm574_vm4, %v555_v4, %v557_v3  ;;  %v1150_v4 = vld [vmem:[%s1499_s2 + $0x28] ss:$20 sps:$4 sm:$0xff]  }
  0xb6   : > { %1047 = vmatprep.subr.bf16.mxu1 %v575_v5  ;;  %v1154_v5 = vld [vmem:[%s1499_s2 + $0x10] ss:$20 sps:$4 sm:$0xff]  }
  0xb7   : > { %v503_v6 = vpop.permute.xlu1 %502 }
  0xb8   : > { %v501_v7 = vpop.permute.xlu0 %500 }
  0xb9   : > { %v515_v8 = vsel %vm512_vm2, %v501_v7, %v503_v6 }
  0xba   : > { %1048 = vmatpush3.bf16.msra.mxu1 %v515_v8 }
  0xbb   : > { %v468_v9 = vpop.permute.xlu1 %467 }
  0xbc   : > { %v466_v10 = vpop.permute.xlu0 %465 }
  0xbd   : > { %v483_v11 = vsel %vm481_vm3, %v466_v10, %v468_v9 }
  0xbe   : > { %1023 = vmatprep.subr.bf16.mxu0 %v483_v11 }
  0xbf   : > { %v561_v12 = vpop.permute.xlu1 %560  ;;  %1024 = vmatpush3.bf16.msra.mxu0 %v1294_v27 }
  0xc0   : > { %v559_v13 = vpop.permute.xlu0 %558 }
  0xc1   : > { %v576_v14 = vsel %vm574_vm4, %v559_v13, %v561_v12  ;;  %v1145_v12 = vld [vmem:[%s1499_s2 + $0x8] ss:$20 sps:$4 sm:$0xff]  }
  0xc2   : > { %1049 = vmatprep.subr.bf16.mxu1 %v576_v14  ;;  %v1151_v13 = vld [vmem:[%s1499_s2 + $0x34] ss:$20 sps:$4 sm:$0xff]  }
  0xc3   : > { %v507_v15 = vpop.permute.xlu1 %506 }
  0xc4   : > { %v505_v16 = vpop.permute.xlu0 %504 }
  0xc5   : > { %v516_v17 = vsel %vm512_vm2, %v505_v16, %v507_v15 }
  0xc6   : > { %1050 = vmatpush3.bf16.msra.mxu1 %v516_v17  ;;  %v1202_v17 = vmov 0  }
  0xc7   : > { %v472_v18 = vpop.permute.xlu1 %471 }
  0xc8   : > { %v470_v19 = vpop.permute.xlu0 %469 }
  0xc9   : > { %v484_v20 = vsel %vm481_vm3, %v470_v19, %v472_v18  ;;  %v687_v18 = vsel %vm685_vm7, 65535, %v1202_v17 }
  0xca   : > { %1025 = vmatprep.subr.bf16.mxu0 %v484_v20 }
  0xcb   : > { %v565_v21 = vpop.permute.xlu1 %564  ;;  %1026 = vmatpush3.bf16.msra.mxu0 %v1287_v23 }
  0xcc   : > { %v563_v22 = vpop.permute.xlu0 %562 }
  0xcd   : > { %v577_v24 = vsel %vm574_vm4, %v563_v22, %v565_v21  ;;  %v689_v21 = vand.u32 1065369472, %v687_v18 }
  0xce   : > { %1051 = vmatprep.subr.bf16.mxu1 %v577_v24  ;;  %v1153_v24 = vld [vmem:[%s1499_s2 + $0x30] ss:$20 sps:$4 sm:$0xff]  }
  0xcf   : > { %v511_v25 = vpop.permute.xlu1 %510 }
  0xd0   : > { %v509_v26 = vpop.permute.xlu0 %508 }
  0xd1   : > { %v517_v27 = vsel %vm512_vm2, %v509_v26, %v511_v25  ;;  %v1155_v25 = vld [vmem:[%s1499_s2 + $0x38] ss:$20 sps:$4 sm:$0xff]  }
  0xd2   : > { %1052 = vmatpush3.bf16.msra.mxu1 %v517_v27 }
  0xd3   : > { %v476_v28 = vpop.permute.xlu1 %475 }
  0xd4   : > { %v474_v29 = vpop.permute.xlu0 %473 }
  0xd5   : > { %v485_v30 = vsel %vm481_vm3, %v474_v29, %v476_v28 }
  0xd6   : > { %1027 = vmatprep.subr.bf16.mxu0 %v485_v30 }
  0xd7   : > { %v569_v31 = vpop.permute.xlu1 %568 }
  0xd8   : > { %v567_v32 = vpop.permute.xlu0 %566 }
  0xd9   : > { %v578_v33 = vsel %vm574_vm4, %v567_v32, %v569_v31 }
  0xda   : > { %1053 = vmatprep.subr.bf16.mxu1 %v578_v33 }
  0xdb   : > { %v433_v23 = vpop.permute.xlu1 %432 }
  0xdc   : > { %v431_v34 = vpop.permute.xlu0 %430 }
  0xdd   : > { %v451_v35 = vsel %vm450_vm0, %v431_v34, %v433_v23 }
  0xde   : > { %1028 = vmatpush3.bf16.msra.mxu0 %v451_v35 }
  0xdf   : > { %v526_v36 = vpop.permute.xlu1 %525 }
  0xe0   : > { %v524_v37 = vpop.permute.xlu0 %523 }
  0xe1   : > { %v544_v38 = vsel %vm543_vm1, %v524_v37, %v526_v36 }
  0xe2   : > { %1054 = vmatpush3.bf16.msra.mxu1 %v544_v38 }
  0xe3   : > { %v480_v39 = vpop.permute.xlu1 %479 }
  0xe4   : > { %v478_v40 = vpop.permute.xlu0 %477 }
  0xe5   : > { %v486_v41 = vsel %vm481_vm3, %v478_v40, %v480_v39 }
  0xe6   : > { %1029 = vmatprep.subr.bf16.mxu0 %v486_v41 }
  0xe7   : > { %v573_v42 = vpop.permute.xlu1 %572 }
  0xe8   : > { %v571_v43 = vpop.permute.xlu0 %570 }
  0xe9   : > { %v579_v44 = vsel %vm574_vm4, %v571_v43, %v573_v42 }
  0xea   : > { %1055 = vmatprep.subr.bf16.mxu1 %v579_v44 }
  0xeb   : > { %v437_v45 = vpop.permute.xlu1 %436 }
  0xec   : > { %v435_v46 = vpop.permute.xlu0 %434 }
  0xed   : > { %v452_v47 = vsel %vm450_vm0, %v435_v46, %v437_v45 }
  0xee   : > { %1030 = vmatpush3.bf16.msra.mxu0 %v452_v47 }
  0xef   : > { %v530_v48 = vpop.permute.xlu1 %529 }
  0xf0   : > { %v528_v49 = vpop.permute.xlu0 %527 }
  0xf1   : > { %v545_v50 = vsel %vm543_vm1, %v528_v49, %v530_v48 }
  0xf2   : > { %1056 = vmatpush3.bf16.msra.mxu1 %v545_v50 }
  0xf3   : > { %v495_v51 = vpop.permute.xlu1 %494 }
  0xf4   : > { %v493_v52 = vpop.permute.xlu0 %492 }
  0xf5   : > { %v513_v53 = vsel %vm512_vm2, %v493_v52, %v495_v51 }
  0xf6   : > { %1031 = vmatprep.subr.bf16.mxu0 %v513_v53 }
  0xf7   : > { %v588_v54 = vpop.permute.xlu1 %587 }
  0xf8   : > { %v586_v55 = vpop.permute.xlu0 %585 }
  0xf9   : > { %v606_v56 = vsel %vm605_vm5, %v586_v55, %v588_v54 }
  0xfa   : > { %1057 = vmatprep.subr.bf16.mxu1 %v606_v56 }
  0xfb   : > { %v441_v57 = vpop.permute.xlu1 %440 }
  0xfc   : > { %v439_v58 = vpop.permute.xlu0 %438 }
  0xfd   : > { %v453_v59 = vsel %vm450_vm0, %v439_v58, %v441_v57 }
  0xfe   : > { %1032 = vmatpush3.bf16.msra.mxu0 %v453_v59 }
  0xff   : > { %v534_v62 = vpop.permute.xlu1 %533 }
 0x100   : > { %v532_v63 = vpop.permute.xlu0 %531 }
 0x101   : > { %v546_v0 = vsel %vm543_vm1, %v532_v63, %v534_v62  ;;  %724 = vmatmul.mubr.bf16.vlgmr.msra.gmra.mrb[0].mxu0 %v1142_v60 }
 0x102   : > { %1058 = vmatpush3.bf16.msra.mxu1 %v546_v0  ;;  %731 = vmatprep.mubr.bf16.mxu0 %v1148_v61 }
 0x103   : > { %v592_v1 = vpop.permute.xlu1 %591 }
 0x104   : > { %v590_v2 = vpop.permute.xlu0 %589 }
 0x105   : > { %v607_v3 = vsel %vm605_vm5, %v590_v2, %v592_v1 }
 0x106   : > { %1059 = vmatprep.subr.bf16.mxu1 %v607_v3 }
 0x107   : > { %v596_v6 = vpop.permute.xlu1 %595 }
 0x108   : > { %v594_v7 = vpop.permute.xlu0 %593 }
 0x109   : > { %v608_v8 = vsel %vm605_vm5, %v594_v7, %v596_v6  ;;  %732 = vmatmul.mubr.bf16.gmra.mrb[4].mxu0 %v1150_v4 }
 0x10a   : > { %1079 = vmatprep.subr.bf16.mxu0 %v608_v8  ;;  %1087 = vmatprep.mubr.msk.bf16.mxu0 %vm678_vm6, %v1154_v5 }
 0x10b   : > { %1080 = vmatpush3.bf16.msra.mxu0 %v608_v8  ;;  %v538_v9 = vpop.permute.xlu1 %537 }
 0x10c   : > { %v536_v10 = vpop.permute.xlu0 %535 }
 0x10d   : > { %v547_v11 = vsel %vm543_vm1, %v536_v10, %v538_v9 }
 0x10e   : > { %1060 = vmatpush3.bf16.msra.mxu1 %v547_v11 }
 0x10f   : > { %v600_v14 = vpop.permute.xlu1 %599 }
 0x110   : > { %v598_v15 = vpop.permute.xlu0 %597 }
 0x111   : > { %773 = vmatmul.mubr.bf16.vlgmr.msra.gmra.mrb[0].mxu1 %v1145_v12  ;;  %v609_v16 = vsel %vm605_vm5, %v598_v15, %v600_v14 }
 0x112   : > { %1081 = vmatprep.subr.bf16.mxu0 %v609_v16  ;;  %780 = vmatprep.mubr.bf16.mxu1 %v1151_v13 }
 0x113   : > { %1082 = vmatpush3.bf16.msra.mxu0 %v609_v16  ;;  %v604_v19 = vpop.permute.xlu1 %603 }
 0x114   : > { %v602_v20 = vpop.permute.xlu0 %601 }
 0x115   : > { %v610_v22 = vsel %vm605_vm5, %v602_v20, %v604_v19 }
 0x116   : > { %1083 = vmatprep.subr.bf16.mxu0 %v610_v22 }
 0x117   : > { %1084 = vmatpush3.bf16.msra.mxu0 %v610_v22 }
 0x118   : > { %1085 = vmatprep.subr.bf16.mxu0 %v689_v21 }
 0x119   : > { %781 = vmatmul.mubr.bf16.gmra.mrb[4].mxu1 %v1153_v24 }
 0x11b   : > { %1086 = vmatpush3.bf16.msra.mxu0 %v689_v21 }
 0x11e   : > { %1088 = vmatmul.mubr.msk.bf16.vlgmr.msra.gmra.mrb[8].mxu0 %vm678_vm6, %v1155_v25 }
 0x1d4   : > { %v1033_v26 = vpop.f32.mrb[0].mxu0 }
 0x1d5   : > { %v1034_v27 = vpop.f32.mrb[1].mxu0 }
 0x1d6   : > { %v1035_v28 = vadd.f32 %v1034_v27, %v1033_v26  ;;  %v1036_v29 = vpop.f32.mrb[2].mxu0 }
 0x1d7   : > { %v1037_v30 = vpop.f32.mrb[3].mxu0 }
 0x1d8   : > { %v1038_v31 = vadd.f32 %v1037_v30, %v1036_v29 }
 0x1dc   : > { %v1039_v32 = vpop.f32.mrb[4].mxu0 }
 0x1dd   : > { %v1040_v33 = vpop.f32.mrb[5].mxu0 }
 0x1de   : > { %v1041_v23 = vadd.f32 %v1040_v33, %v1039_v32  ;;  %v1042_v34 = vpop.f32.mrb[6].mxu0 }
 0x1df   : > { %v1043_v35 = vpop.f32.mrb[7].mxu0 }
 0x1e0   : > { %v1044_v36 = vadd.f32 %v1043_v35, %v1042_v34 }
 0x1e4   : > { %v1061_v37 = vpop.f32.mrb[0].mxu1 }
 0x1e5   : > { %v1062_v38 = vpop.f32.mrb[1].mxu1 }
 0x1e6   : > { %v1063_v39 = vadd.f32 %v1062_v38, %v1061_v37  ;;  %v1064_v40 = vpop.f32.mrb[2].mxu1 }
 0x1e7   : > { %v1065_v41 = vpop.f32.mrb[3].mxu1 }
 0x1e8   : > { %v1066_v42 = vadd.f32 %v1065_v41, %v1064_v40  ;;  %v775_v43 = vadd.f32 %v1063_v39, %v1035_v28 }
 0x1ea   : > { %v778_v44 = vadd.f32 %v1066_v42, %v1038_v31 }
 0x1ec   : > { %v1067_v45 = vpop.f32.mrb[4].mxu1 }
 0x1ed   : > { %v1068_v46 = vpop.f32.mrb[5].mxu1 }
 0x1ee   : > { %v1069_v47 = vadd.f32 %v1068_v46, %v1067_v45  ;;  %v1070_v48 = vpop.f32.mrb[6].mxu1 }
 0x1ef   : > { %v1071_v49 = vpop.f32.mrb[7].mxu1 }
 0x1f0   : > { %v1072_v50 = vadd.f32 %v1071_v49, %v1070_v48  ;;  %v783_v51 = vadd.f32 %v1069_v47, %v1041_v23 }
 0x1f1   : > { %v1089_v52 = vpop.f32.mrb[8].mxu0 }
 0x1f2   : > { %v832_v53 = vadd.f32 %v1089_v52, %v783_v51  ;;  %v823_v54 = vpop.f32.mrb[9].mxu0  ;;  %v786_v55 = vadd.f32 %v1072_v50, %v1044_v36 }
 0x1f3   : > { %v824_v56 = vadd.f32 %v823_v54, %v775_v43  ;;  %v1090_v57 = vpop.f32.mrb[10].mxu0 }
 0x1f4   : > { %v835_v58 = vadd.f32 %v1090_v57, %v786_v55  ;;  %v826_v59 = vpop.f32.mrb[11].mxu0 }
 0x1f5   : > { %v827_v60 = vadd.f32 %v826_v59, %v778_v44 }
 0x1f6   : > { %v1014_v61 = vpack.c.bf16 %v835_v58, %v832_v53 }
 0x1f7   : > { %v1009_v62 = vpack.c.bf16 %v827_v60, %v824_v56 }
 0x1f8   : > { %1016 = vst [vmem:[%s362_s27 + $0x8] sm:$0xff] %v1014_v61  }
 0x1f9   : > { %1010 = vst [vmem:[%s362_s27] sm:$0xff] %v1009_v62  }
 0x1fa PF: > { %s13_s16 = sadd.s32 1, %s1194_s16   ;;  %s1502_s12 = smov %s1182_s13 }
 0x1fb   : > { %p10_p10 = scmp.ge.s32.totalorder %s13_s16, 4   ;;  %s1503_s13 = smov %s1262_s21 }
 0x1fc   : > { %s1504_s14 = smov %s1190_s15  ;;  %s1505_s15 = smov %s1507_s17 }
 0x1fd   :  { %12 = sbr.rel (!%p10_p10) target bundleno = 3 (0x3), region = 151 }

// kernel: generator2_forward.30
= control target key start
LH: loop header
LB: loop body
LE: loop exit
PB: predicated region body
PF: predicated region fallthrough
CT: control target
= control target key end

     0   :  { %s817_s12 = smov 0   ;;  %s819_s13 = smov 0   ;;  %s904_s0 = inlined_call_operand.vmem [shape: bf16[2,32,256], index: 0, kind: input, shape index: {}, may-alias: {0,1}]   ;;  %s905_s1 = inlined_call_operand.vmem [shape: bf16[2,32,256], index: 1, kind: input, shape index: {}, may-alias: {0,1}]   ;;  %s906_s2 = inlined_call_operand.vmem [shape: bf16[32,97], index: 2, kind: input, shape index: {}]   ;;  %s907_s3 = inlined_call_operand.vmem [shape: bf16[2,32,128], index: 3, kind: output, shape index: {}]  }
   0x1   :  { %s821_s14 = smov 0   ;;  %s823_s15 = smov 0  }
   0x2   :  { %s825_s16 = smov 0  }
   0x3 LB: > { %s25_s17 = sadd.s32 1, %s788_s15  ;;  %p41_p1 = scmp.ne.s32.totalorder %s780_s13, %s776_s12  ;;  %s792_s16 = sphi %s825_s16, %s13_s16   ;;  %s788_s15 = sphi %s823_s15, %s912_s15   ;;  %s784_s14 = sphi %s821_s14, %s911_s14   ;;  %s780_s13 = sphi %s819_s13, %s910_s13   ;;  %s776_s12 = sphi %s817_s12, %s909_s12  }
   0x4   : > { %p27_p0 = scmp.ge.s32.totalorder %s25_s17, 2  ;;  %p42_p2 = scmp.eq.s32.totalorder %s792_s16, 0 }
   0x5   : > { %s34_s20 = sadd.s32 1, %s780_s13  ;;  %p620_p5 = scmp.ge.s32.totalorder %s792_s16, 2 }
   0x6   : > { %s914_s17 = smov (%p27_p0, %s25_s17), 0  ;;  %p848_p3 = por %p42_p2, %p41_p1 }
   0x7   : > { %s29_s19 = ssub.s32 %s788_s15, %s914_s17  ;;  %149 = sbr.rel (%p620_p5) target bundleno = 28 (0x1c), region = 20 }
   0x8   : > { %p32_p4 = scmp.eq.s32.totalorder %s29_s19, 0 }
   0xa   : > { %s856_s21 = scalar_select %p32_p4, %s780_s13, %s34_s20  }
   0xe   : > { %152 = sbr.rel (!%p848_p3) target bundleno = 21 (0x15), region = 24  ;;  %s154_s22 = sand.u32 (%p848_p3), 1, %s780_s13  }
   0xf   : > { %s646_s23 = sshll.u32 (%p848_p3), %s788_s15, 5  ;;  %s621_s24 = sshll.u32 (%p848_p3), %s154_s22, 4 }
  0x10   : > { %s160_s27 = scalar_lea.vmem (%p848_p3), %s904_s0, %s646_s23  ;;  %s156_s28 = scalar_lea.vmem (%p848_p3), [#allocation3], %s621_s24 }
  0x11   : > { %v176_v0 = vld [vmem:[%s160_s27] sm:$0xf] (%p848_p3)  ;;  %v178_v1 = vld [vmem:[%s160_s27 + $0x8] sm:$0xf] (%p848_p3)  ;;  %v180_v2 = vld [vmem:[%s160_s27 + $0x10] sm:$0xf] (%p848_p3) }
  0x12   : > { %177 = vst [vmem:[%s156_s28] sm:$0xf] (%p848_p3), %v176_v0  ;;  %179 = vst [vmem:[%s156_s28 + $0x4] sm:$0xf] (%p848_p3), %v178_v1  ;;  %v182_v3 = vld [vmem:[%s160_s27 + $0x18] sm:$0xf] (%p848_p3) }
  0x13   : > { %181 = vst [vmem:[%s156_s28 + $0x8] sm:$0xf] (%p848_p3), %v180_v2  ;;  %183 = vst [vmem:[%s156_s28 + $0xc] sm:$0xf] (%p848_p3), %v182_v3 }
  0x15 PF: > { %214 = sbr.rel (!%p848_p3) target bundleno = 28 (0x1c), region = 65  ;;  %s216_s29 = sand.u32 (%p848_p3), 1, %s780_s13  }
  0x16   : > { %s647_s30 = sshll.u32 (%p848_p3), %s788_s15, 5  ;;  %s624_s4 = sshll.u32 (%p848_p3), %s216_s29, 4 }
  0x17   : > { %s549_s7 = scalar_lea.vmem (%p848_p3), %s905_s1, %s647_s30  ;;  %s218_s8 = scalar_lea.vmem (%p848_p3), [#allocation4], %s624_s4 }
  0x18   : > { %v627_v4 = vld [vmem:[%s549_s7 + $0x4] sm:$0xf] (%p848_p3)  ;;  %v628_v5 = vld [vmem:[%s549_s7 + $0xc] sm:$0xf] (%p848_p3)  ;;  %v629_v6 = vld [vmem:[%s549_s7 + $0x14] sm:$0xf] (%p848_p3) }
  0x19   : > { %240 = vst [vmem:[%s218_s8] sm:$0xf] (%p848_p3), %v627_v4  ;;  %242 = vst [vmem:[%s218_s8 + $0x4] sm:$0xf] (%p848_p3), %v628_v5  ;;  %v630_v7 = vld [vmem:[%s549_s7 + $0x1c] sm:$0xf] (%p848_p3) }
  0x1a   : > { %244 = vst [vmem:[%s218_s8 + $0x8] sm:$0xf] (%p848_p3), %v629_v6  ;;  %246 = vst [vmem:[%s218_s8 + $0xc] sm:$0xf] (%p848_p3), %v630_v7 }
  0x1c PF: > { %p631_p6 = scmp.ge.s32.totalorder %s792_s16, 1  ;;  %p276_p7 = scmp.lt.s32.totalorder %s792_s16, 3 }
  0x1e   : > { %p277_p8 = pnand %p631_p6, %p276_p7 }
  0x1f   : > { %s283_s9 = sand.u32 (!%p277_p8), 1, %s776_s12   ;;  %s794_s12 = smov (!%p277_p8), 127   ;;  %v752_v40 = vld [vmem:[%s906_s2] sm:$0xff] (!%p277_p8)   ;;  %vm429_vm8 = vcmask (!%p277_p8), 793600   ;;  %vm397_vm9 = vcmask (!%p277_p8), 1039360   ;;  %vm410_vm10 = vcmask (!%p277_p8), 1031168  }
  0x20   : > { %280 = sbr.rel (%p277_p8) target bundleno = 401 (0x191), region = 106  ;;  %s632_s10 = sshll.u32 (!%p277_p8), %s283_s9, 4  ;;  %705 = vmatprep.mubr.msk.bf16.mxu0 (!%p277_p8), %vm429_vm8, %v752_v40  ;;  %vm436_vm11 = vcmask (!%p277_p8), 1040384   ;;  %v796_v53 = vmov (!%p277_p8), 0   ;;  %v753_v56 = vld [vmem:[%s906_s2 + $0x8] sm:$0xff] (!%p277_p8)  }
  0x21   : > { %s285_s11 = scalar_lea.vmem (!%p277_p8), [#allocation3], %s632_s10  ;;  %s292_s18 = scalar_lea.vmem (!%p277_p8), [#allocation4], %s632_s10  ;;  %v438_v54 = vsel (!%p277_p8), %vm436_vm11, 65535, %v796_v53 }
  0x22   : > { %v679_v8 = vld [vmem:[%s285_s11 + $0x8] sm:$0xff] (!%p277_p8)   ;;  %v654_v9 = vld [vmem:[%s285_s11] sm:$0xff] (!%p277_p8)   ;;  %s795_s19 = smov (!%p277_p8), 126   ;;  %v440_v55 = vand.u32 (!%p277_p8), 1065369472, %v438_v54  ;;  %p321_p9 = scmp.lt.s32.totalorder (!%p277_p8), %s784_s14, 1 }
  0x23   : > { %v680_v10 = vld [vmem:[%s292_s18 + $0x8] sm:$0xff] (!%p277_p8)   ;;  %v659_v11 = vunpack.c.l.bf16 (!%p277_p8), %v679_v8  ;;  %v660_v12 = vunpack.c.h.bf16 (!%p277_p8), %v679_v8  ;;  %v655_v13 = vunpack.c.l.bf16 (!%p277_p8), %v654_v9  ;;  %v656_v14 = vunpack.c.h.bf16 (!%p277_p8), %v654_v9  ;;  %v662_v15 = vld [vmem:[%s292_s18] sm:$0xff] (!%p277_p8)  }
  0x24   : > { %v667_v16 = vunpack.c.l.bf16 (!%p277_p8), %v680_v10  ;;  %v668_v17 = vunpack.c.h.bf16 (!%p277_p8), %v680_v10  ;;  %v663_v18 = vunpack.c.l.bf16 (!%p277_p8), %v662_v15  ;;  %v664_v19 = vunpack.c.h.bf16 (!%p277_p8), %v662_v15 }
  0x25   : > { %vm349_vm0 = vcmp.gt.f32.partialorder (!%p277_p8), %v659_v11, 0.0  ;;  %vm350_vm1 = vcmp.gt.f32.partialorder (!%p277_p8), %v660_v12, 0.0  ;;  %v353_v20 = vmul.f32 (!%p277_p8), 0.1, %v659_v11  ;;  %v354_v21 = vmul.f32 (!%p277_p8), 0.1, %v660_v12 }
  0x26   : > { %vm347_vm2 = vcmp.gt.f32.partialorder (!%p277_p8), %v655_v13, 0.0  ;;  %vm348_vm3 = vcmp.gt.f32.partialorder (!%p277_p8), %v656_v14, 0.0  ;;  %v351_v22 = vmul.f32 (!%p277_p8), 0.1, %v655_v13  ;;  %v352_v23 = vmul.f32 (!%p277_p8), 0.1, %v656_v14 }
  0x27   : > { %v357_v24 = vsel %vm349_vm0, %v659_v11, %v353_v20  ;;  %v358_v25 = vsel %vm350_vm1, %v660_v12, %v354_v21  ;;  %vm361_vm4 = vcmp.gt.f32.partialorder %v667_v16, 0.0  ;;  %vm362_vm5 = vcmp.gt.f32.partialorder %v668_v17, 0.0  ;;  %s916_s14 = smov (!%p321_p9, %s784_s14), 1 }
  0x28   : > { %v372_v26 = vpack.c.bf16 %v358_v25, %v357_v24  ;;  %v355_v27 = vsel %vm347_vm2, %v655_v13, %v351_v22  ;;  %v356_v28 = vsel %vm348_vm3, %v656_v14, %v352_v23  ;;  %v365_v29 = vmul.f32 0.1, %v667_v16  ;;  %s648_s25 = sshll.u32 %s916_s14, 4 }
  0x29   : > { %v371_v30 = vpack.c.bf16 %v356_v28, %v355_v27  ;;  %v366_v31 = vmul.f32 0.1, %v668_v17  ;;  %vm359_vm6 = vcmp.gt.f32.partialorder %v663_v18, 0.0  ;;  %vm360_vm7 = vcmp.gt.f32.partialorder %v664_v19, 0.0  ;;  %s328_s28 = scalar_lea.vmem %s907_s3, %s648_s25 }
  0x2a   : > { %393 = vrot.lane.b32.xlu1 %v372_v26, %s794_s12  ;;  %v369_v32 = vsel %vm361_vm4, %v667_v16, %v365_v29  ;;  %v363_v33 = vmul.f32 0.1, %v663_v18  ;;  %v364_v34 = vmul.f32 0.1, %v664_v19 }
  0x2b   : > { %389 = vrot.lane.b32.xlu0 %v371_v30, %s794_s12  ;;  %v370_v35 = vsel %vm362_vm5, %v668_v17, %v366_v31  ;;  %691 = vmatprep.subr.bf16.mxu0 %v371_v30 }
  0x2c   : > { %v376_v36 = vpack.c.bf16 %v370_v35, %v369_v32  ;;  %v367_v37 = vsel %vm359_vm6, %v663_v18, %v363_v33  ;;  %v368_v38 = vsel %vm360_vm7, %v664_v19, %v364_v34  ;;  %692 = vmatpush3.bf16.msra.mxu0 %v371_v30 }
  0x2d   : > { %v375_v39 = vpack.c.bf16 %v368_v38, %v367_v37  ;;  %693 = vmatprep.subr.bf16.mxu0 %v372_v26 }
  0x2e   : > { %395 = vrot.lane.b32.xlu1 %v376_v36, %s794_s12 }
  0x2f   : > { %391 = vrot.lane.b32.xlu0 %v375_v39, %s794_s12 }
  0x30   : > { %694 = vmatpush3.bf16.msra.mxu0 %v372_v26 }
  0x32   : > { %404 = vrot.lane.b32.xlu1 %v375_v39, %s795_s19 }
  0x33   : > { %402 = vrot.lane.b32.xlu0 %v371_v30, %s795_s19 }
  0x36   : > { %408 = vrot.lane.b32.xlu1 %v376_v36, %s795_s19 }
  0x37   : > { %406 = vrot.lane.b32.xlu0 %v372_v26, %s795_s19 }
  0x9c   : > { %v394_v41 = vpop.permute.xlu1 %393 }
  0x9d   : > { %v390_v42 = vpop.permute.xlu0 %389 }
  0xa0   : > { %v396_v43 = vpop.permute.xlu1 %395 }
  0xa1   : > { %v392_v44 = vpop.permute.xlu0 %391  ;;  %v399_v46 = vsel %vm397_vm9, %v394_v41, %v396_v43 }
  0xa2   : > { %v398_v45 = vsel %vm397_vm9, %v390_v42, %v392_v44 }
  0xa3   : > { %695 = vmatprep.subr.bf16.mxu0 %v398_v45 }
  0xa4   : > { %696 = vmatpush3.bf16.msra.mxu0 %v398_v45  ;;  %v405_v47 = vpop.permute.xlu1 %404 }
  0xa5   : > { %697 = vmatprep.subr.bf16.mxu0 %v399_v46  ;;  %v403_v48 = vpop.permute.xlu0 %402 }
  0xa6   : > { %v411_v49 = vsel %vm410_vm10, %v403_v48, %v405_v47 }
  0xa8   : > { %698 = vmatpush3.bf16.msra.mxu0 %v399_v46  ;;  %v409_v50 = vpop.permute.xlu1 %408 }
  0xa9   : > { %699 = vmatprep.subr.bf16.mxu0 %v411_v49  ;;  %v407_v51 = vpop.permute.xlu0 %406 }
  0xaa   : > { %v412_v52 = vsel %vm410_vm10, %v407_v51, %v409_v50 }
  0xac   : > { %700 = vmatpush3.bf16.msra.mxu0 %v411_v49 }
  0xad   : > { %701 = vmatprep.subr.bf16.mxu0 %v412_v52 }
  0xb0   : > { %702 = vmatpush3.bf16.msra.mxu0 %v412_v52 }
  0xb1   : > { %703 = vmatprep.subr.bf16.mxu0 %v440_v55 }
  0xb4   : > { %704 = vmatpush3.bf16.msra.mxu0 %v440_v55 }
  0xb7   : > { %706 = vmatmul.mubr.msk.bf16.vlgmr.msra.gmra.mrb[0].mxu0 %vm429_vm8, %v753_v56 }
 0x18a   : > { %v707_v57 = vpop.f32.mrb[0].mxu0 }
 0x18b   : > { %v476_v58 = vpop.f32.mrb[1].mxu0 }
 0x18c   : > { %v708_v59 = vpop.f32.mrb[2].mxu0 }
 0x18d   : > { %v677_v60 = vpack.c.bf16 %v708_v59, %v707_v57  ;;  %v479_v61 = vpop.f32.mrb[3].mxu0 }
 0x18e   : > { %v672_v62 = vpack.c.bf16 %v479_v61, %v476_v58 }
 0x18f   : > { %681 = vst [vmem:[%s328_s28 + $0x8] sm:$0xff] %v677_v60  }
 0x190   : > { %673 = vst [vmem:[%s328_s28] sm:$0xff] %v672_v62  }
 0x191 PF: > { %s13_s16 = sadd.s32 1, %s792_s16   ;;  %s909_s12 = smov %s780_s13 }
 0x192   : > { %p10_p10 = scmp.ge.s32.totalorder %s13_s16, 4   ;;  %s910_s13 = smov %s856_s21 }
 0x193   : > { %s911_s14 = smov %s788_s15  ;;  %s912_s15 = smov %s914_s17 }
 0x194   :  { %12 = sbr.rel (!%p10_p10) target bundleno = 3 (0x3), region = 157 }

// kernel: generator2_forward.37
= control target key start
LH: loop header
LB: loop body
LE: loop exit
PB: predicated region body
PF: predicated region fallthrough
CT: control target
= control target key end

     0   :  { %s725_s12 = smov 0   ;;  %s727_s13 = smov 0   ;;  %s814_s0 = inlined_call_operand.vmem [shape: bf16[2,16,256], index: 0, kind: input, shape index: {}, may-alias: {0,1}]   ;;  %s815_s1 = inlined_call_operand.vmem [shape: bf16[2,16,256], index: 1, kind: input, shape index: {}, may-alias: {0,1}]   ;;  %s816_s2 = inlined_call_operand.vmem [shape: bf16[16,81], index: 2, kind: input, shape index: {}]   ;;  %s817_s3 = inlined_call_operand.vmem [shape: bf16[2,16,128], index: 3, kind: output, shape index: {}]  }
   0x1   :  { %s729_s14 = smov 0   ;;  %s731_s15 = smov 0  }
   0x2   :  { %s733_s16 = smov 0  }
   0x3 LB: > { %s25_s17 = sadd.s32 1, %s692_s15  ;;  %p41_p1 = scmp.ne.s32.totalorder %s684_s13, %s680_s12  ;;  %s696_s16 = sphi %s733_s16, %s13_s16   ;;  %s692_s15 = sphi %s731_s15, %s822_s15   ;;  %s688_s14 = sphi %s729_s14, %s821_s14   ;;  %s684_s13 = sphi %s727_s13, %s820_s13   ;;  %s680_s12 = sphi %s725_s12, %s819_s12  }
   0x4   : > { %p27_p0 = scmp.ge.s32.totalorder %s25_s17, 2  ;;  %p42_p2 = scmp.eq.s32.totalorder %s696_s16, 0 }
   0x5   : > { %s34_s20 = sadd.s32 1, %s684_s13  ;;  %p549_p5 = scmp.ge.s32.totalorder %s696_s16, 2 }
   0x6   : > { %s824_s17 = smov (%p27_p0, %s25_s17), 0  ;;  %p756_p3 = por %p42_p2, %p41_p1 }
   0x7   : > { %s29_s19 = ssub.s32 %s692_s15, %s824_s17  ;;  %149 = sbr.rel (%p549_p5) target bundleno = 28 (0x1c), region = 20 }
   0x8   : > { %p32_p4 = scmp.eq.s32.totalorder %s29_s19, 0 }
   0xa   : > { %s764_s21 = scalar_select %p32_p4, %s684_s13, %s34_s20  }
   0xe   : > { %152 = sbr.rel (!%p756_p3) target bundleno = 21 (0x15), region = 24  ;;  %s154_s22 = sand.u32 (%p756_p3), 1, %s684_s13  }
   0xf   : > { %s569_s23 = sshll.u32 (%p756_p3), %s692_s15, 4  ;;  %s550_s24 = sshll.u32 (%p756_p3), %s154_s22, 3 }
  0x10   : > { %s160_s27 = scalar_lea.vmem (%p756_p3), %s814_s0, %s569_s23  ;;  %s156_s28 = scalar_lea.vmem (%p756_p3), [#allocation3], %s550_s24 }
  0x11   : > { %v176_v0 = vld [vmem:[%s160_s27] sm:$0xf] (%p756_p3)  ;;  %v178_v1 = vld [vmem:[%s160_s27 + $0x8] sm:$0xf] (%p756_p3) }
  0x12   : > { %177 = vst [vmem:[%s156_s28] sm:$0xf] (%p756_p3), %v176_v0  ;;  %179 = vst [vmem:[%s156_s28 + $0x4] sm:$0xf] (%p756_p3), %v178_v1 }
  0x15 PF: > { %206 = sbr.rel (!%p756_p3) target bundleno = 28 (0x1c), region = 65  ;;  %s208_s29 = sand.u32 (%p756_p3), 1, %s684_s13  }
  0x16   : > { %s570_s30 = sshll.u32 (%p756_p3), %s692_s15, 4  ;;  %s553_s4 = sshll.u32 (%p756_p3), %s208_s29, 3 }
  0x17   : > { %s478_s7 = scalar_lea.vmem (%p756_p3), %s815_s1, %s570_s30  ;;  %s210_s8 = scalar_lea.vmem (%p756_p3), [#allocation4], %s553_s4 }
  0x18   : > { %v556_v2 = vld [vmem:[%s478_s7 + $0x4] sm:$0xf] (%p756_p3)  ;;  %v557_v3 = vld [vmem:[%s478_s7 + $0xc] sm:$0xf] (%p756_p3) }
  0x19   : > { %232 = vst [vmem:[%s210_s8] sm:$0xf] (%p756_p3), %v556_v2  ;;  %234 = vst [vmem:[%s210_s8 + $0x4] sm:$0xf] (%p756_p3), %v557_v3 }
  0x1c PF: > { %p558_p6 = scmp.ge.s32.totalorder %s696_s16, 1  ;;  %p260_p7 = scmp.lt.s32.totalorder %s696_s16, 3 }
  0x1e   : > { %p261_p8 = pnand %p558_p6, %p260_p7 }
  0x1f   : > { %s267_s9 = sand.u32 (!%p261_p8), 1, %s680_s12   ;;  %v698_v4 = vmov (!%p261_p8), 0.0   ;;  %s699_s12 = smov (!%p261_p8), 126   ;;  %vm702_vm4 = vmmov (!%p261_p8), 0   ;;  %vm348_vm5 = vcmask (!%p261_p8), 1039360   ;;  %vm355_vm6 = vcmask (!%p261_p8), 1031168  }
  0x20   : > { %264 = sbr.rel (%p261_p8) target bundleno = 398 (0x18e), region = 106  ;;  %s559_s10 = sshll.u32 (!%p261_p8), %s267_s9, 3  ;;  %594 = vmatprep.subr.bf16.mxu0 (!%p261_p8), %v698_v4  ;;  %606 = vmatprep.mubr.msk.bf16.mxu0 (!%p261_p8), %vm702_vm4, %v698_v4  ;;  %vm362_vm7 = vcmask (!%p261_p8), 1022976   ;;  %vm369_vm8 = vcmask (!%p261_p8), 1014784   ;;  %vm383_vm9 = vcmask (!%p261_p8), 1040384   ;;  %v704_v33 = vmov (!%p261_p8), 0  }
  0x21   : > { %s269_s11 = scalar_lea.vmem (!%p261_p8), [#allocation3], %s559_s10  ;;  %s276_s18 = scalar_lea.vmem (!%p261_p8), [#allocation4], %s559_s10  ;;  %v385_v34 = vsel (!%p261_p8), %vm383_vm9, 65535, %v704_v33  ;;  %v657_v36 = vld [vmem:[%s816_s2] sm:$0xff] (!%p261_p8)   ;;  %vm379_vm10 = vcmask (!%p261_p8), 662528  }
  0x22   : > { %v575_v5 = vld [vmem:[%s269_s11] sm:$0xff] (!%p261_p8)   ;;  %v579_v6 = vld [vmem:[%s276_s18] sm:$0xff] (!%p261_p8)   ;;  %s700_s19 = smov (!%p261_p8), 127   ;;  %s701_s20 = smov (!%p261_p8), 125   ;;  %v387_v35 = vand.u32 (!%p261_p8), 1065369472, %v385_v34 }
  0x23   : > { %v576_v7 = vunpack.c.l.bf16 (!%p261_p8), %v575_v5  ;;  %v577_v8 = vunpack.c.h.bf16 (!%p261_p8), %v575_v5  ;;  %v580_v9 = vunpack.c.l.bf16 (!%p261_p8), %v579_v6  ;;  %v581_v10 = vunpack.c.h.bf16 (!%p261_p8), %v579_v6  ;;  %s703_s22 = smov (!%p261_p8), 124   ;;  %p305_p9 = scmp.lt.s32.totalorder (!%p261_p8), %s688_s14, 1 }
  0x25   : > { %vm323_vm0 = vcmp.gt.f32.partialorder (!%p261_p8), %v576_v7, 0.0  ;;  %vm324_vm1 = vcmp.gt.f32.partialorder (!%p261_p8), %v577_v8, 0.0  ;;  %v325_v11 = vmul.f32 (!%p261_p8), 0.1, %v576_v7  ;;  %v326_v12 = vmul.f32 (!%p261_p8), 0.1, %v577_v8 }
  0x26   : > { %vm329_vm2 = vcmp.gt.f32.partialorder (!%p261_p8), %v580_v9, 0.0  ;;  %vm330_vm3 = vcmp.gt.f32.partialorder (!%p261_p8), %v581_v10, 0.0  ;;  %v331_v13 = vmul.f32 (!%p261_p8), 0.1, %v580_v9  ;;  %v332_v14 = vmul.f32 (!%p261_p8), 0.1, %v581_v10 }
  0x27   : > { %v327_v15 = vsel %vm323_vm0, %v576_v7, %v325_v11  ;;  %v328_v16 = vsel %vm324_vm1, %v577_v8, %v326_v12  ;;  %s826_s14 = smov (!%p305_p9, %s688_s14), 1 }
  0x28   : > { %v335_v17 = vpack.c.bf16 %v328_v16, %v327_v15  ;;  %v333_v18 = vsel %vm329_vm2, %v580_v9, %v331_v13  ;;  %v334_v19 = vsel %vm330_vm3, %v581_v10, %v332_v14  ;;  %s571_s25 = sshll.u32 %s826_s14, 3 }
  0x29   : > { %v337_v20 = vpack.c.bf16 %v334_v19, %v333_v18  ;;  %s312_s28 = scalar_lea.vmem %s817_s3, %s571_s25 }
  0x2a   : > { %351 = vrot.lane.b32.xlu1 %v335_v17, %s699_s12  ;;  %344 = vrot.lane.b32.xlu0 %v335_v17, %s700_s19 }
  0x2b   : > { %595 = vmatpush3.bf16.msra.mxu0 %v335_v17 }
  0x2c   : > { %596 = vmatprep.subr.bf16.mxu0 %v698_v4 }
  0x2e   : > { %353 = vrot.lane.b32.xlu1 %v337_v20, %s699_s12  ;;  %346 = vrot.lane.b32.xlu0 %v337_v20, %s700_s19 }
  0x32   : > { %360 = vrot.lane.b32.xlu1 %v337_v20, %s701_s20  ;;  %358 = vrot.lane.b32.xlu0 %v335_v17, %s701_s20 }
  0x36   : > { %367 = vrot.lane.b32.xlu1 %v337_v20, %s703_s22  ;;  %365 = vrot.lane.b32.xlu0 %v335_v17, %s703_s22 }
  0x9c   : > { %v352_v21 = vpop.permute.xlu1 %351  ;;  %v345_v22 = vpop.permute.xlu0 %344 }
  0xa0   : > { %v354_v23 = vpop.permute.xlu1 %353  ;;  %v347_v24 = vpop.permute.xlu0 %346 }
  0xa1   : > { %v349_v25 = vsel %vm348_vm5, %v345_v22, %v347_v24  ;;  %v356_v28 = vsel %vm355_vm6, %v352_v21, %v354_v23 }
  0xa2   : > { %597 = vmatpush3.bf16.msra.mxu0 %v349_v25 }
  0xa3   : > { %598 = vmatprep.subr.bf16.mxu0 %v698_v4 }
  0xa4   : > { %v361_v26 = vpop.permute.xlu1 %360  ;;  %v359_v27 = vpop.permute.xlu0 %358 }
  0xa5   : > { %v363_v29 = vsel %vm362_vm7, %v359_v27, %v361_v26 }
  0xa6   : > { %599 = vmatpush3.bf16.msra.mxu0 %v356_v28 }
  0xa7   : > { %600 = vmatprep.subr.bf16.mxu0 %v698_v4 }
  0xa8   : > { %v368_v30 = vpop.permute.xlu1 %367  ;;  %v366_v31 = vpop.permute.xlu0 %365 }
  0xa9   : > { %v370_v32 = vsel %vm369_vm8, %v366_v31, %v368_v30 }
  0xaa   : > { %601 = vmatpush3.bf16.msra.mxu0 %v363_v29 }
  0xab   : > { %602 = vmatprep.subr.bf16.mxu0 %v698_v4 }
  0xae   : > { %603 = vmatpush3.bf16.msra.mxu0 %v370_v32 }
  0xaf   : > { %604 = vmatprep.subr.bf16.mxu0 %v698_v4 }
  0xb2   : > { %605 = vmatpush3.bf16.msra.mxu0 %v387_v35 }
  0xb5   : > { %607 = vmatmul.mubr.msk.bf16.vlgmr.msra.gmra.mrb[0].mxu0 %vm379_vm10, %v657_v36 }
 0x188   : > { %v423_v37 = vpop.f32.mrb[0].mxu0 }
 0x189   : > { %v608_v38 = vpop.f32.mrb[1].mxu0 }
 0x18a   : > { %v426_v39 = vpop.f32.mrb[2].mxu0 }
 0x18b   : > { %v585_v40 = vpack.c.bf16 %v426_v39, %v423_v37  ;;  %v609_v41 = vpop.f32.mrb[3].mxu0 }
 0x18d   : > { %586 = vst [vmem:[%s312_s28] sm:$0xff] %v585_v40  }
 0x18e PF: > { %s13_s16 = sadd.s32 1, %s696_s16   ;;  %s819_s12 = smov %s684_s13 }
 0x18f   : > { %p10_p10 = scmp.ge.s32.totalorder %s13_s16, 4   ;;  %s820_s13 = smov %s764_s21 }
 0x190   : > { %s821_s14 = smov %s692_s15  ;;  %s822_s15 = smov %s824_s17 }
 0x191   :  { %12 = sbr.rel (!%p10_p10) target bundleno = 3 (0x3), region = 157 }

// kernel: generator2_forward.31
= control target key start
LH: loop header
LB: loop body
LE: loop exit
PB: predicated region body
PF: predicated region fallthrough
CT: control target
= control target key end

     0   :  { %s701_s12 = smov 0   ;;  %s703_s13 = smov 0   ;;  %s783_s0 = inlined_call_operand.vmem [shape: bf16[2,16,256], index: 0, kind: input, shape index: {}, may-alias: {0,1}]   ;;  %s784_s1 = inlined_call_operand.vmem [shape: bf16[2,16,256], index: 1, kind: input, shape index: {}, may-alias: {0,1}]   ;;  %s785_s2 = inlined_call_operand.vmem [shape: bf16[16,49], index: 2, kind: input, shape index: {}]   ;;  %s786_s3 = inlined_call_operand.vmem [shape: bf16[2,16,128], index: 3, kind: output, shape index: {}]  }
   0x1   :  { %s705_s14 = smov 0   ;;  %s707_s15 = smov 0  }
   0x2   :  { %s709_s16 = smov 0  }
   0x3 LB: > { %s25_s17 = sadd.s32 1, %s670_s15  ;;  %p41_p1 = scmp.ne.s32.totalorder %s662_s13, %s658_s12  ;;  %s674_s16 = sphi %s709_s16, %s13_s16   ;;  %s670_s15 = sphi %s707_s15, %s791_s15   ;;  %s666_s14 = sphi %s705_s14, %s790_s14   ;;  %s662_s13 = sphi %s703_s13, %s789_s13   ;;  %s658_s12 = sphi %s701_s12, %s788_s12  }
   0x4   : > { %p27_p0 = scmp.ge.s32.totalorder %s25_s17, 2  ;;  %p42_p2 = scmp.eq.s32.totalorder %s674_s16, 0 }
   0x5   : > { %s34_s20 = sadd.s32 1, %s662_s13  ;;  %p535_p5 = scmp.ge.s32.totalorder %s674_s16, 2 }
   0x6   : > { %s793_s17 = smov (%p27_p0, %s25_s17), 0  ;;  %p732_p3 = por %p42_p2, %p41_p1 }
   0x7   : > { %s29_s19 = ssub.s32 %s670_s15, %s793_s17  ;;  %149 = sbr.rel (%p535_p5) target bundleno = 28 (0x1c), region = 20 }
   0x8   : > { %p32_p4 = scmp.eq.s32.totalorder %s29_s19, 0 }
   0xa   : > { %s740_s21 = scalar_select %p32_p4, %s662_s13, %s34_s20  }
   0xe   : > { %152 = sbr.rel (!%p732_p3) target bundleno = 21 (0x15), region = 24  ;;  %s154_s22 = sand.u32 (%p732_p3), 1, %s662_s13  }
   0xf   : > { %s555_s23 = sshll.u32 (%p732_p3), %s670_s15, 4  ;;  %s536_s24 = sshll.u32 (%p732_p3), %s154_s22, 3 }
  0x10   : > { %s160_s27 = scalar_lea.vmem (%p732_p3), %s783_s0, %s555_s23  ;;  %s156_s28 = scalar_lea.vmem (%p732_p3), [#allocation3], %s536_s24 }
  0x11   : > { %v176_v0 = vld [vmem:[%s160_s27] sm:$0xf] (%p732_p3)  ;;  %v178_v1 = vld [vmem:[%s160_s27 + $0x8] sm:$0xf] (%p732_p3) }
  0x12   : > { %177 = vst [vmem:[%s156_s28] sm:$0xf] (%p732_p3), %v176_v0  ;;  %179 = vst [vmem:[%s156_s28 + $0x4] sm:$0xf] (%p732_p3), %v178_v1 }
  0x15 PF: > { %206 = sbr.rel (!%p732_p3) target bundleno = 28 (0x1c), region = 65  ;;  %s208_s29 = sand.u32 (%p732_p3), 1, %s662_s13  }
  0x16   : > { %s556_s30 = sshll.u32 (%p732_p3), %s670_s15, 4  ;;  %s539_s4 = sshll.u32 (%p732_p3), %s208_s29, 3 }
  0x17   : > { %s464_s7 = scalar_lea.vmem (%p732_p3), %s784_s1, %s556_s30  ;;  %s210_s8 = scalar_lea.vmem (%p732_p3), [#allocation4], %s539_s4 }
  0x18   : > { %v542_v2 = vld [vmem:[%s464_s7 + $0x4] sm:$0xf] (%p732_p3)  ;;  %v543_v3 = vld [vmem:[%s464_s7 + $0xc] sm:$0xf] (%p732_p3) }
  0x19   : > { %232 = vst [vmem:[%s210_s8] sm:$0xf] (%p732_p3), %v542_v2  ;;  %234 = vst [vmem:[%s210_s8 + $0x4] sm:$0xf] (%p732_p3), %v543_v3 }
  0x1c PF: > { %p544_p6 = scmp.ge.s32.totalorder %s674_s16, 1  ;;  %p260_p7 = scmp.lt.s32.totalorder %s674_s16, 3 }
  0x1e   : > { %p261_p8 = pnand %p544_p6, %p260_p7 }
  0x1f   : > { %s267_s9 = sand.u32 (!%p261_p8), 1, %s658_s12   ;;  %v676_v4 = vmov (!%p261_p8), 0.0   ;;  %s677_s12 = smov (!%p261_p8), 126   ;;  %vm679_vm4 = vmmov (!%p261_p8), 0   ;;  %vm348_vm5 = vcmask (!%p261_p8), 1039360   ;;  %vm369_vm6 = vcmask (!%p261_p8), 1040384  }
  0x20   : > { %264 = sbr.rel (%p261_p8) target bundleno = 390 (0x186), region = 106  ;;  %s545_s10 = sshll.u32 (!%p261_p8), %s267_s9, 3  ;;  %578 = vmatprep.subr.bf16.mxu0 (!%p261_p8), %v676_v4  ;;  %586 = vmatprep.mubr.msk.bf16.mxu0 (!%p261_p8), %vm679_vm4, %v676_v4  ;;  %vm355_vm7 = vcmask (!%p261_p8), 1031168   ;;  %v680_v26 = vmov (!%p261_p8), 0   ;;  %v635_v30 = vld [vmem:[%s785_s2] sm:$0xff] (!%p261_p8)   ;;  %vm365_vm8 = vcmask (!%p261_p8), 400384  }
  0x21   : > { %s269_s11 = scalar_lea.vmem (!%p261_p8), [#allocation3], %s545_s10  ;;  %s276_s18 = scalar_lea.vmem (!%p261_p8), [#allocation4], %s545_s10  ;;  %v371_v27 = vsel (!%p261_p8), %vm369_vm6, 65535, %v680_v26 }
  0x22   : > { %v561_v5 = vld [vmem:[%s269_s11] sm:$0xff] (!%p261_p8)   ;;  %v565_v6 = vld [vmem:[%s276_s18] sm:$0xff] (!%p261_p8)   ;;  %s678_s19 = smov (!%p261_p8), 127   ;;  %v373_v29 = vand.u32 (!%p261_p8), 1065369472, %v371_v27  ;;  %p305_p9 = scmp.lt.s32.totalorder (!%p261_p8), %s666_s14, 1 }
  0x23   : > { %v562_v7 = vunpack.c.l.bf16 (!%p261_p8), %v561_v5  ;;  %v563_v8 = vunpack.c.h.bf16 (!%p261_p8), %v561_v5  ;;  %v566_v9 = vunpack.c.l.bf16 (!%p261_p8), %v565_v6  ;;  %v567_v10 = vunpack.c.h.bf16 (!%p261_p8), %v565_v6 }
  0x25   : > { %vm323_vm0 = vcmp.gt.f32.partialorder (!%p261_p8), %v562_v7, 0.0  ;;  %vm324_vm1 = vcmp.gt.f32.partialorder (!%p261_p8), %v563_v8, 0.0  ;;  %v325_v11 = vmul.f32 (!%p261_p8), 0.1, %v562_v7  ;;  %v326_v12 = vmul.f32 (!%p261_p8), 0.1, %v563_v8 }
  0x26   : > { %vm329_vm2 = vcmp.gt.f32.partialorder (!%p261_p8), %v566_v9, 0.0  ;;  %vm330_vm3 = vcmp.gt.f32.partialorder (!%p261_p8), %v567_v10, 0.0  ;;  %v331_v13 = vmul.f32 (!%p261_p8), 0.1, %v566_v9  ;;  %v332_v14 = vmul.f32 (!%p261_p8), 0.1, %v567_v10 }
  0x27   : > { %v327_v15 = vsel %vm323_vm0, %v562_v7, %v325_v11  ;;  %v328_v16 = vsel %vm324_vm1, %v563_v8, %v326_v12  ;;  %s795_s14 = smov (!%p305_p9, %s666_s14), 1 }
  0x28   : > { %v335_v17 = vpack.c.bf16 %v328_v16, %v327_v15  ;;  %v333_v18 = vsel %vm329_vm2, %v566_v9, %v331_v13  ;;  %v334_v19 = vsel %vm330_vm3, %v567_v10, %v332_v14  ;;  %s557_s23 = sshll.u32 %s795_s14, 3 }
  0x29   : > { %v337_v20 = vpack.c.bf16 %v334_v19, %v333_v18  ;;  %s312_s26 = scalar_lea.vmem %s786_s3, %s557_s23 }
  0x2a   : > { %351 = vrot.lane.b32.xlu1 %v335_v17, %s677_s12  ;;  %344 = vrot.lane.b32.xlu0 %v335_v17, %s678_s19 }
  0x2b   : > { %579 = vmatpush3.bf16.msra.mxu0 %v335_v17 }
  0x2c   : > { %580 = vmatprep.subr.bf16.mxu0 %v676_v4 }
  0x2e   : > { %353 = vrot.lane.b32.xlu1 %v337_v20, %s677_s12  ;;  %346 = vrot.lane.b32.xlu0 %v337_v20, %s678_s19 }
  0x9c   : > { %v352_v21 = vpop.permute.xlu1 %351  ;;  %v345_v22 = vpop.permute.xlu0 %344 }
  0xa0   : > { %v347_v23 = vpop.permute.xlu0 %346  ;;  %v354_v25 = vpop.permute.xlu1 %353 }
  0xa1   : > { %v349_v24 = vsel %vm348_vm5, %v345_v22, %v347_v23  ;;  %v356_v28 = vsel %vm355_vm7, %v352_v21, %v354_v25 }
  0xa2   : > { %581 = vmatpush3.bf16.msra.mxu0 %v349_v24 }
  0xa3   : > { %582 = vmatprep.subr.bf16.mxu0 %v676_v4 }
  0xa6   : > { %583 = vmatpush3.bf16.msra.mxu0 %v356_v28 }
  0xa7   : > { %584 = vmatprep.subr.bf16.mxu0 %v676_v4 }
  0xaa   : > { %585 = vmatpush3.bf16.msra.mxu0 %v373_v29 }
  0xad   : > { %587 = vmatmul.mubr.msk.bf16.vlgmr.msra.gmra.mrb[0].mxu0 %vm365_vm8, %v635_v30 }
 0x180   : > { %v409_v31 = vpop.f32.mrb[0].mxu0 }
 0x181   : > { %v588_v32 = vpop.f32.mrb[1].mxu0 }
 0x182   : > { %v412_v33 = vpop.f32.mrb[2].mxu0 }
 0x183   : > { %v571_v34 = vpack.c.bf16 %v412_v33, %v409_v31  ;;  %v589_v35 = vpop.f32.mrb[3].mxu0 }
 0x185   : > { %572 = vst [vmem:[%s312_s26] sm:$0xff] %v571_v34  }
 0x186 PF: > { %s13_s16 = sadd.s32 1, %s674_s16   ;;  %s788_s12 = smov %s662_s13 }
 0x187   : > { %p10_p10 = scmp.ge.s32.totalorder %s13_s16, 4   ;;  %s789_s13 = smov %s740_s21 }
 0x188   : > { %s790_s14 = smov %s670_s15  ;;  %s791_s15 = smov %s793_s17 }
 0x189   :  { %12 = sbr.rel (!%p10_p10) target bundleno = 3 (0x3), region = 157 }

// kernel: generator2_forward.33
= control target key start
LH: loop header
LB: loop body
LE: loop exit
PB: predicated region body
PF: predicated region fallthrough
CT: control target
= control target key end

     0   :  { %s701_s12 = smov 0   ;;  %s703_s13 = smov 0   ;;  %s783_s0 = inlined_call_operand.vmem [shape: bf16[2,16,256], index: 0, kind: input, shape index: {}, may-alias: {0,1}]   ;;  %s784_s1 = inlined_call_operand.vmem [shape: bf16[2,16,256], index: 1, kind: input, shape index: {}, may-alias: {0,1}]   ;;  %s785_s2 = inlined_call_operand.vmem [shape: bf16[16,49], index: 2, kind: input, shape index: {}]   ;;  %s786_s3 = inlined_call_operand.vmem [shape: bf16[2,16,128], index: 3, kind: output, shape index: {}]  }
   0x1   :  { %s705_s14 = smov 0   ;;  %s707_s15 = smov 0  }
   0x2   :  { %s709_s16 = smov 0  }
   0x3 LB: > { %s25_s17 = sadd.s32 1, %s670_s15  ;;  %p41_p1 = scmp.ne.s32.totalorder %s662_s13, %s658_s12  ;;  %s674_s16 = sphi %s709_s16, %s13_s16   ;;  %s670_s15 = sphi %s707_s15, %s791_s15   ;;  %s666_s14 = sphi %s705_s14, %s790_s14   ;;  %s662_s13 = sphi %s703_s13, %s789_s13   ;;  %s658_s12 = sphi %s701_s12, %s788_s12  }
   0x4   : > { %p27_p0 = scmp.ge.s32.totalorder %s25_s17, 2  ;;  %p42_p2 = scmp.eq.s32.totalorder %s674_s16, 0 }
   0x5   : > { %s34_s20 = sadd.s32 1, %s662_s13  ;;  %p535_p5 = scmp.ge.s32.totalorder %s674_s16, 2 }
   0x6   : > { %s793_s17 = smov (%p27_p0, %s25_s17), 0  ;;  %p732_p3 = por %p42_p2, %p41_p1 }
   0x7   : > { %s29_s19 = ssub.s32 %s670_s15, %s793_s17  ;;  %149 = sbr.rel (%p535_p5) target bundleno = 28 (0x1c), region = 20 }
   0x8   : > { %p32_p4 = scmp.eq.s32.totalorder %s29_s19, 0 }
   0xa   : > { %s740_s21 = scalar_select %p32_p4, %s662_s13, %s34_s20  }
   0xe   : > { %152 = sbr.rel (!%p732_p3) target bundleno = 21 (0x15), region = 24  ;;  %s154_s22 = sand.u32 (%p732_p3), 1, %s662_s13  }
   0xf   : > { %s555_s23 = sshll.u32 (%p732_p3), %s670_s15, 4  ;;  %s536_s24 = sshll.u32 (%p732_p3), %s154_s22, 3 }
  0x10   : > { %s160_s27 = scalar_lea.vmem (%p732_p3), %s783_s0, %s555_s23  ;;  %s156_s28 = scalar_lea.vmem (%p732_p3), [#allocation3], %s536_s24 }
  0x11   : > { %v176_v0 = vld [vmem:[%s160_s27] sm:$0xf] (%p732_p3)  ;;  %v178_v1 = vld [vmem:[%s160_s27 + $0x8] sm:$0xf] (%p732_p3) }
  0x12   : > { %177 = vst [vmem:[%s156_s28] sm:$0xf] (%p732_p3), %v176_v0  ;;  %179 = vst [vmem:[%s156_s28 + $0x4] sm:$0xf] (%p732_p3), %v178_v1 }
  0x15 PF: > { %206 = sbr.rel (!%p732_p3) target bundleno = 28 (0x1c), region = 65  ;;  %s208_s29 = sand.u32 (%p732_p3), 1, %s662_s13  }
  0x16   : > { %s556_s30 = sshll.u32 (%p732_p3), %s670_s15, 4  ;;  %s539_s4 = sshll.u32 (%p732_p3), %s208_s29, 3 }
  0x17   : > { %s464_s7 = scalar_lea.vmem (%p732_p3), %s784_s1, %s556_s30  ;;  %s210_s8 = scalar_lea.vmem (%p732_p3), [#allocation4], %s539_s4 }
  0x18   : > { %v542_v2 = vld [vmem:[%s464_s7 + $0x4] sm:$0xf] (%p732_p3)  ;;  %v543_v3 = vld [vmem:[%s464_s7 + $0xc] sm:$0xf] (%p732_p3) }
  0x19   : > { %232 = vst [vmem:[%s210_s8] sm:$0xf] (%p732_p3), %v542_v2  ;;  %234 = vst [vmem:[%s210_s8 + $0x4] sm:$0xf] (%p732_p3), %v543_v3 }
  0x1c PF: > { %p544_p6 = scmp.ge.s32.totalorder %s674_s16, 1  ;;  %p260_p7 = scmp.lt.s32.totalorder %s674_s16, 3 }
  0x1e   : > { %p261_p8 = pnand %p544_p6, %p260_p7 }
  0x1f   : > { %s267_s9 = sand.u32 (!%p261_p8), 1, %s658_s12   ;;  %v676_v4 = vmov (!%p261_p8), 0.0   ;;  %s677_s12 = smov (!%p261_p8), 122   ;;  %vm679_vm4 = vmmov (!%p261_p8), 0   ;;  %vm348_vm5 = vcmask (!%p261_p8), 1022976   ;;  %vm369_vm6 = vcmask (!%p261_p8), 1040384  }
  0x20   : > { %264 = sbr.rel (%p261_p8) target bundleno = 390 (0x186), region = 106  ;;  %s545_s10 = sshll.u32 (!%p261_p8), %s267_s9, 3  ;;  %578 = vmatprep.subr.bf16.mxu0 (!%p261_p8), %v676_v4  ;;  %586 = vmatprep.mubr.msk.bf16.mxu0 (!%p261_p8), %vm679_vm4, %v676_v4  ;;  %vm355_vm7 = vcmask (!%p261_p8), 998400   ;;  %v680_v26 = vmov (!%p261_p8), 0   ;;  %v635_v30 = vld [vmem:[%s785_s2] sm:$0xff] (!%p261_p8)   ;;  %vm365_vm8 = vcmask (!%p261_p8), 400384  }
  0x21   : > { %s269_s11 = scalar_lea.vmem (!%p261_p8), [#allocation3], %s545_s10  ;;  %s276_s18 = scalar_lea.vmem (!%p261_p8), [#allocation4], %s545_s10  ;;  %v371_v27 = vsel (!%p261_p8), %vm369_vm6, 65535, %v680_v26 }
  0x22   : > { %v561_v5 = vld [vmem:[%s269_s11] sm:$0xff] (!%p261_p8)   ;;  %v565_v6 = vld [vmem:[%s276_s18] sm:$0xff] (!%p261_p8)   ;;  %s678_s19 = smov (!%p261_p8), 125   ;;  %v373_v29 = vand.u32 (!%p261_p8), 1065369472, %v371_v27  ;;  %p305_p9 = scmp.lt.s32.totalorder (!%p261_p8), %s666_s14, 1 }
  0x23   : > { %v562_v7 = vunpack.c.l.bf16 (!%p261_p8), %v561_v5  ;;  %v563_v8 = vunpack.c.h.bf16 (!%p261_p8), %v561_v5  ;;  %v566_v9 = vunpack.c.l.bf16 (!%p261_p8), %v565_v6  ;;  %v567_v10 = vunpack.c.h.bf16 (!%p261_p8), %v565_v6 }
  0x25   : > { %vm323_vm0 = vcmp.gt.f32.partialorder (!%p261_p8), %v562_v7, 0.0  ;;  %vm324_vm1 = vcmp.gt.f32.partialorder (!%p261_p8), %v563_v8, 0.0  ;;  %v325_v11 = vmul.f32 (!%p261_p8), 0.1, %v562_v7  ;;  %v326_v12 = vmul.f32 (!%p261_p8), 0.1, %v563_v8 }
  0x26   : > { %vm329_vm2 = vcmp.gt.f32.partialorder (!%p261_p8), %v566_v9, 0.0  ;;  %vm330_vm3 = vcmp.gt.f32.partialorder (!%p261_p8), %v567_v10, 0.0  ;;  %v331_v13 = vmul.f32 (!%p261_p8), 0.1, %v566_v9  ;;  %v332_v14 = vmul.f32 (!%p261_p8), 0.1, %v567_v10 }
  0x27   : > { %v327_v15 = vsel %vm323_vm0, %v562_v7, %v325_v11  ;;  %v328_v16 = vsel %vm324_vm1, %v563_v8, %v326_v12  ;;  %s795_s14 = smov (!%p305_p9, %s666_s14), 1 }
  0x28   : > { %v335_v17 = vpack.c.bf16 %v328_v16, %v327_v15  ;;  %v333_v18 = vsel %vm329_vm2, %v566_v9, %v331_v13  ;;  %v334_v19 = vsel %vm330_vm3, %v567_v10, %v332_v14  ;;  %s557_s23 = sshll.u32 %s795_s14, 3 }
  0x29   : > { %v337_v20 = vpack.c.bf16 %v334_v19, %v333_v18  ;;  %s312_s26 = scalar_lea.vmem %s786_s3, %s557_s23 }
  0x2a   : > { %351 = vrot.lane.b32.xlu1 %v335_v17, %s677_s12  ;;  %344 = vrot.lane.b32.xlu0 %v335_v17, %s678_s19 }
  0x2b   : > { %579 = vmatpush3.bf16.msra.mxu0 %v335_v17 }
  0x2c   : > { %580 = vmatprep.subr.bf16.mxu0 %v676_v4 }
  0x2e   : > { %353 = vrot.lane.b32.xlu1 %v337_v20, %s677_s12  ;;  %346 = vrot.lane.b32.xlu0 %v337_v20, %s678_s19 }
  0x9c   : > { %v352_v21 = vpop.permute.xlu1 %351  ;;  %v345_v22 = vpop.permute.xlu0 %344 }
  0xa0   : > { %v347_v23 = vpop.permute.xlu0 %346  ;;  %v354_v25 = vpop.permute.xlu1 %353 }
  0xa1   : > { %v349_v24 = vsel %vm348_vm5, %v345_v22, %v347_v23  ;;  %v356_v28 = vsel %vm355_vm7, %v352_v21, %v354_v25 }
  0xa2   : > { %581 = vmatpush3.bf16.msra.mxu0 %v349_v24 }
  0xa3   : > { %582 = vmatprep.subr.bf16.mxu0 %v676_v4 }
  0xa6   : > { %583 = vmatpush3.bf16.msra.mxu0 %v356_v28 }
  0xa7   : > { %584 = vmatprep.subr.bf16.mxu0 %v676_v4 }
  0xaa   : > { %585 = vmatpush3.bf16.msra.mxu0 %v373_v29 }
  0xad   : > { %587 = vmatmul.mubr.msk.bf16.vlgmr.msra.gmra.mrb[0].mxu0 %vm365_vm8, %v635_v30 }
 0x180   : > { %v409_v31 = vpop.f32.mrb[0].mxu0 }
 0x181   : > { %v588_v32 = vpop.f32.mrb[1].mxu0 }
 0x182   : > { %v412_v33 = vpop.f32.mrb[2].mxu0 }
 0x183   : > { %v571_v34 = vpack.c.bf16 %v412_v33, %v409_v31  ;;  %v589_v35 = vpop.f32.mrb[3].mxu0 }
 0x185   : > { %572 = vst [vmem:[%s312_s26] sm:$0xff] %v571_v34  }
 0x186 PF: > { %s13_s16 = sadd.s32 1, %s674_s16   ;;  %s788_s12 = smov %s662_s13 }
 0x187   : > { %p10_p10 = scmp.ge.s32.totalorder %s13_s16, 4   ;;  %s789_s13 = smov %s740_s21 }
 0x188   : > { %s790_s14 = smov %s670_s15  ;;  %s791_s15 = smov %s793_s17 }
 0x189   :  { %12 = sbr.rel (!%p10_p10) target bundleno = 3 (0x3), region = 157 }

// kernel: generator2_forward.39
= control target key start
LH: loop header
LB: loop body
LE: loop exit
PB: predicated region body
PF: predicated region fallthrough
CT: control target
= control target key end

     0   :  { %s725_s12 = smov 0   ;;  %s727_s13 = smov 0   ;;  %s814_s0 = inlined_call_operand.vmem [shape: bf16[2,16,256], index: 0, kind: input, shape index: {}, may-alias: {0,1}]   ;;  %s815_s1 = inlined_call_operand.vmem [shape: bf16[2,16,256], index: 1, kind: input, shape index: {}, may-alias: {0,1}]   ;;  %s816_s2 = inlined_call_operand.vmem [shape: bf16[16,81], index: 2, kind: input, shape index: {}]   ;;  %s817_s3 = inlined_call_operand.vmem [shape: bf16[2,16,128], index: 3, kind: output, shape index: {}]  }
   0x1   :  { %s729_s14 = smov 0   ;;  %s731_s15 = smov 0  }
   0x2   :  { %s733_s16 = smov 0  }
   0x3 LB: > { %s25_s17 = sadd.s32 1, %s692_s15  ;;  %p41_p1 = scmp.ne.s32.totalorder %s684_s13, %s680_s12  ;;  %s696_s16 = sphi %s733_s16, %s13_s16   ;;  %s692_s15 = sphi %s731_s15, %s822_s15   ;;  %s688_s14 = sphi %s729_s14, %s821_s14   ;;  %s684_s13 = sphi %s727_s13, %s820_s13   ;;  %s680_s12 = sphi %s725_s12, %s819_s12  }
   0x4   : > { %p27_p0 = scmp.ge.s32.totalorder %s25_s17, 2  ;;  %p42_p2 = scmp.eq.s32.totalorder %s696_s16, 0 }
   0x5   : > { %s34_s20 = sadd.s32 1, %s684_s13  ;;  %p549_p5 = scmp.ge.s32.totalorder %s696_s16, 2 }
   0x6   : > { %s824_s17 = smov (%p27_p0, %s25_s17), 0  ;;  %p756_p3 = por %p42_p2, %p41_p1 }
   0x7   : > { %s29_s19 = ssub.s32 %s692_s15, %s824_s17  ;;  %149 = sbr.rel (%p549_p5) target bundleno = 28 (0x1c), region = 20 }
   0x8   : > { %p32_p4 = scmp.eq.s32.totalorder %s29_s19, 0 }
   0xa   : > { %s764_s21 = scalar_select %p32_p4, %s684_s13, %s34_s20  }
   0xe   : > { %152 = sbr.rel (!%p756_p3) target bundleno = 21 (0x15), region = 24  ;;  %s154_s22 = sand.u32 (%p756_p3), 1, %s684_s13  }
   0xf   : > { %s569_s23 = sshll.u32 (%p756_p3), %s692_s15, 4  ;;  %s550_s24 = sshll.u32 (%p756_p3), %s154_s22, 3 }
  0x10   : > { %s160_s27 = scalar_lea.vmem (%p756_p3), %s814_s0, %s569_s23  ;;  %s156_s28 = scalar_lea.vmem (%p756_p3), [#allocation3], %s550_s24 }
  0x11   : > { %v176_v0 = vld [vmem:[%s160_s27] sm:$0xf] (%p756_p3)  ;;  %v178_v1 = vld [vmem:[%s160_s27 + $0x8] sm:$0xf] (%p756_p3) }
  0x12   : > { %177 = vst [vmem:[%s156_s28] sm:$0xf] (%p756_p3), %v176_v0  ;;  %179 = vst [vmem:[%s156_s28 + $0x4] sm:$0xf] (%p756_p3), %v178_v1 }
  0x15 PF: > { %206 = sbr.rel (!%p756_p3) target bundleno = 28 (0x1c), region = 65  ;;  %s208_s29 = sand.u32 (%p756_p3), 1, %s684_s13  }
  0x16   : > { %s570_s30 = sshll.u32 (%p756_p3), %s692_s15, 4  ;;  %s553_s4 = sshll.u32 (%p756_p3), %s208_s29, 3 }
  0x17   : > { %s478_s7 = scalar_lea.vmem (%p756_p3), %s815_s1, %s570_s30  ;;  %s210_s8 = scalar_lea.vmem (%p756_p3), [#allocation4], %s553_s4 }
  0x18   : > { %v556_v2 = vld [vmem:[%s478_s7 + $0x4] sm:$0xf] (%p756_p3)  ;;  %v557_v3 = vld [vmem:[%s478_s7 + $0xc] sm:$0xf] (%p756_p3) }
  0x19   : > { %232 = vst [vmem:[%s210_s8] sm:$0xf] (%p756_p3), %v556_v2  ;;  %234 = vst [vmem:[%s210_s8 + $0x4] sm:$0xf] (%p756_p3), %v557_v3 }
  0x1c PF: > { %p558_p6 = scmp.ge.s32.totalorder %s696_s16, 1  ;;  %p260_p7 = scmp.lt.s32.totalorder %s696_s16, 3 }
  0x1e   : > { %p261_p8 = pnand %p558_p6, %p260_p7 }
  0x1f   : > { %s267_s9 = sand.u32 (!%p261_p8), 1, %s680_s12   ;;  %v698_v4 = vmov (!%p261_p8), 0.0   ;;  %s699_s12 = smov (!%p261_p8), 122   ;;  %vm702_vm4 = vmmov (!%p261_p8), 0   ;;  %vm348_vm5 = vcmask (!%p261_p8), 1022976   ;;  %vm355_vm6 = vcmask (!%p261_p8), 998400  }
  0x20   : > { %264 = sbr.rel (%p261_p8) target bundleno = 398 (0x18e), region = 106  ;;  %s559_s10 = sshll.u32 (!%p261_p8), %s267_s9, 3  ;;  %594 = vmatprep.subr.bf16.mxu0 (!%p261_p8), %v698_v4  ;;  %606 = vmatprep.mubr.msk.bf16.mxu0 (!%p261_p8), %vm702_vm4, %v698_v4  ;;  %vm362_vm7 = vcmask (!%p261_p8), 973824   ;;  %vm369_vm8 = vcmask (!%p261_p8), 949248   ;;  %vm383_vm9 = vcmask (!%p261_p8), 1040384   ;;  %v704_v33 = vmov (!%p261_p8), 0  }
  0x21   : > { %s269_s11 = scalar_lea.vmem (!%p261_p8), [#allocation3], %s559_s10  ;;  %s276_s18 = scalar_lea.vmem (!%p261_p8), [#allocation4], %s559_s10  ;;  %v385_v34 = vsel (!%p261_p8), %vm383_vm9, 65535, %v704_v33  ;;  %v657_v36 = vld [vmem:[%s816_s2] sm:$0xff] (!%p261_p8)   ;;  %vm379_vm10 = vcmask (!%p261_p8), 662528  }
  0x22   : > { %v575_v5 = vld [vmem:[%s269_s11] sm:$0xff] (!%p261_p8)   ;;  %v579_v6 = vld [vmem:[%s276_s18] sm:$0xff] (!%p261_p8)   ;;  %s700_s19 = smov (!%p261_p8), 125   ;;  %s701_s20 = smov (!%p261_p8), 119   ;;  %v387_v35 = vand.u32 (!%p261_p8), 1065369472, %v385_v34 }
  0x23   : > { %v576_v7 = vunpack.c.l.bf16 (!%p261_p8), %v575_v5  ;;  %v577_v8 = vunpack.c.h.bf16 (!%p261_p8), %v575_v5  ;;  %v580_v9 = vunpack.c.l.bf16 (!%p261_p8), %v579_v6  ;;  %v581_v10 = vunpack.c.h.bf16 (!%p261_p8), %v579_v6  ;;  %s703_s22 = smov (!%p261_p8), 116   ;;  %p305_p9 = scmp.lt.s32.totalorder (!%p261_p8), %s688_s14, 1 }
  0x25   : > { %vm323_vm0 = vcmp.gt.f32.partialorder (!%p261_p8), %v576_v7, 0.0  ;;  %vm324_vm1 = vcmp.gt.f32.partialorder (!%p261_p8), %v577_v8, 0.0  ;;  %v325_v11 = vmul.f32 (!%p261_p8), 0.1, %v576_v7  ;;  %v326_v12 = vmul.f32 (!%p261_p8), 0.1, %v577_v8 }
  0x26   : > { %vm329_vm2 = vcmp.gt.f32.partialorder (!%p261_p8), %v580_v9, 0.0  ;;  %vm330_vm3 = vcmp.gt.f32.partialorder (!%p261_p8), %v581_v10, 0.0  ;;  %v331_v13 = vmul.f32 (!%p261_p8), 0.1, %v580_v9  ;;  %v332_v14 = vmul.f32 (!%p261_p8), 0.1, %v581_v10 }
  0x27   : > { %v327_v15 = vsel %vm323_vm0, %v576_v7, %v325_v11  ;;  %v328_v16 = vsel %vm324_vm1, %v577_v8, %v326_v12  ;;  %s826_s14 = smov (!%p305_p9, %s688_s14), 1 }
  0x28   : > { %v335_v17 = vpack.c.bf16 %v328_v16, %v327_v15  ;;  %v333_v18 = vsel %vm329_vm2, %v580_v9, %v331_v13  ;;  %v334_v19 = vsel %vm330_vm3, %v581_v10, %v332_v14  ;;  %s571_s25 = sshll.u32 %s826_s14, 3 }
  0x29   : > { %v337_v20 = vpack.c.bf16 %v334_v19, %v333_v18  ;;  %s312_s28 = scalar_lea.vmem %s817_s3, %s571_s25 }
  0x2a   : > { %351 = vrot.lane.b32.xlu1 %v335_v17, %s699_s12  ;;  %344 = vrot.lane.b32.xlu0 %v335_v17, %s700_s19 }
  0x2b   : > { %595 = vmatpush3.bf16.msra.mxu0 %v335_v17 }
  0x2c   : > { %596 = vmatprep.subr.bf16.mxu0 %v698_v4 }
  0x2e   : > { %353 = vrot.lane.b32.xlu1 %v337_v20, %s699_s12  ;;  %346 = vrot.lane.b32.xlu0 %v337_v20, %s700_s19 }
  0x32   : > { %360 = vrot.lane.b32.xlu1 %v337_v20, %s701_s20  ;;  %358 = vrot.lane.b32.xlu0 %v335_v17, %s701_s20 }
  0x36   : > { %367 = vrot.lane.b32.xlu1 %v337_v20, %s703_s22  ;;  %365 = vrot.lane.b32.xlu0 %v335_v17, %s703_s22 }
  0x9c   : > { %v352_v21 = vpop.permute.xlu1 %351  ;;  %v345_v22 = vpop.permute.xlu0 %344 }
  0xa0   : > { %v354_v23 = vpop.permute.xlu1 %353  ;;  %v347_v24 = vpop.permute.xlu0 %346 }
  0xa1   : > { %v349_v25 = vsel %vm348_vm5, %v345_v22, %v347_v24  ;;  %v356_v28 = vsel %vm355_vm6, %v352_v21, %v354_v23 }
  0xa2   : > { %597 = vmatpush3.bf16.msra.mxu0 %v349_v25 }
  0xa3   : > { %598 = vmatprep.subr.bf16.mxu0 %v698_v4 }
  0xa4   : > { %v361_v26 = vpop.permute.xlu1 %360  ;;  %v359_v27 = vpop.permute.xlu0 %358 }
  0xa5   : > { %v363_v29 = vsel %vm362_vm7, %v359_v27, %v361_v26 }
  0xa6   : > { %599 = vmatpush3.bf16.msra.mxu0 %v356_v28 }
  0xa7   : > { %600 = vmatprep.subr.bf16.mxu0 %v698_v4 }
  0xa8   : > { %v368_v30 = vpop.permute.xlu1 %367  ;;  %v366_v31 = vpop.permute.xlu0 %365 }
  0xa9   : > { %v370_v32 = vsel %vm369_vm8, %v366_v31, %v368_v30 }
  0xaa   : > { %601 = vmatpush3.bf16.msra.mxu0 %v363_v29 }
  0xab   : > { %602 = vmatprep.subr.bf16.mxu0 %v698_v4 }
  0xae   : > { %603 = vmatpush3.bf16.msra.mxu0 %v370_v32 }
  0xaf   : > { %604 = vmatprep.subr.bf16.mxu0 %v698_v4 }
  0xb2   : > { %605 = vmatpush3.bf16.msra.mxu0 %v387_v35 }
  0xb5   : > { %607 = vmatmul.mubr.msk.bf16.vlgmr.msra.gmra.mrb[0].mxu0 %vm379_vm10, %v657_v36 }
 0x188   : > { %v423_v37 = vpop.f32.mrb[0].mxu0 }
 0x189   : > { %v608_v38 = vpop.f32.mrb[1].mxu0 }
 0x18a   : > { %v426_v39 = vpop.f32.mrb[2].mxu0 }
 0x18b   : > { %v585_v40 = vpack.c.bf16 %v426_v39, %v423_v37  ;;  %v609_v41 = vpop.f32.mrb[3].mxu0 }
 0x18d   : > { %586 = vst [vmem:[%s312_s28] sm:$0xff] %v585_v40  }
 0x18e PF: > { %s13_s16 = sadd.s32 1, %s696_s16   ;;  %s819_s12 = smov %s684_s13 }
 0x18f   : > { %p10_p10 = scmp.ge.s32.totalorder %s13_s16, 4   ;;  %s820_s13 = smov %s764_s21 }
 0x190   : > { %s821_s14 = smov %s692_s15  ;;  %s822_s15 = smov %s824_s17 }
 0x191   :  { %12 = sbr.rel (!%p10_p10) target bundleno = 3 (0x3), region = 157 }

// kernel: tile.3
= control target key start
LH: loop header
LB: loop body
LE: loop exit
PB: predicated region body
PF: predicated region fallthrough
CT: control target
= control target key end

     0   :  { %s91_s8 = smov 125   ;;  %vm19_vm0 = vcmask 7168   ;;  %s92_s9 = smov 126   ;;  %s121_s0 = inlined_call_operand.vmem [shape: bf16[2,8], index: 0, kind: input, shape index: {}]   ;;  %s122_s1 = inlined_call_operand.vmem [shape: bf16[16,1], index: 1, kind: output, shape index: {}]  }
   0x1   :  { %v14_v0 = vld [vmem:[%s121_s0] sm:$0x1]  ;;  %s90_s0 = smov 127   ;;  %s93_s10 = smov 124  }
   0x2   :  { %v15_v1 = vunpack.c.l.bf16 %v14_v0  ;;  %s94_s11 = smov 123   ;;  %s95_s12 = smov 122  }
   0x3   :  { %s96_s13 = smov 121  }
   0x4   :  { %17 = vst [vmem:[#allocation1] sm:$0x3] %v15_v1 }
   0xb   :  { %v21_v2 = vld [vmem:[#allocation1] sm:$0x3]  }
   0xc   :  { %v33_v3 = vld [vmem:[#allocation1] sm:$0x3]   ;;  %22 = vrot.lane.b32.xlu0 %v21_v2, %s90_s0 }
   0xd   :  { %34 = vrot.lane.b32.xlu1 %v33_v3, %s91_s8  ;;  %v27_v4 = vld [vmem:[#allocation1] sm:$0x3]  }
   0xe   :  { %v39_v5 = vld [vmem:[#allocation1] sm:$0x3]  }
   0xf   :  { %v18_v6 = vld [vmem:[#allocation1] sm:$0x3]  }
  0x10   :  { %20 = vst.msk [vmem:[#allocation0] ss:$8 sm:$0x3] %vm19_vm0, %v18_v6   ;;  %28 = vrot.lane.b32.xlu0 %v27_v4, %s92_s9  ;;  %v45_v7 = vld [vmem:[#allocation1] sm:$0x3]  }
  0x11   :  { %40 = vrot.lane.b32.xlu1 %v39_v5, %s93_s10  ;;  %v51_v8 = vld [vmem:[#allocation1] sm:$0x3]  }
  0x12   :  { %v57_v9 = vld [vmem:[#allocation1] sm:$0x3]  }
  0x14   :  { %46 = vrot.lane.b32.xlu0 %v45_v7, %s94_s11 }
  0x15   :  { %52 = vrot.lane.b32.xlu1 %v51_v8, %s95_s12 }
  0x18   :  { %58 = vrot.lane.b32.xlu0 %v57_v9, %s96_s13 }
  0x7e   :  { %v23_v10 = vpop.permute.xlu0 %22  }
  0x7f   :  { %v35_v11 = vpop.permute.xlu1 %34   ;;  %26 = vst.msk [vmem:[#allocation0 + $0x1] ss:$8 sm:$0x3] %vm19_vm0, %v23_v10  }
  0x80   :  { %38 = vst.msk [vmem:[#allocation0 + $0x3] ss:$8 sm:$0x3] %vm19_vm0, %v35_v11  }
  0x82   :  { %v29_v12 = vpop.permute.xlu0 %28  }
  0x83   :  { %v41_v13 = vpop.permute.xlu1 %40   ;;  %32 = vst.msk [vmem:[#allocation0 + $0x2] ss:$8 sm:$0x3] %vm19_vm0, %v29_v12  }
  0x84   :  { %44 = vst.msk [vmem:[#allocation0 + $0x4] ss:$8 sm:$0x3] %vm19_vm0, %v41_v13  }
  0x86   :  { %v47_v14 = vpop.permute.xlu0 %46  }
  0x87   :  { %v53_v15 = vpop.permute.xlu1 %52   ;;  %50 = vst.msk [vmem:[#allocation0 + $0x5] ss:$8 sm:$0x3] %vm19_vm0, %v47_v14  }
  0x88   :  { %56 = vst.msk [vmem:[#allocation0 + $0x6] ss:$8 sm:$0x3] %vm19_vm0, %v53_v15  }
  0x8a   :  { %v59_v16 = vpop.permute.xlu0 %58  }
  0x8b   :  { %62 = vst.msk [vmem:[#allocation0 + $0x7] ss:$8 sm:$0x3] %vm19_vm0, %v59_v16  }
  0x92   :  { %v67_v17 = vld [vmem:[#allocation0] sm:$0xff]  ;;  %v72_v18 = vld [vmem:[#allocation0 + $0x8] sm:$0xff] }
  0x93   :  { %v81_v19 = vpack.c.bf16 %v72_v18, %v67_v17 }
  0x95   :  { %82 = vst [vmem:[%s122_s1] sm:$0xff] %v81_v19  }

// kernel: generator2_forward.41
= control target key start
LH: loop header
LB: loop body
LE: loop exit
PB: predicated region body
PF: predicated region fallthrough
CT: control target
= control target key end

     0   :  { %s725_s12 = smov 0   ;;  %s727_s13 = smov 0   ;;  %s814_s0 = inlined_call_operand.vmem [shape: bf16[2,16,256], index: 0, kind: input, shape index: {}, may-alias: {0,1}]   ;;  %s815_s1 = inlined_call_operand.vmem [shape: bf16[2,16,256], index: 1, kind: input, shape index: {}, may-alias: {0,1}]   ;;  %s816_s2 = inlined_call_operand.vmem [shape: bf16[16,81], index: 2, kind: input, shape index: {}]   ;;  %s817_s3 = inlined_call_operand.vmem [shape: bf16[2,16,128], index: 3, kind: output, shape index: {}]  }
   0x1   :  { %s729_s14 = smov 0   ;;  %s731_s15 = smov 0  }
   0x2   :  { %s733_s16 = smov 0  }
   0x3 LB: > { %s25_s17 = sadd.s32 1, %s692_s15  ;;  %p41_p1 = scmp.ne.s32.totalorder %s684_s13, %s680_s12  ;;  %s696_s16 = sphi %s733_s16, %s13_s16   ;;  %s692_s15 = sphi %s731_s15, %s822_s15   ;;  %s688_s14 = sphi %s729_s14, %s821_s14   ;;  %s684_s13 = sphi %s727_s13, %s820_s13   ;;  %s680_s12 = sphi %s725_s12, %s819_s12  }
   0x4   : > { %p27_p0 = scmp.ge.s32.totalorder %s25_s17, 2  ;;  %p42_p2 = scmp.eq.s32.totalorder %s696_s16, 0 }
   0x5   : > { %s34_s20 = sadd.s32 1, %s684_s13  ;;  %p549_p5 = scmp.ge.s32.totalorder %s696_s16, 2 }
   0x6   : > { %s824_s17 = smov (%p27_p0, %s25_s17), 0  ;;  %p756_p3 = por %p42_p2, %p41_p1 }
   0x7   : > { %s29_s19 = ssub.s32 %s692_s15, %s824_s17  ;;  %149 = sbr.rel (%p549_p5) target bundleno = 28 (0x1c), region = 20 }
   0x8   : > { %p32_p4 = scmp.eq.s32.totalorder %s29_s19, 0 }
   0xa   : > { %s764_s21 = scalar_select %p32_p4, %s684_s13, %s34_s20  }
   0xe   : > { %152 = sbr.rel (!%p756_p3) target bundleno = 21 (0x15), region = 24  ;;  %s154_s22 = sand.u32 (%p756_p3), 1, %s684_s13  }
   0xf   : > { %s569_s23 = sshll.u32 (%p756_p3), %s692_s15, 4  ;;  %s550_s24 = sshll.u32 (%p756_p3), %s154_s22, 3 }
  0x10   : > { %s160_s27 = scalar_lea.vmem (%p756_p3), %s814_s0, %s569_s23  ;;  %s156_s28 = scalar_lea.vmem (%p756_p3), [#allocation3], %s550_s24 }
  0x11   : > { %v176_v0 = vld [vmem:[%s160_s27] sm:$0xf] (%p756_p3)  ;;  %v178_v1 = vld [vmem:[%s160_s27 + $0x8] sm:$0xf] (%p756_p3) }
  0x12   : > { %177 = vst [vmem:[%s156_s28] sm:$0xf] (%p756_p3), %v176_v0  ;;  %179 = vst [vmem:[%s156_s28 + $0x4] sm:$0xf] (%p756_p3), %v178_v1 }
  0x15 PF: > { %206 = sbr.rel (!%p756_p3) target bundleno = 28 (0x1c), region = 65  ;;  %s208_s29 = sand.u32 (%p756_p3), 1, %s684_s13  }
  0x16   : > { %s570_s30 = sshll.u32 (%p756_p3), %s692_s15, 4  ;;  %s553_s4 = sshll.u32 (%p756_p3), %s208_s29, 3 }
  0x17   : > { %s478_s7 = scalar_lea.vmem (%p756_p3), %s815_s1, %s570_s30  ;;  %s210_s8 = scalar_lea.vmem (%p756_p3), [#allocation4], %s553_s4 }
  0x18   : > { %v556_v2 = vld [vmem:[%s478_s7 + $0x4] sm:$0xf] (%p756_p3)  ;;  %v557_v3 = vld [vmem:[%s478_s7 + $0xc] sm:$0xf] (%p756_p3) }
  0x19   : > { %232 = vst [vmem:[%s210_s8] sm:$0xf] (%p756_p3), %v556_v2  ;;  %234 = vst [vmem:[%s210_s8 + $0x4] sm:$0xf] (%p756_p3), %v557_v3 }
  0x1c PF: > { %p558_p6 = scmp.ge.s32.totalorder %s696_s16, 1  ;;  %p260_p7 = scmp.lt.s32.totalorder %s696_s16, 3 }
  0x1e   : > { %p261_p8 = pnand %p558_p6, %p260_p7 }
  0x1f   : > { %s267_s9 = sand.u32 (!%p261_p8), 1, %s680_s12   ;;  %v698_v4 = vmov (!%p261_p8), 0.0   ;;  %s699_s12 = smov (!%p261_p8), 118   ;;  %vm702_vm4 = vmmov (!%p261_p8), 0   ;;  %vm348_vm5 = vcmask (!%p261_p8), 1006592   ;;  %vm355_vm6 = vcmask (!%p261_p8), 965632  }
  0x20   : > { %264 = sbr.rel (%p261_p8) target bundleno = 398 (0x18e), region = 106  ;;  %s559_s10 = sshll.u32 (!%p261_p8), %s267_s9, 3  ;;  %594 = vmatprep.subr.bf16.mxu0 (!%p261_p8), %v698_v4  ;;  %606 = vmatprep.mubr.msk.bf16.mxu0 (!%p261_p8), %vm702_vm4, %v698_v4  ;;  %vm362_vm7 = vcmask (!%p261_p8), 924672   ;;  %vm369_vm8 = vcmask (!%p261_p8), 883712   ;;  %vm383_vm9 = vcmask (!%p261_p8), 1040384   ;;  %v704_v33 = vmov (!%p261_p8), 0  }
  0x21   : > { %s269_s11 = scalar_lea.vmem (!%p261_p8), [#allocation3], %s559_s10  ;;  %s276_s18 = scalar_lea.vmem (!%p261_p8), [#allocation4], %s559_s10  ;;  %v385_v34 = vsel (!%p261_p8), %vm383_vm9, 65535, %v704_v33  ;;  %v657_v36 = vld [vmem:[%s816_s2] sm:$0xff] (!%p261_p8)   ;;  %vm379_vm10 = vcmask (!%p261_p8), 662528  }
  0x22   : > { %v575_v5 = vld [vmem:[%s269_s11] sm:$0xff] (!%p261_p8)   ;;  %v579_v6 = vld [vmem:[%s276_s18] sm:$0xff] (!%p261_p8)   ;;  %s700_s19 = smov (!%p261_p8), 123   ;;  %s701_s20 = smov (!%p261_p8), 113   ;;  %v387_v35 = vand.u32 (!%p261_p8), 1065369472, %v385_v34 }
  0x23   : > { %v576_v7 = vunpack.c.l.bf16 (!%p261_p8), %v575_v5  ;;  %v577_v8 = vunpack.c.h.bf16 (!%p261_p8), %v575_v5  ;;  %v580_v9 = vunpack.c.l.bf16 (!%p261_p8), %v579_v6  ;;  %v581_v10 = vunpack.c.h.bf16 (!%p261_p8), %v579_v6  ;;  %s703_s22 = smov (!%p261_p8), 108   ;;  %p305_p9 = scmp.lt.s32.totalorder (!%p261_p8), %s688_s14, 1 }
  0x25   : > { %vm323_vm0 = vcmp.gt.f32.partialorder (!%p261_p8), %v576_v7, 0.0  ;;  %vm324_vm1 = vcmp.gt.f32.partialorder (!%p261_p8), %v577_v8, 0.0  ;;  %v325_v11 = vmul.f32 (!%p261_p8), 0.1, %v576_v7  ;;  %v326_v12 = vmul.f32 (!%p261_p8), 0.1, %v577_v8 }
  0x26   : > { %vm329_vm2 = vcmp.gt.f32.partialorder (!%p261_p8), %v580_v9, 0.0  ;;  %vm330_vm3 = vcmp.gt.f32.partialorder (!%p261_p8), %v581_v10, 0.0  ;;  %v331_v13 = vmul.f32 (!%p261_p8), 0.1, %v580_v9  ;;  %v332_v14 = vmul.f32 (!%p261_p8), 0.1, %v581_v10 }
  0x27   : > { %v327_v15 = vsel %vm323_vm0, %v576_v7, %v325_v11  ;;  %v328_v16 = vsel %vm324_vm1, %v577_v8, %v326_v12  ;;  %s826_s14 = smov (!%p305_p9, %s688_s14), 1 }
  0x28   : > { %v335_v17 = vpack.c.bf16 %v328_v16, %v327_v15  ;;  %v333_v18 = vsel %vm329_vm2, %v580_v9, %v331_v13  ;;  %v334_v19 = vsel %vm330_vm3, %v581_v10, %v332_v14  ;;  %s571_s25 = sshll.u32 %s826_s14, 3 }
  0x29   : > { %v337_v20 = vpack.c.bf16 %v334_v19, %v333_v18  ;;  %s312_s28 = scalar_lea.vmem %s817_s3, %s571_s25 }
  0x2a   : > { %351 = vrot.lane.b32.xlu1 %v335_v17, %s699_s12  ;;  %344 = vrot.lane.b32.xlu0 %v335_v17, %s700_s19 }
  0x2b   : > { %595 = vmatpush3.bf16.msra.mxu0 %v335_v17 }
  0x2c   : > { %596 = vmatprep.subr.bf16.mxu0 %v698_v4 }
  0x2e   : > { %353 = vrot.lane.b32.xlu1 %v337_v20, %s699_s12  ;;  %346 = vrot.lane.b32.xlu0 %v337_v20, %s700_s19 }
  0x32   : > { %360 = vrot.lane.b32.xlu1 %v337_v20, %s701_s20  ;;  %358 = vrot.lane.b32.xlu0 %v335_v17, %s701_s20 }
  0x36   : > { %367 = vrot.lane.b32.xlu1 %v337_v20, %s703_s22  ;;  %365 = vrot.lane.b32.xlu0 %v335_v17, %s703_s22 }
  0x9c   : > { %v352_v21 = vpop.permute.xlu1 %351  ;;  %v345_v22 = vpop.permute.xlu0 %344 }
  0xa0   : > { %v354_v23 = vpop.permute.xlu1 %353  ;;  %v347_v24 = vpop.permute.xlu0 %346 }
  0xa1   : > { %v349_v25 = vsel %vm348_vm5, %v345_v22, %v347_v24  ;;  %v356_v28 = vsel %vm355_vm6, %v352_v21, %v354_v23 }
  0xa2   : > { %597 = vmatpush3.bf16.msra.mxu0 %v349_v25 }
  0xa3   : > { %598 = vmatprep.subr.bf16.mxu0 %v698_v4 }
  0xa4   : > { %v361_v26 = vpop.permute.xlu1 %360  ;;  %v359_v27 = vpop.permute.xlu0 %358 }
  0xa5   : > { %v363_v29 = vsel %vm362_vm7, %v359_v27, %v361_v26 }
  0xa6   : > { %599 = vmatpush3.bf16.msra.mxu0 %v356_v28 }
  0xa7   : > { %600 = vmatprep.subr.bf16.mxu0 %v698_v4 }
  0xa8   : > { %v368_v30 = vpop.permute.xlu1 %367  ;;  %v366_v31 = vpop.permute.xlu0 %365 }
  0xa9   : > { %v370_v32 = vsel %vm369_vm8, %v366_v31, %v368_v30 }
  0xaa   : > { %601 = vmatpush3.bf16.msra.mxu0 %v363_v29 }
  0xab   : > { %602 = vmatprep.subr.bf16.mxu0 %v698_v4 }
  0xae   : > { %603 = vmatpush3.bf16.msra.mxu0 %v370_v32 }
  0xaf   : > { %604 = vmatprep.subr.bf16.mxu0 %v698_v4 }
  0xb2   : > { %605 = vmatpush3.bf16.msra.mxu0 %v387_v35 }
  0xb5   : > { %607 = vmatmul.mubr.msk.bf16.vlgmr.msra.gmra.mrb[0].mxu0 %vm379_vm10, %v657_v36 }
 0x188   : > { %v423_v37 = vpop.f32.mrb[0].mxu0 }
 0x189   : > { %v608_v38 = vpop.f32.mrb[1].mxu0 }
 0x18a   : > { %v426_v39 = vpop.f32.mrb[2].mxu0 }
 0x18b   : > { %v585_v40 = vpack.c.bf16 %v426_v39, %v423_v37  ;;  %v609_v41 = vpop.f32.mrb[3].mxu0 }
 0x18d   : > { %586 = vst [vmem:[%s312_s28] sm:$0xff] %v585_v40  }
 0x18e PF: > { %s13_s16 = sadd.s32 1, %s696_s16   ;;  %s819_s12 = smov %s684_s13 }
 0x18f   : > { %p10_p10 = scmp.ge.s32.totalorder %s13_s16, 4   ;;  %s820_s13 = smov %s764_s21 }
 0x190   : > { %s821_s14 = smov %s692_s15  ;;  %s822_s15 = smov %s824_s17 }
 0x191   :  { %12 = sbr.rel (!%p10_p10) target bundleno = 3 (0x3), region = 157 }

// kernel: generator2_forward.35
= control target key start
LH: loop header
LB: loop body
LE: loop exit
PB: predicated region body
PF: predicated region fallthrough
CT: control target
= control target key end

     0   :  { %s701_s12 = smov 0   ;;  %s703_s13 = smov 0   ;;  %s783_s0 = inlined_call_operand.vmem [shape: bf16[2,16,256], index: 0, kind: input, shape index: {}, may-alias: {0,1}]   ;;  %s784_s1 = inlined_call_operand.vmem [shape: bf16[2,16,256], index: 1, kind: input, shape index: {}, may-alias: {0,1}]   ;;  %s785_s2 = inlined_call_operand.vmem [shape: bf16[16,49], index: 2, kind: input, shape index: {}]   ;;  %s786_s3 = inlined_call_operand.vmem [shape: bf16[2,16,128], index: 3, kind: output, shape index: {}]  }
   0x1   :  { %s705_s14 = smov 0   ;;  %s707_s15 = smov 0  }
   0x2   :  { %s709_s16 = smov 0  }
   0x3 LB: > { %s25_s17 = sadd.s32 1, %s670_s15  ;;  %p41_p1 = scmp.ne.s32.totalorder %s662_s13, %s658_s12  ;;  %s674_s16 = sphi %s709_s16, %s13_s16   ;;  %s670_s15 = sphi %s707_s15, %s791_s15   ;;  %s666_s14 = sphi %s705_s14, %s790_s14   ;;  %s662_s13 = sphi %s703_s13, %s789_s13   ;;  %s658_s12 = sphi %s701_s12, %s788_s12  }
   0x4   : > { %p27_p0 = scmp.ge.s32.totalorder %s25_s17, 2  ;;  %p42_p2 = scmp.eq.s32.totalorder %s674_s16, 0 }
   0x5   : > { %s34_s20 = sadd.s32 1, %s662_s13  ;;  %p535_p5 = scmp.ge.s32.totalorder %s674_s16, 2 }
   0x6   : > { %s793_s17 = smov (%p27_p0, %s25_s17), 0  ;;  %p732_p3 = por %p42_p2, %p41_p1 }
   0x7   : > { %s29_s19 = ssub.s32 %s670_s15, %s793_s17  ;;  %149 = sbr.rel (%p535_p5) target bundleno = 28 (0x1c), region = 20 }
   0x8   : > { %p32_p4 = scmp.eq.s32.totalorder %s29_s19, 0 }
   0xa   : > { %s740_s21 = scalar_select %p32_p4, %s662_s13, %s34_s20  }
   0xe   : > { %152 = sbr.rel (!%p732_p3) target bundleno = 21 (0x15), region = 24  ;;  %s154_s22 = sand.u32 (%p732_p3), 1, %s662_s13  }
   0xf   : > { %s555_s23 = sshll.u32 (%p732_p3), %s670_s15, 4  ;;  %s536_s24 = sshll.u32 (%p732_p3), %s154_s22, 3 }
  0x10   : > { %s160_s27 = scalar_lea.vmem (%p732_p3), %s783_s0, %s555_s23  ;;  %s156_s28 = scalar_lea.vmem (%p732_p3), [#allocation3], %s536_s24 }
  0x11   : > { %v176_v0 = vld [vmem:[%s160_s27] sm:$0xf] (%p732_p3)  ;;  %v178_v1 = vld [vmem:[%s160_s27 + $0x8] sm:$0xf] (%p732_p3) }
  0x12   : > { %177 = vst [vmem:[%s156_s28] sm:$0xf] (%p732_p3), %v176_v0  ;;  %179 = vst [vmem:[%s156_s28 + $0x4] sm:$0xf] (%p732_p3), %v178_v1 }
  0x15 PF: > { %206 = sbr.rel (!%p732_p3) target bundleno = 28 (0x1c), region = 65  ;;  %s208_s29 = sand.u32 (%p732_p3), 1, %s662_s13  }
  0x16   : > { %s556_s30 = sshll.u32 (%p732_p3), %s670_s15, 4  ;;  %s539_s4 = sshll.u32 (%p732_p3), %s208_s29, 3 }
  0x17   : > { %s464_s7 = scalar_lea.vmem (%p732_p3), %s784_s1, %s556_s30  ;;  %s210_s8 = scalar_lea.vmem (%p732_p3), [#allocation4], %s539_s4 }
  0x18   : > { %v542_v2 = vld [vmem:[%s464_s7 + $0x4] sm:$0xf] (%p732_p3)  ;;  %v543_v3 = vld [vmem:[%s464_s7 + $0xc] sm:$0xf] (%p732_p3) }
  0x19   : > { %232 = vst [vmem:[%s210_s8] sm:$0xf] (%p732_p3), %v542_v2  ;;  %234 = vst [vmem:[%s210_s8 + $0x4] sm:$0xf] (%p732_p3), %v543_v3 }
  0x1c PF: > { %p544_p6 = scmp.ge.s32.totalorder %s674_s16, 1  ;;  %p260_p7 = scmp.lt.s32.totalorder %s674_s16, 3 }
  0x1e   : > { %p261_p8 = pnand %p544_p6, %p260_p7 }
  0x1f   : > { %s267_s9 = sand.u32 (!%p261_p8), 1, %s658_s12   ;;  %v676_v4 = vmov (!%p261_p8), 0.0   ;;  %s677_s12 = smov (!%p261_p8), 118   ;;  %vm679_vm4 = vmmov (!%p261_p8), 0   ;;  %vm348_vm5 = vcmask (!%p261_p8), 1006592   ;;  %vm369_vm6 = vcmask (!%p261_p8), 1040384  }
  0x20   : > { %264 = sbr.rel (%p261_p8) target bundleno = 390 (0x186), region = 106  ;;  %s545_s10 = sshll.u32 (!%p261_p8), %s267_s9, 3  ;;  %578 = vmatprep.subr.bf16.mxu0 (!%p261_p8), %v676_v4  ;;  %586 = vmatprep.mubr.msk.bf16.mxu0 (!%p261_p8), %vm679_vm4, %v676_v4  ;;  %vm355_vm7 = vcmask (!%p261_p8), 965632   ;;  %v680_v26 = vmov (!%p261_p8), 0   ;;  %v635_v30 = vld [vmem:[%s785_s2] sm:$0xff] (!%p261_p8)   ;;  %vm365_vm8 = vcmask (!%p261_p8), 400384  }
  0x21   : > { %s269_s11 = scalar_lea.vmem (!%p261_p8), [#allocation3], %s545_s10  ;;  %s276_s18 = scalar_lea.vmem (!%p261_p8), [#allocation4], %s545_s10  ;;  %v371_v27 = vsel (!%p261_p8), %vm369_vm6, 65535, %v680_v26 }
  0x22   : > { %v561_v5 = vld [vmem:[%s269_s11] sm:$0xff] (!%p261_p8)   ;;  %v565_v6 = vld [vmem:[%s276_s18] sm:$0xff] (!%p261_p8)   ;;  %s678_s19 = smov (!%p261_p8), 123   ;;  %v373_v29 = vand.u32 (!%p261_p8), 1065369472, %v371_v27  ;;  %p305_p9 = scmp.lt.s32.totalorder (!%p261_p8), %s666_s14, 1 }
  0x23   : > { %v562_v7 = vunpack.c.l.bf16 (!%p261_p8), %v561_v5  ;;  %v563_v8 = vunpack.c.h.bf16 (!%p261_p8), %v561_v5  ;;  %v566_v9 = vunpack.c.l.bf16 (!%p261_p8), %v565_v6  ;;  %v567_v10 = vunpack.c.h.bf16 (!%p261_p8), %v565_v6 }
  0x25   : > { %vm323_vm0 = vcmp.gt.f32.partialorder (!%p261_p8), %v562_v7, 0.0  ;;  %vm324_vm1 = vcmp.gt.f32.partialorder (!%p261_p8), %v563_v8, 0.0  ;;  %v325_v11 = vmul.f32 (!%p261_p8), 0.1, %v562_v7  ;;  %v326_v12 = vmul.f32 (!%p261_p8), 0.1, %v563_v8 }
  0x26   : > { %vm329_vm2 = vcmp.gt.f32.partialorder (!%p261_p8), %v566_v9, 0.0  ;;  %vm330_vm3 = vcmp.gt.f32.partialorder (!%p261_p8), %v567_v10, 0.0  ;;  %v331_v13 = vmul.f32 (!%p261_p8), 0.1, %v566_v9  ;;  %v332_v14 = vmul.f32 (!%p261_p8), 0.1, %v567_v10 }
  0x27   : > { %v327_v15 = vsel %vm323_vm0, %v562_v7, %v325_v11  ;;  %v328_v16 = vsel %vm324_vm1, %v563_v8, %v326_v12  ;;  %s795_s14 = smov (!%p305_p9, %s666_s14), 1 }
  0x28   : > { %v335_v17 = vpack.c.bf16 %v328_v16, %v327_v15  ;;  %v333_v18 = vsel %vm329_vm2, %v566_v9, %v331_v13  ;;  %v334_v19 = vsel %vm330_vm3, %v567_v10, %v332_v14  ;;  %s557_s23 = sshll.u32 %s795_s14, 3 }
  0x29   : > { %v337_v20 = vpack.c.bf16 %v334_v19, %v333_v18  ;;  %s312_s26 = scalar_lea.vmem %s786_s3, %s557_s23 }
  0x2a   : > { %351 = vrot.lane.b32.xlu1 %v335_v17, %s677_s12  ;;  %344 = vrot.lane.b32.xlu0 %v335_v17, %s678_s19 }
  0x2b   : > { %579 = vmatpush3.bf16.msra.mxu0 %v335_v17 }
  0x2c   : > { %580 = vmatprep.subr.bf16.mxu0 %v676_v4 }
  0x2e   : > { %353 = vrot.lane.b32.xlu1 %v337_v20, %s677_s12  ;;  %346 = vrot.lane.b32.xlu0 %v337_v20, %s678_s19 }
  0x9c   : > { %v352_v21 = vpop.permute.xlu1 %351  ;;  %v345_v22 = vpop.permute.xlu0 %344 }
  0xa0   : > { %v347_v23 = vpop.permute.xlu0 %346  ;;  %v354_v25 = vpop.permute.xlu1 %353 }
  0xa1   : > { %v349_v24 = vsel %vm348_vm5, %v345_v22, %v347_v23  ;;  %v356_v28 = vsel %vm355_vm7, %v352_v21, %v354_v25 }
  0xa2   : > { %581 = vmatpush3.bf16.msra.mxu0 %v349_v24 }
  0xa3   : > { %582 = vmatprep.subr.bf16.mxu0 %v676_v4 }
  0xa6   : > { %583 = vmatpush3.bf16.msra.mxu0 %v356_v28 }
  0xa7   : > { %584 = vmatprep.subr.bf16.mxu0 %v676_v4 }
  0xaa   : > { %585 = vmatpush3.bf16.msra.mxu0 %v373_v29 }
  0xad   : > { %587 = vmatmul.mubr.msk.bf16.vlgmr.msra.gmra.mrb[0].mxu0 %vm365_vm8, %v635_v30 }
 0x180   : > { %v409_v31 = vpop.f32.mrb[0].mxu0 }
 0x181   : > { %v588_v32 = vpop.f32.mrb[1].mxu0 }
 0x182   : > { %v412_v33 = vpop.f32.mrb[2].mxu0 }
 0x183   : > { %v571_v34 = vpack.c.bf16 %v412_v33, %v409_v31  ;;  %v589_v35 = vpop.f32.mrb[3].mxu0 }
 0x185   : > { %572 = vst [vmem:[%s312_s26] sm:$0xff] %v571_v34  }
 0x186 PF: > { %s13_s16 = sadd.s32 1, %s674_s16   ;;  %s788_s12 = smov %s662_s13 }
 0x187   : > { %p10_p10 = scmp.ge.s32.totalorder %s13_s16, 4   ;;  %s789_s13 = smov %s740_s21 }
 0x188   : > { %s790_s14 = smov %s670_s15  ;;  %s791_s15 = smov %s793_s17 }
 0x189   :  { %12 = sbr.rel (!%p10_p10) target bundleno = 3 (0x3), region = 157 }

// kernel: generator2_forward.44
= control target key start
LH: loop header
LB: loop body
LE: loop exit
PB: predicated region body
PF: predicated region fallthrough
CT: control target
= control target key end

     0   :  { %s543_s12 = smov 0   ;;  %s545_s13 = smov 0   ;;  %s586_s0 = inlined_call_operand.vmem [shape: bf16[2,8,256], index: 0, kind: input, shape index: {}, may-alias: {0,1}]   ;;  %s587_s1 = inlined_call_operand.vmem [shape: bf16[2,8,256], index: 1, kind: input, shape index: {}, may-alias: {0,1}]   ;;  %s588_s2 = inlined_call_operand.vmem [shape: bf16[8,25], index: 2, kind: input, shape index: {}]   ;;  %s589_s3 = inlined_call_operand.vmem [shape: bf16[2,8,128], index: 3, kind: output, shape index: {}]  }
   0x1   :  { %s547_s14 = smov 0  }
   0x2 LB: > { %s25_s15 = sadd.s32 1, %s512_s13  ;;  %p432_p0 = scmp.ge.s32.totalorder %s516_s14, 1  ;;  %s516_s14 = sphi %s547_s14, %s13_s14   ;;  %s512_s13 = sphi %s545_s13, %s591_s13   ;;  %s508_s12 = sphi %s543_s12, %s590_s12  }
   0x3   : > { %p27_p1 = scmp.ge.s32.totalorder %s25_s15, 2  ;;  %p175_p2 = scmp.lt.s32.totalorder %s516_s14, 3 }
   0x5   : > { %s593_s15 = smov (%p27_p1, %s25_s15), 0  ;;  %p176_p3 = pnand %p432_p0, %p175_p2 }
   0x6   : > { %p213_p4 = scmp.lt.s32.totalorder (!%p176_p3), %s508_s12, 1  ;;  %v518_v5 = vmov (!%p176_p3), 0.0   ;;  %vm519_vm2 = vmmov (!%p176_p3), 0   ;;  %s520_s24 = smov (!%p176_p3), 126   ;;  %vm273_vm3 = vcmask (!%p176_p3), 1043456   ;;  %vm271_vm4 = vcmask (!%p176_p3), 1031168  }
   0x7   : > { %179 = sbr.rel (%p176_p3) target bundleno = 368 (0x170), region = 32  ;;  %455 = vmatprep.subr.bf16.mxu0 (!%p176_p3), %v518_v5  ;;  %459 = vmatprep.mubr.msk.bf16.mxu0 (!%p176_p3), %vm519_vm2, %v518_v5  ;;  %s521_s25 = smov (!%p176_p3), 127   ;;  %vm265_vm5 = vcmask (!%p176_p3), 1039360   ;;  %vm286_vm6 = vcmask (!%p176_p3), 1044480   ;;  %v522_v14 = vmov (!%p176_p3), 65535   ;;  %vm282_vm7 = vcmask (!%p176_p3), 203776  }
   0x8   : > { %v287_v15 = vsel (!%p176_p3), %vm273_vm3, 4294967295, %v522_v14  ;;  %v281_v25 = vld [vmem:[%s588_s2] sm:$0xf] (!%p176_p3) }
   0x9   : > { %v288_v21 = vsel (!%p176_p3), %vm286_vm6, %v287_v15, 0 }
   0xe   : > { %s595_s12 = smov (!%p213_p4, %s508_s12), 1 }
   0xf   : > { %s443_s16 = sshll.u32 %s595_s12, 3  ;;  %s437_s28 = sshll.u32 %s595_s12, 2 }
  0x10   : > { %s220_s19 = scalar_lea.vmem %s586_s0, %s443_s16  ;;  %s445_s20 = sadd.s32 4, %s443_s16 }
  0x11   : > { %s229_s23 = scalar_lea.vmem %s587_s1, %s445_s20  ;;  %v240_v0 = vld [vmem:[%s220_s19] sm:$0xf]  ;;  %s237_s4 = scalar_lea.vmem %s589_s3, %s437_s28 }
  0x12   : > { %v241_v1 = vunpack.c.l.bf16 %v240_v0  ;;  %v242_v2 = vld [vmem:[%s229_s23] sm:$0xf] }
  0x13   : > { %v243_v3 = vunpack.c.l.bf16 %v242_v2 }
  0x14   : > { %vm244_vm0 = vcmp.gt.f32.partialorder %v241_v1, 0.0  ;;  %v245_v4 = vmul.f32 0.1, %v241_v1 }
  0x15   : > { %vm247_vm1 = vcmp.gt.f32.partialorder %v243_v3, 0.0  ;;  %v248_v6 = vmul.f32 0.1, %v243_v3 }
  0x16   : > { %v246_v7 = vsel %vm244_vm0, %v241_v1, %v245_v4 }
  0x17   : > { %v249_v8 = vsel %vm247_vm1, %v243_v3, %v248_v6  ;;  %v492_v10 = vpack.c.bf16 %v246_v7, %v246_v7 }
  0x18   : > { %v449_v9 = vpack.c.bf16 %v249_v8, %v246_v7  ;;  %v493_v11 = vpack.c.bf16 %v249_v8, %v249_v8 }
  0x19   : > { %267 = vrot.lane.b32.xlu1 %v492_v10, %s520_s24  ;;  %261 = vrot.lane.b32.xlu0 %v492_v10, %s521_s25 }
  0x1a   : > { %450 = vst [vmem:[#allocation2] sm:$0xff] %v449_v9  }
  0x1d   : > { %269 = vrot.lane.b32.xlu1 %v493_v11, %s520_s24  ;;  %263 = vrot.lane.b32.xlu0 %v493_v11, %s521_s25 }
  0x21   : > { %v254_v16 = vld [vmem:[#allocation2] sm:$0xf] }
  0x8b   : > { %v268_v12 = vpop.permute.xlu1 %267  ;;  %v262_v13 = vpop.permute.xlu0 %261 }
  0x8f   : > { %v270_v17 = vpop.permute.xlu1 %269  ;;  %v264_v18 = vpop.permute.xlu0 %263 }
  0x90   : > { %v272_v19 = vsel %vm271_vm4, %v268_v12, %v270_v17  ;;  %v266_v20 = vsel %vm265_vm5, %v262_v13, %v264_v18 }
  0x91   : > { %v280_v22 = vsel %vm273_vm3, %v272_v19, 1065369472  ;;  %v276_v23 = vsel %vm273_vm3, %v254_v16, %v266_v20 }
  0x92   : > { %456 = vmatpush3.bf16.msra.mxu0 %v276_v23  ;;  %v289_v24 = vand.u32 %v288_v21, %v280_v22 }
  0x93   : > { %457 = vmatprep.subr.bf16.mxu0 %v518_v5 }
  0x96   : > { %458 = vmatpush3.bf16.msra.mxu0 %v289_v24 }
  0x99   : > { %460 = vmatmul.mubr.msk.bf16.vlgmr.msra.gmra.mrb[0].mxu0 %vm282_vm7, %v281_v25 }
 0x16c   : > { %v325_v26 = vpop.f32.mrb[0].mxu0 }
 0x16d   : > { %v331_v27 = vpack.c.bf16 %v325_v26, %v325_v26  ;;  %v461_v28 = vpop.f32.mrb[1].mxu0 }
 0x16e   : > { %v328_v29 = vpop.f32.mrb[2].mxu0 }
 0x16f   : > { %332 = vst [vmem:[%s237_s4] sm:$0xf] %v331_v27  ;;  %v462_v30 = vpop.f32.mrb[3].mxu0 }
 0x170 PF: > { %s13_s14 = sadd.s32 1, %s516_s14   ;;  %s590_s12 = smov %s512_s13 }
 0x171   : > { %p10_p5 = scmp.ge.s32.totalorder %s13_s14, 4   ;;  %s591_s13 = smov %s593_s15 }
 0x173   :  { %12 = sbr.rel (!%p10_p5) target bundleno = 2 (0x2), region = 65 }

// kernel: generator2_forward.50
= control target key start
LH: loop header
LB: loop body
LE: loop exit
PB: predicated region body
PF: predicated region fallthrough
CT: control target
= control target key end

     0   :  { %s566_s12 = smov 0   ;;  %s568_s13 = smov 0   ;;  %s613_s0 = inlined_call_operand.vmem [shape: bf16[2,8,256], index: 0, kind: input, shape index: {}, may-alias: {0,1}]   ;;  %s614_s1 = inlined_call_operand.vmem [shape: bf16[2,8,256], index: 1, kind: input, shape index: {}, may-alias: {0,1}]   ;;  %s615_s2 = inlined_call_operand.vmem [shape: bf16[8,41], index: 2, kind: input, shape index: {}]   ;;  %s616_s3 = inlined_call_operand.vmem [shape: bf16[2,8,128], index: 3, kind: output, shape index: {}]  }
   0x1   :  { %s570_s14 = smov 0  }
   0x2 LB: > { %s25_s15 = sadd.s32 1, %s533_s13  ;;  %p448_p0 = scmp.ge.s32.totalorder %s537_s14, 1  ;;  %s537_s14 = sphi %s570_s14, %s13_s14   ;;  %s533_s13 = sphi %s568_s13, %s618_s13   ;;  %s529_s12 = sphi %s566_s12, %s617_s12  }
   0x3   : > { %p27_p1 = scmp.ge.s32.totalorder %s25_s15, 2  ;;  %p175_p2 = scmp.lt.s32.totalorder %s537_s14, 3 }
   0x5   : > { %s620_s15 = smov (%p27_p1, %s25_s15), 0  ;;  %p176_p3 = pnand %p448_p0, %p175_p2 }
   0x6   : > { %p213_p4 = scmp.lt.s32.totalorder (!%p176_p3), %s529_s12, 1  ;;  %v539_v5 = vmov (!%p176_p3), 0.0   ;;  %s540_s24 = smov (!%p176_p3), 126   ;;  %vm542_vm2 = vmmov (!%p176_p3), 0   ;;  %vm265_vm3 = vcmask (!%p176_p3), 1039360   ;;  %vm285_vm4 = vcmask (!%p176_p3), 1043456  }
   0x7   : > { %179 = sbr.rel (%p176_p3) target bundleno = 374 (0x176), region = 32  ;;  %472 = vmatprep.subr.bf16.mxu0 (!%p176_p3), %v539_v5  ;;  %s541_s25 = smov (!%p176_p3), 127   ;;  %478 = vmatprep.mubr.msk.bf16.mxu0 (!%p176_p3), %vm542_vm2, %v539_v5  ;;  %vm271_vm5 = vcmask (!%p176_p3), 1031168   ;;  %vm277_vm6 = vcmask (!%p176_p3), 1022976   ;;  %vm302_vm7 = vcmask (!%p176_p3), 1044480   ;;  %v545_v23 = vmov (!%p176_p3), 65535  }
   0x8   : > { %s543_s26 = smov (!%p176_p3), 125   ;;  %s544_s27 = smov (!%p176_p3), 124   ;;  %v303_v24 = vsel (!%p176_p3), %vm285_vm4, 4294967295, %v545_v23  ;;  %vm283_vm8 = vcmask (!%p176_p3), 1014784   ;;  %v297_v32 = vld [vmem:[%s615_s2] sm:$0xf] (!%p176_p3) }
   0x9   : > { %v304_v27 = vsel (!%p176_p3), %vm302_vm7, %v303_v24, 0  ;;  %vm298_vm9 = vcmask (!%p176_p3), 334848  }
   0xe   : > { %s622_s12 = smov (!%p213_p4, %s529_s12), 1 }
   0xf   : > { %s459_s16 = sshll.u32 %s622_s12, 3  ;;  %s453_s30 = sshll.u32 %s622_s12, 2 }
  0x10   : > { %s220_s19 = scalar_lea.vmem %s613_s0, %s459_s16  ;;  %s461_s20 = sadd.s32 4, %s459_s16 }
  0x11   : > { %s229_s23 = scalar_lea.vmem %s614_s1, %s461_s20  ;;  %v240_v0 = vld [vmem:[%s220_s19] sm:$0xf]  ;;  %s237_s6 = scalar_lea.vmem %s616_s3, %s453_s30 }
  0x12   : > { %v241_v1 = vunpack.c.l.bf16 %v240_v0  ;;  %v242_v2 = vld [vmem:[%s229_s23] sm:$0xf] }
  0x13   : > { %v243_v3 = vunpack.c.l.bf16 %v242_v2 }
  0x14   : > { %vm244_vm0 = vcmp.gt.f32.partialorder %v241_v1, 0.0  ;;  %v245_v4 = vmul.f32 0.1, %v241_v1 }
  0x15   : > { %vm247_vm1 = vcmp.gt.f32.partialorder %v243_v3, 0.0  ;;  %v248_v6 = vmul.f32 0.1, %v243_v3 }
  0x16   : > { %v246_v7 = vsel %vm244_vm0, %v241_v1, %v245_v4 }
  0x17   : > { %v249_v8 = vsel %vm247_vm1, %v243_v3, %v248_v6  ;;  %v513_v10 = vpack.c.bf16 %v246_v7, %v246_v7 }
  0x18   : > { %v465_v9 = vpack.c.bf16 %v249_v8, %v246_v7  ;;  %v514_v11 = vpack.c.bf16 %v249_v8, %v249_v8 }
  0x19   : > { %267 = vrot.lane.b32.xlu1 %v513_v10, %s540_s24  ;;  %261 = vrot.lane.b32.xlu0 %v513_v10, %s541_s25 }
  0x1a   : > { %466 = vst [vmem:[#allocation2] sm:$0xff] %v465_v9  }
  0x1d   : > { %269 = vrot.lane.b32.xlu1 %v514_v11, %s540_s24  ;;  %263 = vrot.lane.b32.xlu0 %v514_v11, %s541_s25 }
  0x21   : > { %275 = vrot.lane.b32.xlu1 %v514_v11, %s543_s26  ;;  %273 = vrot.lane.b32.xlu0 %v513_v10, %s543_s26  ;;  %v254_v14 = vld [vmem:[#allocation2] sm:$0xf] }
  0x25   : > { %281 = vrot.lane.b32.xlu1 %v514_v11, %s544_s27  ;;  %279 = vrot.lane.b32.xlu0 %v513_v10, %s544_s27 }
  0x8b   : > { %v268_v12 = vpop.permute.xlu1 %267  ;;  %v262_v13 = vpop.permute.xlu0 %261 }
  0x8f   : > { %v270_v15 = vpop.permute.xlu1 %269  ;;  %v264_v16 = vpop.permute.xlu0 %263 }
  0x90   : > { %v266_v17 = vsel %vm265_vm3, %v262_v13, %v264_v16  ;;  %v272_v21 = vsel %vm271_vm5, %v268_v12, %v270_v15 }
  0x91   : > { %v288_v18 = vsel %vm285_vm4, %v254_v14, %v266_v17 }
  0x92   : > { %473 = vmatpush3.bf16.msra.mxu0 %v288_v18 }
  0x93   : > { %v276_v19 = vpop.permute.xlu1 %275  ;;  %v274_v20 = vpop.permute.xlu0 %273  ;;  %474 = vmatprep.subr.bf16.mxu0 %v539_v5 }
  0x94   : > { %v278_v22 = vsel %vm277_vm6, %v274_v20, %v276_v19 }
  0x95   : > { %v292_v25 = vsel %vm285_vm4, %v272_v21, %v278_v22 }
  0x96   : > { %475 = vmatpush3.bf16.msra.mxu0 %v292_v25 }
  0x97   : > { %v282_v26 = vpop.permute.xlu1 %281  ;;  %v280_v28 = vpop.permute.xlu0 %279  ;;  %476 = vmatprep.subr.bf16.mxu0 %v539_v5 }
  0x98   : > { %v284_v29 = vsel %vm283_vm8, %v280_v28, %v282_v26 }
  0x99   : > { %v296_v30 = vsel %vm285_vm4, %v284_v29, 1065369472 }
  0x9a   : > { %v305_v31 = vand.u32 %v304_v27, %v296_v30 }
  0x9c   : > { %477 = vmatpush3.bf16.msra.mxu0 %v305_v31 }
  0x9f   : > { %479 = vmatmul.mubr.msk.bf16.vlgmr.msra.gmra.mrb[0].mxu0 %vm298_vm9, %v297_v32 }
 0x172   : > { %v341_v33 = vpop.f32.mrb[0].mxu0 }
 0x173   : > { %v347_v34 = vpack.c.bf16 %v341_v33, %v341_v33  ;;  %v480_v35 = vpop.f32.mrb[1].mxu0 }
 0x174   : > { %v344_v36 = vpop.f32.mrb[2].mxu0 }
 0x175   : > { %348 = vst [vmem:[%s237_s6] sm:$0xf] %v347_v34  ;;  %v481_v37 = vpop.f32.mrb[3].mxu0 }
 0x176 PF: > { %s13_s14 = sadd.s32 1, %s537_s14   ;;  %s617_s12 = smov %s533_s13 }
 0x177   : > { %p10_p5 = scmp.ge.s32.totalorder %s13_s14, 4   ;;  %s618_s13 = smov %s620_s15 }
 0x179   :  { %12 = sbr.rel (!%p10_p5) target bundleno = 2 (0x2), region = 65 }

// kernel: generator2_forward.54
= control target key start
LH: loop header
LB: loop body
LE: loop exit
PB: predicated region body
PF: predicated region fallthrough
CT: control target
= control target key end

     0   :  { %s566_s12 = smov 0   ;;  %s568_s13 = smov 0   ;;  %s613_s0 = inlined_call_operand.vmem [shape: bf16[2,8,256], index: 0, kind: input, shape index: {}, may-alias: {0,1}]   ;;  %s614_s1 = inlined_call_operand.vmem [shape: bf16[2,8,256], index: 1, kind: input, shape index: {}, may-alias: {0,1}]   ;;  %s615_s2 = inlined_call_operand.vmem [shape: bf16[8,41], index: 2, kind: input, shape index: {}]   ;;  %s616_s3 = inlined_call_operand.vmem [shape: bf16[2,8,128], index: 3, kind: output, shape index: {}]  }
   0x1   :  { %s570_s14 = smov 0  }
   0x2 LB: > { %s25_s15 = sadd.s32 1, %s533_s13  ;;  %p448_p0 = scmp.ge.s32.totalorder %s537_s14, 1  ;;  %s537_s14 = sphi %s570_s14, %s13_s14   ;;  %s533_s13 = sphi %s568_s13, %s618_s13   ;;  %s529_s12 = sphi %s566_s12, %s617_s12  }
   0x3   : > { %p27_p1 = scmp.ge.s32.totalorder %s25_s15, 2  ;;  %p175_p2 = scmp.lt.s32.totalorder %s537_s14, 3 }
   0x5   : > { %s620_s15 = smov (%p27_p1, %s25_s15), 0  ;;  %p176_p3 = pnand %p448_p0, %p175_p2 }
   0x6   : > { %p213_p4 = scmp.lt.s32.totalorder (!%p176_p3), %s529_s12, 1  ;;  %v539_v5 = vmov (!%p176_p3), 0.0   ;;  %s540_s24 = smov (!%p176_p3), 118   ;;  %vm542_vm2 = vmmov (!%p176_p3), 0   ;;  %vm265_vm3 = vcmask (!%p176_p3), 1006592   ;;  %vm285_vm4 = vcmask (!%p176_p3), 1043456  }
   0x7   : > { %179 = sbr.rel (%p176_p3) target bundleno = 374 (0x176), region = 32  ;;  %472 = vmatprep.subr.bf16.mxu0 (!%p176_p3), %v539_v5  ;;  %s541_s25 = smov (!%p176_p3), 123   ;;  %478 = vmatprep.mubr.msk.bf16.mxu0 (!%p176_p3), %vm542_vm2, %v539_v5  ;;  %vm271_vm5 = vcmask (!%p176_p3), 965632   ;;  %vm277_vm6 = vcmask (!%p176_p3), 924672   ;;  %vm302_vm7 = vcmask (!%p176_p3), 1044480   ;;  %v545_v23 = vmov (!%p176_p3), 65535  }
   0x8   : > { %s543_s26 = smov (!%p176_p3), 113   ;;  %s544_s27 = smov (!%p176_p3), 108   ;;  %v303_v24 = vsel (!%p176_p3), %vm285_vm4, 4294967295, %v545_v23  ;;  %vm283_vm8 = vcmask (!%p176_p3), 883712   ;;  %v297_v32 = vld [vmem:[%s615_s2] sm:$0xf] (!%p176_p3) }
   0x9   : > { %v304_v27 = vsel (!%p176_p3), %vm302_vm7, %v303_v24, 0  ;;  %vm298_vm9 = vcmask (!%p176_p3), 334848  }
   0xe   : > { %s622_s12 = smov (!%p213_p4, %s529_s12), 1 }
   0xf   : > { %s459_s16 = sshll.u32 %s622_s12, 3  ;;  %s453_s30 = sshll.u32 %s622_s12, 2 }
  0x10   : > { %s220_s19 = scalar_lea.vmem %s613_s0, %s459_s16  ;;  %s461_s20 = sadd.s32 4, %s459_s16 }
  0x11   : > { %s229_s23 = scalar_lea.vmem %s614_s1, %s461_s20  ;;  %v240_v0 = vld [vmem:[%s220_s19] sm:$0xf]  ;;  %s237_s6 = scalar_lea.vmem %s616_s3, %s453_s30 }
  0x12   : > { %v241_v1 = vunpack.c.l.bf16 %v240_v0  ;;  %v242_v2 = vld [vmem:[%s229_s23] sm:$0xf] }
  0x13   : > { %v243_v3 = vunpack.c.l.bf16 %v242_v2 }
  0x14   : > { %vm244_vm0 = vcmp.gt.f32.partialorder %v241_v1, 0.0  ;;  %v245_v4 = vmul.f32 0.1, %v241_v1 }
  0x15   : > { %vm247_vm1 = vcmp.gt.f32.partialorder %v243_v3, 0.0  ;;  %v248_v6 = vmul.f32 0.1, %v243_v3 }
  0x16   : > { %v246_v7 = vsel %vm244_vm0, %v241_v1, %v245_v4 }
  0x17   : > { %v249_v8 = vsel %vm247_vm1, %v243_v3, %v248_v6  ;;  %v513_v10 = vpack.c.bf16 %v246_v7, %v246_v7 }
  0x18   : > { %v465_v9 = vpack.c.bf16 %v249_v8, %v246_v7  ;;  %v514_v11 = vpack.c.bf16 %v249_v8, %v249_v8 }
  0x19   : > { %267 = vrot.lane.b32.xlu1 %v513_v10, %s540_s24  ;;  %261 = vrot.lane.b32.xlu0 %v513_v10, %s541_s25 }
  0x1a   : > { %466 = vst [vmem:[#allocation2] sm:$0xff] %v465_v9  }
  0x1d   : > { %269 = vrot.lane.b32.xlu1 %v514_v11, %s540_s24  ;;  %263 = vrot.lane.b32.xlu0 %v514_v11, %s541_s25 }
  0x21   : > { %275 = vrot.lane.b32.xlu1 %v514_v11, %s543_s26  ;;  %273 = vrot.lane.b32.xlu0 %v513_v10, %s543_s26  ;;  %v254_v14 = vld [vmem:[#allocation2] sm:$0xf] }
  0x25   : > { %281 = vrot.lane.b32.xlu1 %v514_v11, %s544_s27  ;;  %279 = vrot.lane.b32.xlu0 %v513_v10, %s544_s27 }
  0x8b   : > { %v268_v12 = vpop.permute.xlu1 %267  ;;  %v262_v13 = vpop.permute.xlu0 %261 }
  0x8f   : > { %v270_v15 = vpop.permute.xlu1 %269  ;;  %v264_v16 = vpop.permute.xlu0 %263 }
  0x90   : > { %v266_v17 = vsel %vm265_vm3, %v262_v13, %v264_v16  ;;  %v272_v21 = vsel %vm271_vm5, %v268_v12, %v270_v15 }
  0x91   : > { %v288_v18 = vsel %vm285_vm4, %v254_v14, %v266_v17 }
  0x92   : > { %473 = vmatpush3.bf16.msra.mxu0 %v288_v18 }
  0x93   : > { %v276_v19 = vpop.permute.xlu1 %275  ;;  %v274_v20 = vpop.permute.xlu0 %273  ;;  %474 = vmatprep.subr.bf16.mxu0 %v539_v5 }
  0x94   : > { %v278_v22 = vsel %vm277_vm6, %v274_v20, %v276_v19 }
  0x95   : > { %v292_v25 = vsel %vm285_vm4, %v272_v21, %v278_v22 }
  0x96   : > { %475 = vmatpush3.bf16.msra.mxu0 %v292_v25 }
  0x97   : > { %v282_v26 = vpop.permute.xlu1 %281  ;;  %v280_v28 = vpop.permute.xlu0 %279  ;;  %476 = vmatprep.subr.bf16.mxu0 %v539_v5 }
  0x98   : > { %v284_v29 = vsel %vm283_vm8, %v280_v28, %v282_v26 }
  0x99   : > { %v296_v30 = vsel %vm285_vm4, %v284_v29, 1065369472 }
  0x9a   : > { %v305_v31 = vand.u32 %v304_v27, %v296_v30 }
  0x9c   : > { %477 = vmatpush3.bf16.msra.mxu0 %v305_v31 }
  0x9f   : > { %479 = vmatmul.mubr.msk.bf16.vlgmr.msra.gmra.mrb[0].mxu0 %vm298_vm9, %v297_v32 }
 0x172   : > { %v341_v33 = vpop.f32.mrb[0].mxu0 }
 0x173   : > { %v347_v34 = vpack.c.bf16 %v341_v33, %v341_v33  ;;  %v480_v35 = vpop.f32.mrb[1].mxu0 }
 0x174   : > { %v344_v36 = vpop.f32.mrb[2].mxu0 }
 0x175   : > { %348 = vst [vmem:[%s237_s6] sm:$0xf] %v347_v34  ;;  %v481_v37 = vpop.f32.mrb[3].mxu0 }
 0x176 PF: > { %s13_s14 = sadd.s32 1, %s537_s14   ;;  %s617_s12 = smov %s533_s13 }
 0x177   : > { %p10_p5 = scmp.ge.s32.totalorder %s13_s14, 4   ;;  %s618_s13 = smov %s620_s15 }
 0x179   :  { %12 = sbr.rel (!%p10_p5) target bundleno = 2 (0x2), region = 65 }

// kernel: generator2_forward.52
= control target key start
LH: loop header
LB: loop body
LE: loop exit
PB: predicated region body
PF: predicated region fallthrough
CT: control target
= control target key end

     0   :  { %s566_s12 = smov 0   ;;  %s568_s13 = smov 0   ;;  %s613_s0 = inlined_call_operand.vmem [shape: bf16[2,8,256], index: 0, kind: input, shape index: {}, may-alias: {0,1}]   ;;  %s614_s1 = inlined_call_operand.vmem [shape: bf16[2,8,256], index: 1, kind: input, shape index: {}, may-alias: {0,1}]   ;;  %s615_s2 = inlined_call_operand.vmem [shape: bf16[8,41], index: 2, kind: input, shape index: {}]   ;;  %s616_s3 = inlined_call_operand.vmem [shape: bf16[2,8,128], index: 3, kind: output, shape index: {}]  }
   0x1   :  { %s570_s14 = smov 0  }
   0x2 LB: > { %s25_s15 = sadd.s32 1, %s533_s13  ;;  %p448_p0 = scmp.ge.s32.totalorder %s537_s14, 1  ;;  %s537_s14 = sphi %s570_s14, %s13_s14   ;;  %s533_s13 = sphi %s568_s13, %s618_s13   ;;  %s529_s12 = sphi %s566_s12, %s617_s12  }
   0x3   : > { %p27_p1 = scmp.ge.s32.totalorder %s25_s15, 2  ;;  %p175_p2 = scmp.lt.s32.totalorder %s537_s14, 3 }
   0x5   : > { %s620_s15 = smov (%p27_p1, %s25_s15), 0  ;;  %p176_p3 = pnand %p448_p0, %p175_p2 }
   0x6   : > { %p213_p4 = scmp.lt.s32.totalorder (!%p176_p3), %s529_s12, 1  ;;  %v539_v5 = vmov (!%p176_p3), 0.0   ;;  %s540_s24 = smov (!%p176_p3), 122   ;;  %vm542_vm2 = vmmov (!%p176_p3), 0   ;;  %vm265_vm3 = vcmask (!%p176_p3), 1022976   ;;  %vm285_vm4 = vcmask (!%p176_p3), 1043456  }
   0x7   : > { %179 = sbr.rel (%p176_p3) target bundleno = 374 (0x176), region = 32  ;;  %472 = vmatprep.subr.bf16.mxu0 (!%p176_p3), %v539_v5  ;;  %s541_s25 = smov (!%p176_p3), 125   ;;  %478 = vmatprep.mubr.msk.bf16.mxu0 (!%p176_p3), %vm542_vm2, %v539_v5  ;;  %vm271_vm5 = vcmask (!%p176_p3), 998400   ;;  %vm277_vm6 = vcmask (!%p176_p3), 973824   ;;  %vm302_vm7 = vcmask (!%p176_p3), 1044480   ;;  %v545_v23 = vmov (!%p176_p3), 65535  }
   0x8   : > { %s543_s26 = smov (!%p176_p3), 119   ;;  %s544_s27 = smov (!%p176_p3), 116   ;;  %v303_v24 = vsel (!%p176_p3), %vm285_vm4, 4294967295, %v545_v23  ;;  %vm283_vm8 = vcmask (!%p176_p3), 949248   ;;  %v297_v32 = vld [vmem:[%s615_s2] sm:$0xf] (!%p176_p3) }
   0x9   : > { %v304_v27 = vsel (!%p176_p3), %vm302_vm7, %v303_v24, 0  ;;  %vm298_vm9 = vcmask (!%p176_p3), 334848  }
   0xe   : > { %s622_s12 = smov (!%p213_p4, %s529_s12), 1 }
   0xf   : > { %s459_s16 = sshll.u32 %s622_s12, 3  ;;  %s453_s30 = sshll.u32 %s622_s12, 2 }
  0x10   : > { %s220_s19 = scalar_lea.vmem %s613_s0, %s459_s16  ;;  %s461_s20 = sadd.s32 4, %s459_s16 }
  0x11   : > { %s229_s23 = scalar_lea.vmem %s614_s1, %s461_s20  ;;  %v240_v0 = vld [vmem:[%s220_s19] sm:$0xf]  ;;  %s237_s6 = scalar_lea.vmem %s616_s3, %s453_s30 }
  0x12   : > { %v241_v1 = vunpack.c.l.bf16 %v240_v0  ;;  %v242_v2 = vld [vmem:[%s229_s23] sm:$0xf] }
  0x13   : > { %v243_v3 = vunpack.c.l.bf16 %v242_v2 }
  0x14   : > { %vm244_vm0 = vcmp.gt.f32.partialorder %v241_v1, 0.0  ;;  %v245_v4 = vmul.f32 0.1, %v241_v1 }
  0x15   : > { %vm247_vm1 = vcmp.gt.f32.partialorder %v243_v3, 0.0  ;;  %v248_v6 = vmul.f32 0.1, %v243_v3 }
  0x16   : > { %v246_v7 = vsel %vm244_vm0, %v241_v1, %v245_v4 }
  0x17   : > { %v249_v8 = vsel %vm247_vm1, %v243_v3, %v248_v6  ;;  %v513_v10 = vpack.c.bf16 %v246_v7, %v246_v7 }
  0x18   : > { %v465_v9 = vpack.c.bf16 %v249_v8, %v246_v7  ;;  %v514_v11 = vpack.c.bf16 %v249_v8, %v249_v8 }
  0x19   : > { %267 = vrot.lane.b32.xlu1 %v513_v10, %s540_s24  ;;  %261 = vrot.lane.b32.xlu0 %v513_v10, %s541_s25 }
  0x1a   : > { %466 = vst [vmem:[#allocation2] sm:$0xff] %v465_v9  }
  0x1d   : > { %269 = vrot.lane.b32.xlu1 %v514_v11, %s540_s24  ;;  %263 = vrot.lane.b32.xlu0 %v514_v11, %s541_s25 }
  0x21   : > { %275 = vrot.lane.b32.xlu1 %v514_v11, %s543_s26  ;;  %273 = vrot.lane.b32.xlu0 %v513_v10, %s543_s26  ;;  %v254_v14 = vld [vmem:[#allocation2] sm:$0xf] }
  0x25   : > { %281 = vrot.lane.b32.xlu1 %v514_v11, %s544_s27  ;;  %279 = vrot.lane.b32.xlu0 %v513_v10, %s544_s27 }
  0x8b   : > { %v268_v12 = vpop.permute.xlu1 %267  ;;  %v262_v13 = vpop.permute.xlu0 %261 }
  0x8f   : > { %v270_v15 = vpop.permute.xlu1 %269  ;;  %v264_v16 = vpop.permute.xlu0 %263 }
  0x90   : > { %v266_v17 = vsel %vm265_vm3, %v262_v13, %v264_v16  ;;  %v272_v21 = vsel %vm271_vm5, %v268_v12, %v270_v15 }
  0x91   : > { %v288_v18 = vsel %vm285_vm4, %v254_v14, %v266_v17 }
  0x92   : > { %473 = vmatpush3.bf16.msra.mxu0 %v288_v18 }
  0x93   : > { %v276_v19 = vpop.permute.xlu1 %275  ;;  %v274_v20 = vpop.permute.xlu0 %273  ;;  %474 = vmatprep.subr.bf16.mxu0 %v539_v5 }
  0x94   : > { %v278_v22 = vsel %vm277_vm6, %v274_v20, %v276_v19 }
  0x95   : > { %v292_v25 = vsel %vm285_vm4, %v272_v21, %v278_v22 }
  0x96   : > { %475 = vmatpush3.bf16.msra.mxu0 %v292_v25 }
  0x97   : > { %v282_v26 = vpop.permute.xlu1 %281  ;;  %v280_v28 = vpop.permute.xlu0 %279  ;;  %476 = vmatprep.subr.bf16.mxu0 %v539_v5 }
  0x98   : > { %v284_v29 = vsel %vm283_vm8, %v280_v28, %v282_v26 }
  0x99   : > { %v296_v30 = vsel %vm285_vm4, %v284_v29, 1065369472 }
  0x9a   : > { %v305_v31 = vand.u32 %v304_v27, %v296_v30 }
  0x9c   : > { %477 = vmatpush3.bf16.msra.mxu0 %v305_v31 }
  0x9f   : > { %479 = vmatmul.mubr.msk.bf16.vlgmr.msra.gmra.mrb[0].mxu0 %vm298_vm9, %v297_v32 }
 0x172   : > { %v341_v33 = vpop.f32.mrb[0].mxu0 }
 0x173   : > { %v347_v34 = vpack.c.bf16 %v341_v33, %v341_v33  ;;  %v480_v35 = vpop.f32.mrb[1].mxu0 }
 0x174   : > { %v344_v36 = vpop.f32.mrb[2].mxu0 }
 0x175   : > { %348 = vst [vmem:[%s237_s6] sm:$0xf] %v347_v34  ;;  %v481_v37 = vpop.f32.mrb[3].mxu0 }
 0x176 PF: > { %s13_s14 = sadd.s32 1, %s537_s14   ;;  %s617_s12 = smov %s533_s13 }
 0x177   : > { %p10_p5 = scmp.ge.s32.totalorder %s13_s14, 4   ;;  %s618_s13 = smov %s620_s15 }
 0x179   :  { %12 = sbr.rel (!%p10_p5) target bundleno = 2 (0x2), region = 65 }

// kernel: generator2_forward.46
= control target key start
LH: loop header
LB: loop body
LE: loop exit
PB: predicated region body
PF: predicated region fallthrough
CT: control target
= control target key end

     0   :  { %s543_s12 = smov 0   ;;  %s545_s13 = smov 0   ;;  %s586_s0 = inlined_call_operand.vmem [shape: bf16[2,8,256], index: 0, kind: input, shape index: {}, may-alias: {0,1}]   ;;  %s587_s1 = inlined_call_operand.vmem [shape: bf16[2,8,256], index: 1, kind: input, shape index: {}, may-alias: {0,1}]   ;;  %s588_s2 = inlined_call_operand.vmem [shape: bf16[8,25], index: 2, kind: input, shape index: {}]   ;;  %s589_s3 = inlined_call_operand.vmem [shape: bf16[2,8,128], index: 3, kind: output, shape index: {}]  }
   0x1   :  { %s547_s14 = smov 0  }
   0x2 LB: > { %s25_s15 = sadd.s32 1, %s512_s13  ;;  %p432_p0 = scmp.ge.s32.totalorder %s516_s14, 1  ;;  %s516_s14 = sphi %s547_s14, %s13_s14   ;;  %s512_s13 = sphi %s545_s13, %s591_s13   ;;  %s508_s12 = sphi %s543_s12, %s590_s12  }
   0x3   : > { %p27_p1 = scmp.ge.s32.totalorder %s25_s15, 2  ;;  %p175_p2 = scmp.lt.s32.totalorder %s516_s14, 3 }
   0x5   : > { %s593_s15 = smov (%p27_p1, %s25_s15), 0  ;;  %p176_p3 = pnand %p432_p0, %p175_p2 }
   0x6   : > { %p213_p4 = scmp.lt.s32.totalorder (!%p176_p3), %s508_s12, 1  ;;  %v518_v5 = vmov (!%p176_p3), 0.0   ;;  %vm519_vm2 = vmmov (!%p176_p3), 0   ;;  %s520_s24 = smov (!%p176_p3), 122   ;;  %vm273_vm3 = vcmask (!%p176_p3), 1043456   ;;  %vm271_vm4 = vcmask (!%p176_p3), 998400  }
   0x7   : > { %179 = sbr.rel (%p176_p3) target bundleno = 368 (0x170), region = 32  ;;  %455 = vmatprep.subr.bf16.mxu0 (!%p176_p3), %v518_v5  ;;  %459 = vmatprep.mubr.msk.bf16.mxu0 (!%p176_p3), %vm519_vm2, %v518_v5  ;;  %s521_s25 = smov (!%p176_p3), 125   ;;  %vm265_vm5 = vcmask (!%p176_p3), 1022976   ;;  %vm286_vm6 = vcmask (!%p176_p3), 1044480   ;;  %v522_v14 = vmov (!%p176_p3), 65535   ;;  %vm282_vm7 = vcmask (!%p176_p3), 203776  }
   0x8   : > { %v287_v15 = vsel (!%p176_p3), %vm273_vm3, 4294967295, %v522_v14  ;;  %v281_v25 = vld [vmem:[%s588_s2] sm:$0xf] (!%p176_p3) }
   0x9   : > { %v288_v21 = vsel (!%p176_p3), %vm286_vm6, %v287_v15, 0 }
   0xe   : > { %s595_s12 = smov (!%p213_p4, %s508_s12), 1 }
   0xf   : > { %s443_s16 = sshll.u32 %s595_s12, 3  ;;  %s437_s28 = sshll.u32 %s595_s12, 2 }
  0x10   : > { %s220_s19 = scalar_lea.vmem %s586_s0, %s443_s16  ;;  %s445_s20 = sadd.s32 4, %s443_s16 }
  0x11   : > { %s229_s23 = scalar_lea.vmem %s587_s1, %s445_s20  ;;  %v240_v0 = vld [vmem:[%s220_s19] sm:$0xf]  ;;  %s237_s4 = scalar_lea.vmem %s589_s3, %s437_s28 }
  0x12   : > { %v241_v1 = vunpack.c.l.bf16 %v240_v0  ;;  %v242_v2 = vld [vmem:[%s229_s23] sm:$0xf] }
  0x13   : > { %v243_v3 = vunpack.c.l.bf16 %v242_v2 }
  0x14   : > { %vm244_vm0 = vcmp.gt.f32.partialorder %v241_v1, 0.0  ;;  %v245_v4 = vmul.f32 0.1, %v241_v1 }
  0x15   : > { %vm247_vm1 = vcmp.gt.f32.partialorder %v243_v3, 0.0  ;;  %v248_v6 = vmul.f32 0.1, %v243_v3 }
  0x16   : > { %v246_v7 = vsel %vm244_vm0, %v241_v1, %v245_v4 }
  0x17   : > { %v249_v8 = vsel %vm247_vm1, %v243_v3, %v248_v6  ;;  %v492_v10 = vpack.c.bf16 %v246_v7, %v246_v7 }
  0x18   : > { %v449_v9 = vpack.c.bf16 %v249_v8, %v246_v7  ;;  %v493_v11 = vpack.c.bf16 %v249_v8, %v249_v8 }
  0x19   : > { %267 = vrot.lane.b32.xlu1 %v492_v10, %s520_s24  ;;  %261 = vrot.lane.b32.xlu0 %v492_v10, %s521_s25 }
  0x1a   : > { %450 = vst [vmem:[#allocation2] sm:$0xff] %v449_v9  }
  0x1d   : > { %269 = vrot.lane.b32.xlu1 %v493_v11, %s520_s24  ;;  %263 = vrot.lane.b32.xlu0 %v493_v11, %s521_s25 }
  0x21   : > { %v254_v16 = vld [vmem:[#allocation2] sm:$0xf] }
  0x8b   : > { %v268_v12 = vpop.permute.xlu1 %267  ;;  %v262_v13 = vpop.permute.xlu0 %261 }
  0x8f   : > { %v270_v17 = vpop.permute.xlu1 %269  ;;  %v264_v18 = vpop.permute.xlu0 %263 }
  0x90   : > { %v272_v19 = vsel %vm271_vm4, %v268_v12, %v270_v17  ;;  %v266_v20 = vsel %vm265_vm5, %v262_v13, %v264_v18 }
  0x91   : > { %v280_v22 = vsel %vm273_vm3, %v272_v19, 1065369472  ;;  %v276_v23 = vsel %vm273_vm3, %v254_v16, %v266_v20 }
  0x92   : > { %456 = vmatpush3.bf16.msra.mxu0 %v276_v23  ;;  %v289_v24 = vand.u32 %v288_v21, %v280_v22 }
  0x93   : > { %457 = vmatprep.subr.bf16.mxu0 %v518_v5 }
  0x96   : > { %458 = vmatpush3.bf16.msra.mxu0 %v289_v24 }
  0x99   : > { %460 = vmatmul.mubr.msk.bf16.vlgmr.msra.gmra.mrb[0].mxu0 %vm282_vm7, %v281_v25 }
 0x16c   : > { %v325_v26 = vpop.f32.mrb[0].mxu0 }
 0x16d   : > { %v331_v27 = vpack.c.bf16 %v325_v26, %v325_v26  ;;  %v461_v28 = vpop.f32.mrb[1].mxu0 }
 0x16e   : > { %v328_v29 = vpop.f32.mrb[2].mxu0 }
 0x16f   : > { %332 = vst [vmem:[%s237_s4] sm:$0xf] %v331_v27  ;;  %v462_v30 = vpop.f32.mrb[3].mxu0 }
 0x170 PF: > { %s13_s14 = sadd.s32 1, %s516_s14   ;;  %s590_s12 = smov %s512_s13 }
 0x171   : > { %p10_p5 = scmp.ge.s32.totalorder %s13_s14, 4   ;;  %s591_s13 = smov %s593_s15 }
 0x173   :  { %12 = sbr.rel (!%p10_p5) target bundleno = 2 (0x2), region = 65 }

// kernel: generator2_forward.57
= control target key start
LH: loop header
LB: loop body
LE: loop exit
PB: predicated region body
PF: predicated region fallthrough
CT: control target
= control target key end

     0   :  { %s318_s6 = smov 0   ;;  %s320_s7 = smov 0   ;;  %s351_s0 = inlined_call_operand.vmem [shape: f32[2,4,64], index: 0, kind: input, shape index: {}]   ;;  %s352_s1 = inlined_call_operand.vmem [shape: f32[2,4,64], index: 1, kind: output, shape index: {}]  }
   0x1   :  { %s322_s8 = smov 0  }
   0x2 LB: > { %s23_s9 = sadd.s32 1, %s302_s7  ;;  %p255_p0 = scmp.ge.s32.totalorder %s306_s8, 1  ;;  %s306_s8 = sphi %s322_s8, %s11_s8   ;;  %s302_s7 = sphi %s320_s7, %s354_s7   ;;  %s298_s6 = sphi %s318_s6, %s353_s6  }
   0x3   : > { %p25_p1 = scmp.ge.s32.totalorder %s23_s9, 2  ;;  %p105_p2 = scmp.lt.s32.totalorder %s306_s8, 3 }
   0x5   : > { %s356_s9 = smov (%p25_p1, %s23_s9), 0  ;;  %p106_p3 = pnand %p255_p0, %p105_p2 }
   0x6   : > { %p129_p4 = scmp.lt.s32.totalorder (!%p106_p3), %s298_s6, 1  ;;  %vm168_vm0 = vcmask (!%p106_p3), 1040384   ;;  %vm170_vm1 = vcmask (!%p106_p3), 1041408   ;;  %vm172_vm2 = vcmask (!%p106_p3), 1042432   ;;  %vm175_vm3 = vcmask (!%p106_p3), 519168  }
   0x7   : > { %109 = sbr.rel (%p106_p3) target bundleno = 34 (0x22), region = 24 }
   0xe   : > { %s358_s6 = smov (!%p129_p4, %s298_s6), 1 }
   0xf   : > { %s256_s10 = sshll.u32 %s358_s6, 2 }
  0x10   : > { %s135_s13 = scalar_lea.vmem %s351_s0, %s256_s10  ;;  %s142_s16 = scalar_lea.vmem %s352_s1, %s256_s10 }
  0x11   : > { %v143_v0 = vld [vmem:[%s135_s13] sm:$0xf] }
  0x12   : > { %v145_v1 = vrot.slane %v143_v0, 1 }
  0x14   : > { %v147_v2 = vadd.f32 %v145_v1, %v143_v0  ;;  %v148_v3 = vsub.f32 %v143_v0, %v145_v1 }
  0x16   : > { %v150_v4 = vrot.slane %v147_v2, 2  ;;  %v155_v5 = vrot.slane %v148_v3, 2 }
  0x18   : > { %v152_v6 = vadd.f32 %v150_v4, %v147_v2  ;;  %v153_v7 = vsub.f32 %v147_v2, %v150_v4  ;;  %v157_v8 = vadd.f32 %v155_v5, %v148_v3  ;;  %v158_v9 = vsub.f32 %v148_v3, %v155_v5 }
  0x1a   : > { %v160_v10 = vrot.slane %v153_v7, 7  ;;  %v163_v11 = vrot.slane %v157_v8, 6  ;;  %v166_v12 = vrot.slane %v158_v9, 5 }
  0x1c   : > { %v169_v13 = vsel %vm168_vm0, %v152_v6, %v160_v10 }
  0x1d   : > { %v171_v14 = vsel %vm170_vm1, %v169_v13, %v163_v11 }
  0x1e   : > { %v173_v15 = vsel %vm172_vm2, %v171_v14, %v166_v12 }
  0x1f   : > { %v174_v16 = vmul.f32 0.5, %v173_v15 }
  0x21   : > { %176 = vst.msk [vmem:[%s142_s16] sm:$0xf] %vm175_vm3, %v174_v16 }
  0x22 PF: > { %s11_s8 = sadd.s32 1, %s306_s8   ;;  %s353_s6 = smov %s302_s7 }
  0x23   : > { %p8_p5 = scmp.ge.s32.totalorder %s11_s8, 4   ;;  %s354_s7 = smov %s356_s9 }
  0x25   :  { %10 = sbr.rel (!%p8_p5) target bundleno = 2 (0x2), region = 54 }

// kernel: generator2_forward.48
= control target key start
LH: loop header
LB: loop body
LE: loop exit
PB: predicated region body
PF: predicated region fallthrough
CT: control target
= control target key end

     0   :  { %s543_s12 = smov 0   ;;  %s545_s13 = smov 0   ;;  %s586_s0 = inlined_call_operand.vmem [shape: bf16[2,8,256], index: 0, kind: input, shape index: {}, may-alias: {0,1}]   ;;  %s587_s1 = inlined_call_operand.vmem [shape: bf16[2,8,256], index: 1, kind: input, shape index: {}, may-alias: {0,1}]   ;;  %s588_s2 = inlined_call_operand.vmem [shape: bf16[8,25], index: 2, kind: input, shape index: {}]   ;;  %s589_s3 = inlined_call_operand.vmem [shape: bf16[2,8,128], index: 3, kind: output, shape index: {}]  }
   0x1   :  { %s547_s14 = smov 0  }
   0x2 LB: > { %s25_s15 = sadd.s32 1, %s512_s13  ;;  %p432_p0 = scmp.ge.s32.totalorder %s516_s14, 1  ;;  %s516_s14 = sphi %s547_s14, %s13_s14   ;;  %s512_s13 = sphi %s545_s13, %s591_s13   ;;  %s508_s12 = sphi %s543_s12, %s590_s12  }
   0x3   : > { %p27_p1 = scmp.ge.s32.totalorder %s25_s15, 2  ;;  %p175_p2 = scmp.lt.s32.totalorder %s516_s14, 3 }
   0x5   : > { %s593_s15 = smov (%p27_p1, %s25_s15), 0  ;;  %p176_p3 = pnand %p432_p0, %p175_p2 }
   0x6   : > { %p213_p4 = scmp.lt.s32.totalorder (!%p176_p3), %s508_s12, 1  ;;  %v518_v5 = vmov (!%p176_p3), 0.0   ;;  %vm519_vm2 = vmmov (!%p176_p3), 0   ;;  %s520_s24 = smov (!%p176_p3), 118   ;;  %vm273_vm3 = vcmask (!%p176_p3), 1043456   ;;  %vm271_vm4 = vcmask (!%p176_p3), 965632  }
   0x7   : > { %179 = sbr.rel (%p176_p3) target bundleno = 368 (0x170), region = 32  ;;  %455 = vmatprep.subr.bf16.mxu0 (!%p176_p3), %v518_v5  ;;  %459 = vmatprep.mubr.msk.bf16.mxu0 (!%p176_p3), %vm519_vm2, %v518_v5  ;;  %s521_s25 = smov (!%p176_p3), 123   ;;  %vm265_vm5 = vcmask (!%p176_p3), 1006592   ;;  %vm286_vm6 = vcmask (!%p176_p3), 1044480   ;;  %v522_v14 = vmov (!%p176_p3), 65535   ;;  %vm282_vm7 = vcmask (!%p176_p3), 203776  }
   0x8   : > { %v287_v15 = vsel (!%p176_p3), %vm273_vm3, 4294967295, %v522_v14  ;;  %v281_v25 = vld [vmem:[%s588_s2] sm:$0xf] (!%p176_p3) }
   0x9   : > { %v288_v21 = vsel (!%p176_p3), %vm286_vm6, %v287_v15, 0 }
   0xe   : > { %s595_s12 = smov (!%p213_p4, %s508_s12), 1 }
   0xf   : > { %s443_s16 = sshll.u32 %s595_s12, 3  ;;  %s437_s28 = sshll.u32 %s595_s12, 2 }
  0x10   : > { %s220_s19 = scalar_lea.vmem %s586_s0, %s443_s16  ;;  %s445_s20 = sadd.s32 4, %s443_s16 }
  0x11   : > { %s229_s23 = scalar_lea.vmem %s587_s1, %s445_s20  ;;  %v240_v0 = vld [vmem:[%s220_s19] sm:$0xf]  ;;  %s237_s4 = scalar_lea.vmem %s589_s3, %s437_s28 }
  0x12   : > { %v241_v1 = vunpack.c.l.bf16 %v240_v0  ;;  %v242_v2 = vld [vmem:[%s229_s23] sm:$0xf] }
  0x13   : > { %v243_v3 = vunpack.c.l.bf16 %v242_v2 }
  0x14   : > { %vm244_vm0 = vcmp.gt.f32.partialorder %v241_v1, 0.0  ;;  %v245_v4 = vmul.f32 0.1, %v241_v1 }
  0x15   : > { %vm247_vm1 = vcmp.gt.f32.partialorder %v243_v3, 0.0  ;;  %v248_v6 = vmul.f32 0.1, %v243_v3 }
  0x16   : > { %v246_v7 = vsel %vm244_vm0, %v241_v1, %v245_v4 }
  0x17   : > { %v249_v8 = vsel %vm247_vm1, %v243_v3, %v248_v6  ;;  %v492_v10 = vpack.c.bf16 %v246_v7, %v246_v7 }
  0x18   : > { %v449_v9 = vpack.c.bf16 %v249_v8, %v246_v7  ;;  %v493_v11 = vpack.c.bf16 %v249_v8, %v249_v8 }
  0x19   : > { %267 = vrot.lane.b32.xlu1 %v492_v10, %s520_s24  ;;  %261 = vrot.lane.b32.xlu0 %v492_v10, %s521_s25 }
  0x1a   : > { %450 = vst [vmem:[#allocation2] sm:$0xff] %v449_v9  }
  0x1d   : > { %269 = vrot.lane.b32.xlu1 %v493_v11, %s520_s24  ;;  %263 = vrot.lane.b32.xlu0 %v493_v11, %s521_s25 }
  0x21   : > { %v254_v16 = vld [vmem:[#allocation2] sm:$0xf] }
  0x8b   : > { %v268_v12 = vpop.permute.xlu1 %267  ;;  %v262_v13 = vpop.permute.xlu0 %261 }
  0x8f   : > { %v270_v17 = vpop.permute.xlu1 %269  ;;  %v264_v18 = vpop.permute.xlu0 %263 }
  0x90   : > { %v272_v19 = vsel %vm271_vm4, %v268_v12, %v270_v17  ;;  %v266_v20 = vsel %vm265_vm5, %v262_v13, %v264_v18 }
  0x91   : > { %v280_v22 = vsel %vm273_vm3, %v272_v19, 1065369472  ;;  %v276_v23 = vsel %vm273_vm3, %v254_v16, %v266_v20 }
  0x92   : > { %456 = vmatpush3.bf16.msra.mxu0 %v276_v23  ;;  %v289_v24 = vand.u32 %v288_v21, %v280_v22 }
  0x93   : > { %457 = vmatprep.subr.bf16.mxu0 %v518_v5 }
  0x96   : > { %458 = vmatpush3.bf16.msra.mxu0 %v289_v24 }
  0x99   : > { %460 = vmatmul.mubr.msk.bf16.vlgmr.msra.gmra.mrb[0].mxu0 %vm282_vm7, %v281_v25 }
 0x16c   : > { %v325_v26 = vpop.f32.mrb[0].mxu0 }
 0x16d   : > { %v331_v27 = vpack.c.bf16 %v325_v26, %v325_v26  ;;  %v461_v28 = vpop.f32.mrb[1].mxu0 }
 0x16e   : > { %v328_v29 = vpop.f32.mrb[2].mxu0 }
 0x16f   : > { %332 = vst [vmem:[%s237_s4] sm:$0xf] %v331_v27  ;;  %v462_v30 = vpop.f32.mrb[3].mxu0 }
 0x170 PF: > { %s13_s14 = sadd.s32 1, %s516_s14   ;;  %s590_s12 = smov %s512_s13 }
 0x171   : > { %p10_p5 = scmp.ge.s32.totalorder %s13_s14, 4   ;;  %s591_s13 = smov %s593_s15 }
 0x173   :  { %12 = sbr.rel (!%p10_p5) target bundleno = 2 (0x2), region = 65 }

// kernel: generator2_forward.56
= control target key start
LH: loop header
LB: loop body
LE: loop exit
PB: predicated region body
PF: predicated region fallthrough
CT: control target
= control target key end

     0   :  { %s591_s12 = smov 0   ;;  %s593_s13 = smov 0   ;;  %s644_s0 = inlined_call_operand.vmem [shape: bf16[2,8,256], index: 0, kind: input, shape index: {}, may-alias: {0,1}]   ;;  %s645_s1 = inlined_call_operand.vmem [shape: bf16[2,8,256], index: 1, kind: input, shape index: {}, may-alias: {0,1}]   ;;  %s646_s2 = inlined_call_operand.vmem [shape: bf16[4,57], index: 2, kind: input, shape index: {}]   ;;  %s647_s3 = inlined_call_operand.vmem [shape: f32[2,4,128], index: 3, kind: output, shape index: {}]  }
   0x1   :  { %s595_s14 = smov 0  }
   0x2 LB: > { %s25_s15 = sadd.s32 1, %s556_s13  ;;  %p464_p0 = scmp.ge.s32.totalorder %s560_s14, 1  ;;  %s560_s14 = sphi %s595_s14, %s13_s14   ;;  %s556_s13 = sphi %s593_s13, %s649_s13   ;;  %s552_s12 = sphi %s591_s12, %s648_s12  }
   0x3   : > { %p27_p1 = scmp.ge.s32.totalorder %s25_s15, 2  ;;  %p175_p2 = scmp.lt.s32.totalorder %s560_s14, 3 }
   0x5   : > { %s651_s15 = smov (%p27_p1, %s25_s15), 0  ;;  %p176_p3 = pnand %p464_p0, %p175_p2 }
   0x6   : > { %p213_p4 = scmp.lt.s32.totalorder (!%p176_p3), %s552_s12, 1  ;;  %v562_v5 = vmov (!%p176_p3), 0.0   ;;  %s563_s24 = smov (!%p176_p3), 126   ;;  %vm567_vm2 = vmmov (!%p176_p3), 0   ;;  %vm265_vm3 = vcmask (!%p176_p3), 1039360   ;;  %vm297_vm4 = vcmask (!%p176_p3), 1043456  }
   0x7   : > { %179 = sbr.rel (%p176_p3) target bundleno = 391 (0x187), region = 32  ;;  %489 = vmatprep.subr.bf16.mxu0 (!%p176_p3), %v562_v5  ;;  %s564_s25 = smov (!%p176_p3), 127   ;;  %497 = vmatprep.mubr.msk.bf16.mxu0 (!%p176_p3), %vm567_vm2, %v562_v5  ;;  %vm271_vm5 = vcmask (!%p176_p3), 1031168   ;;  %vm277_vm6 = vcmask (!%p176_p3), 1022976   ;;  %vm283_vm7 = vcmask (!%p176_p3), 1014784   ;;  %vm289_vm8 = vcmask (!%p176_p3), 1006592  }
   0x8   : > { %s565_s26 = smov (!%p176_p3), 125   ;;  %s566_s27 = smov (!%p176_p3), 124   ;;  %vm318_vm9 = vcmask (!%p176_p3), 1044480   ;;  %v570_v30 = vmov (!%p176_p3), 65535   ;;  %vm295_vm10 = vcmask (!%p176_p3), 998400   ;;  %vm314_vm11 = vcmask (!%p176_p3), 465920  }
   0x9   : > { %s568_s28 = smov (!%p176_p3), 123   ;;  %s569_s29 = smov (!%p176_p3), 122   ;;  %v319_v31 = vsel (!%p176_p3), %vm297_vm4, 4294967295, %v570_v30  ;;  %v313_v39 = vld [vmem:[%s646_s2] sm:$0x3] (!%p176_p3) }
   0xa   : > { %v320_v34 = vsel (!%p176_p3), %vm318_vm9, %v319_v31, 0 }
   0xe   : > { %s653_s12 = smov (!%p213_p4, %s552_s12), 1 }
   0xf   : > { %s475_s16 = sshll.u32 %s653_s12, 3  ;;  %s469_s5 = sshll.u32 %s653_s12, 2 }
  0x10   : > { %s220_s19 = scalar_lea.vmem %s644_s0, %s475_s16  ;;  %s477_s20 = sadd.s32 4, %s475_s16 }
  0x11   : > { %s229_s23 = scalar_lea.vmem %s645_s1, %s477_s20  ;;  %v240_v0 = vld [vmem:[%s220_s19] sm:$0xf]  ;;  %s237_s8 = scalar_lea.vmem %s647_s3, %s469_s5 }
  0x12   : > { %v241_v1 = vunpack.c.l.bf16 %v240_v0  ;;  %v242_v2 = vld [vmem:[%s229_s23] sm:$0xf] }
  0x13   : > { %v243_v3 = vunpack.c.l.bf16 %v242_v2 }
  0x14   : > { %vm244_vm0 = vcmp.gt.f32.partialorder %v241_v1, 0.0  ;;  %v245_v4 = vmul.f32 0.1, %v241_v1 }
  0x15   : > { %vm247_vm1 = vcmp.gt.f32.partialorder %v243_v3, 0.0  ;;  %v248_v6 = vmul.f32 0.1, %v243_v3 }
  0x16   : > { %v246_v7 = vsel %vm244_vm0, %v241_v1, %v245_v4 }
  0x17   : > { %v249_v8 = vsel %vm247_vm1, %v243_v3, %v248_v6  ;;  %v536_v10 = vpack.c.bf16 %v246_v7, %v246_v7 }
  0x18   : > { %v481_v9 = vpack.c.bf16 %v249_v8, %v246_v7  ;;  %v537_v11 = vpack.c.bf16 %v249_v8, %v249_v8 }
  0x19   : > { %267 = vrot.lane.b32.xlu1 %v536_v10, %s563_s24  ;;  %261 = vrot.lane.b32.xlu0 %v536_v10, %s564_s25 }
  0x1a   : > { %482 = vst [vmem:[#allocation2] sm:$0xff] %v481_v9  }
  0x1d   : > { %269 = vrot.lane.b32.xlu1 %v537_v11, %s563_s24  ;;  %263 = vrot.lane.b32.xlu0 %v537_v11, %s564_s25 }
  0x21   : > { %275 = vrot.lane.b32.xlu1 %v537_v11, %s565_s26  ;;  %273 = vrot.lane.b32.xlu0 %v536_v10, %s565_s26  ;;  %v254_v14 = vld [vmem:[#allocation2] sm:$0xf] }
  0x25   : > { %281 = vrot.lane.b32.xlu1 %v537_v11, %s566_s27  ;;  %279 = vrot.lane.b32.xlu0 %v536_v10, %s566_s27 }
  0x29   : > { %287 = vrot.lane.b32.xlu1 %v537_v11, %s568_s28  ;;  %285 = vrot.lane.b32.xlu0 %v536_v10, %s568_s28 }
  0x2d   : > { %293 = vrot.lane.b32.xlu1 %v537_v11, %s569_s29  ;;  %291 = vrot.lane.b32.xlu0 %v536_v10, %s569_s29 }
  0x8b   : > { %v268_v12 = vpop.permute.xlu1 %267  ;;  %v262_v13 = vpop.permute.xlu0 %261 }
  0x8f   : > { %v270_v15 = vpop.permute.xlu1 %269  ;;  %v264_v16 = vpop.permute.xlu0 %263 }
  0x90   : > { %v266_v17 = vsel %vm265_vm3, %v262_v13, %v264_v16  ;;  %v272_v21 = vsel %vm271_vm5, %v268_v12, %v270_v15 }
  0x91   : > { %v300_v18 = vsel %vm297_vm4, %v254_v14, %v266_v17 }
  0x92   : > { %490 = vmatpush3.bf16.msra.mxu0 %v300_v18 }
  0x93   : > { %v276_v19 = vpop.permute.xlu1 %275  ;;  %v274_v20 = vpop.permute.xlu0 %273  ;;  %491 = vmatprep.subr.bf16.mxu0 %v562_v5 }
  0x94   : > { %v278_v22 = vsel %vm277_vm6, %v274_v20, %v276_v19 }
  0x95   : > { %v304_v23 = vsel %vm297_vm4, %v272_v21, %v278_v22 }
  0x96   : > { %492 = vmatpush3.bf16.msra.mxu0 %v304_v23 }
  0x97   : > { %v282_v24 = vpop.permute.xlu1 %281  ;;  %v280_v25 = vpop.permute.xlu0 %279  ;;  %493 = vmatprep.subr.bf16.mxu0 %v562_v5 }
  0x98   : > { %v284_v28 = vsel %vm283_vm7, %v280_v25, %v282_v24 }
  0x9b   : > { %v288_v26 = vpop.permute.xlu1 %287  ;;  %v286_v27 = vpop.permute.xlu0 %285 }
  0x9c   : > { %v290_v29 = vsel %vm289_vm8, %v286_v27, %v288_v26 }
  0x9d   : > { %v308_v32 = vsel %vm297_vm4, %v284_v28, %v290_v29 }
  0x9e   : > { %494 = vmatpush3.bf16.msra.mxu0 %v308_v32 }
  0x9f   : > { %v294_v33 = vpop.permute.xlu1 %293  ;;  %v292_v35 = vpop.permute.xlu0 %291  ;;  %495 = vmatprep.subr.bf16.mxu0 %v562_v5 }
  0xa0   : > { %v296_v36 = vsel %vm295_vm10, %v292_v35, %v294_v33 }
  0xa1   : > { %v312_v37 = vsel %vm297_vm4, %v296_v36, 1065369472 }
  0xa2   : > { %v321_v38 = vand.u32 %v320_v34, %v312_v37 }
  0xa4   : > { %496 = vmatpush3.bf16.msra.mxu0 %v321_v38 }
  0xa7   : > { %498 = vmatmul.mubr.msk.bf16.vlgmr.msra.gmra.mrb[0].mxu0 %vm314_vm11, %v313_v39 }
 0x17a   : > { %v357_v40 = vpop.f32.mrb[0].mxu0 }
 0x17b   : > { %534 = vtanh.f32 %v357_v40  ;;  %v499_v41 = vpop.f32.mrb[1].mxu0 }
 0x17c   : > { %v360_v42 = vpop.f32.mrb[2].mxu0 }
 0x17d   : > { %v500_v43 = vpop.f32.mrb[3].mxu0 }
 0x185   : > { %v535_v44 = vpop.eup %534 }
 0x186   : > { %364 = vst [vmem:[%s237_s8] sm:$0xf] %v535_v44 }
 0x187 PF: > { %s13_s14 = sadd.s32 1, %s560_s14   ;;  %s648_s12 = smov %s556_s13 }
 0x188   : > { %p10_p5 = scmp.ge.s32.totalorder %s13_s14, 4   ;;  %s649_s13 = smov %s651_s15 }
 0x18a   :  { %12 = sbr.rel (!%p10_p5) target bundleno = 2 (0x2), region = 65 }

</bundles_post_ra>
